<compile_context>
chip_gen: v6e
topology: v6e:2x2x1
jax: 0.10.0
libtpu: 0.0.40
codegen_flags: <defaults>
</compile_context>

<pallas_src>
import jax
import jax.numpy as jnp
from jax.experimental import pallas as pl
from jax.experimental.pallas import tpu as pltpu

FEATURE = 15            # conv output channels
KSIZE = 3               # conv kernel size
LENGTH = 512            # input sequence length (15 * 512/2 == 3840 == Fc.in_features)
NUM_CLASS = 32
HALF = LENGTH // 2      # 256 (post-pool length)
FLAT = FEATURE * HALF   # 3840
PW = KSIZE * FEATURE    # 45: offset of conv biases in the packed param vector
TBATCH = 512            # max batch tile (multiple of 8)


def cnn1_kernel(params_ref, xe_ref, xo_ref, w3_ref, fb_ref, o_ref, acc_ref):
    # xe[n, j] = x[n, 2j]   (tb, 256)
    # xo[n, j] = x[n, 2j+1] (tb, 256)
    xe = xe_ref[...]
    xo = xo_ref[...]

    lane = jax.lax.broadcasted_iota(jnp.int32, xe.shape, 1)
    # x[n, 2j-1] = xo[n, j-1], zero at j==0 (conv padding).
    xom1 = jnp.where(lane == 0, 0.0, pltpu.roll(xo, 1, axis=1))
    # x[n, 2j+2] = xe[n, j+1], zero at j==HALF-1 (conv padding).
    xep1 = jnp.where(lane == HALF - 1, 0.0, pltpu.roll(xe, HALF - 1, axis=1))

    # Fold the FC bias into the accumulator initialization.
    acc_ref[...] = jnp.broadcast_to(fb_ref[...], acc_ref.shape)

    # Static unroll over the 15 conv feature channels; each pooled 256-wide slab
    # is immediately contracted against its (256, 32) chunk of the FC weights,
    # so the MXU overlaps with the VPU conv work of the next feature.
    for f in range(FEATURE):
        w0 = params_ref[3 * f + 0]
        w1 = params_ref[3 * f + 1]
        w2 = params_ref[3 * f + 2]
        b = params_ref[PW + f]
        # Conv1d(padding=1, stride=1) at even / odd output positions (bias hoisted).
        c_even = w0 * xom1 + w1 * xe + w2 * xo
        c_odd = w0 * xe + w1 * xo + w2 * xep1
        # relu(max(c_even+b, c_odd+b)) == max(max(c_even, c_odd)+b, 0)
        slab = jnp.maximum(jnp.maximum(c_even, c_odd) + b, 0.0)
        acc_ref[...] += jnp.dot(
            slab, w3_ref[f * HALF:(f + 1) * HALF, :],
            preferred_element_type=jnp.float32)

    o_ref[...] = acc_ref[...]


def cnn1_forward(x, conv_w, conv_b, fc_w, fc_b):
    """x: (N, 1, 512) f32; conv_w: (15, 1, 3); conv_b: (15,);
    fc_w: (32, 3840); fc_b: (32,).  Returns (N, 32) f32."""
    n = x.shape[0]
    xl = x[:, 0, :]                                  # (N, 512)
    xe = xl[:, 0::2]                                 # (N, 256)
    xo = xl[:, 1::2]                                 # (N, 256)

    # Batch tile: multiple of 8 sublanes, capped at TBATCH.  Once there is
    # enough work, pick tb so the grid has >= 2 steps (keeps both v7x
    # TensorCores busy via the "parallel" grid axis).
    n8 = ((n + 7) // 8) * 8
    if n8 > TBATCH:
        tb = TBATCH
    elif n8 >= 16:
        tb = ((n8 // 2 + 7) // 8) * 8
    else:
        tb = n8
    n_pad = ((n + tb - 1) // tb) * tb
    if n_pad != n:
        pad = ((0, n_pad - n), (0, 0))
        xe = jnp.pad(xe, pad)
        xo = jnp.pad(xo, pad)

    # Pack conv weights + biases into one flat SMEM vector (no 2-D SMEM padding).
    params = jnp.concatenate(
        [conv_w.reshape(-1), conv_b.reshape(-1)]).astype(jnp.float32)   # (60,)

    # PyTorch flatten is row-major over (feature, position): idx = f*256 + j,
    # so fc_w.T (3840, 32) is already in the right order for the chunked dots.
    w3 = fc_w.T.astype(jnp.float32)                  # (3840, 32)
    fb = fc_b.reshape(1, NUM_CLASS).astype(jnp.float32)

    out = pl.pallas_call(
        cnn1_kernel,
        out_shape=jax.ShapeDtypeStruct((n_pad, NUM_CLASS), jnp.float32),
        grid=(n_pad // tb,),
        in_specs=[
            pl.BlockSpec((PW + FEATURE,), lambda i: (0,),
                         memory_space=pltpu.MemorySpace.SMEM),
            pl.BlockSpec((tb, HALF), lambda i: (i, 0)),
            pl.BlockSpec((tb, HALF), lambda i: (i, 0)),
            pl.BlockSpec((FLAT, NUM_CLASS), lambda i: (0, 0)),   # resident FC weights
            pl.BlockSpec((1, NUM_CLASS), lambda i: (0, 0)),
        ],
        out_specs=pl.BlockSpec((tb, NUM_CLASS), lambda i: (i, 0)),
        scratch_shapes=[pltpu.VMEM((tb, NUM_CLASS), jnp.float32)],
        compiler_params=pltpu.CompilerParams(
            dimension_semantics=("parallel",)),
    )(params, xe, xo, w3, fb)
    return out[:n]


def ref_forward(x, conv_w, conv_b, fc_w, fc_b):
    """Pure-JAX reference replicating the PyTorch forward pass."""
    n = x.shape[0]
    xp = jnp.pad(x, ((0, 0), (0, 0), (1, 1)))
    cols = jnp.stack([xp[:, :, k:k + LENGTH] for k in range(KSIZE)], axis=-1)
    conv = jnp.einsum('ncik,fck->nfi', cols, conv_w) + conv_b[None, :, None]
    r = jnp.maximum(conv, 0.0)
    pooled = r.reshape(n, FEATURE, HALF, 2).max(axis=-1)
    flat = pooled.reshape(n, -1)
    return flat @ fc_w.T + fc_b


if __name__ == "__main__":
    key = jax.random.PRNGKey(0)
    k1, k2, k3, k4, k5 = jax.random.split(key, 5)
    N = 2
    x = jax.random.normal(k1, (N, 1, LENGTH), jnp.float32)
    conv_w = jax.random.normal(k2, (FEATURE, 1, KSIZE), jnp.float32) * 0.5
    conv_b = jax.random.normal(k3, (FEATURE,), jnp.float32) * 0.1
    fc_w = jax.random.normal(k4, (NUM_CLASS, FLAT), jnp.float32) * 0.02
    fc_b = jax.random.normal(k5, (NUM_CLASS,), jnp.float32) * 0.1

    out = jax.jit(cnn1_forward)(x, conv_w, conv_b, fc_w, fc_b)
    out = jax.block_until_ready(out)

    ref = ref_forward(x, conv_w, conv_b, fc_w, fc_b)
    assert out.shape == (N, NUM_CLASS)
    max_err = float(jnp.max(jnp.abs(out - ref)))
    assert jnp.allclose(out, ref, atol=1e-3, rtol=1e-3), max_err
    print("KERNEL_OK")
</pallas_src>

<mosaic_0001>
module attributes {stable_mosaic.version = 11 : i64} {
  func.func @cnn1_kernel(%arg0: i32, %arg1: memref<60xf32, #tpu.memory_space<smem>>, %arg2: memref<8x256xf32, #tpu.memory_space<vmem>>, %arg3: memref<8x256xf32, #tpu.memory_space<vmem>>, %arg4: memref<3840x32xf32, #tpu.memory_space<vmem>>, %arg5: memref<1x32xf32, #tpu.memory_space<vmem>>, %arg6: memref<8x32xf32, #tpu.memory_space<vmem>>, %arg7: memref<8x32xf32, #tpu.memory_space<vmem>>) attributes {dimension_semantics = [#tpu.dimension_semantics<parallel>], iteration_bounds = array<i64: 1>, scalar_prefetch = 0 : i64, scratch_operands = 1 : i64, tpu.core_type = #tpu.core_type<tc>, window_params = [{transform_indices = @transform_0, window_bounds = array<i64: 60>}, {transform_indices = @transform_1, window_bounds = array<i64: 8, 256>}, {transform_indices = @transform_2, window_bounds = array<i64: 8, 256>}, {pipeline_mode = #tpu.pipeline_mode<synchronous>, transform_indices = @transform_3, window_bounds = array<i64: 3840, 32>}, {pipeline_mode = #tpu.pipeline_mode<synchronous>, transform_indices = @transform_4, window_bounds = array<i64: 1, 32>}, {transform_indices = @transform_5, window_bounds = array<i64: 8, 32>}]} {
    %c0 = arith.constant 0 : index
    %c0_0 = arith.constant 0 : index
    %0 = vector.load %arg2[%c0, %c0_0] : memref<8x256xf32, #tpu.memory_space<vmem>>, vector<8x256xf32>
    %c0_1 = arith.constant 0 : index
    %c0_2 = arith.constant 0 : index
    %1 = vector.load %arg3[%c0_1, %c0_2] : memref<8x256xf32, #tpu.memory_space<vmem>>, vector<8x256xf32>
    %2 = tpu.iota {dimensions = array<i32: 1>} : vector<8x256xi32>
    %c0_i32 = arith.constant 0 : i32
    %3 = vector.broadcast %c0_i32 : i32 to vector<8x256xi32>
    %4 = arith.cmpi eq, %2, %3 : vector<8x256xi32>
    %c1_i32 = arith.constant 1 : i32
    %5 = tpu.dynamic_rotate %1 by %c1_i32 dim 1 : vector<8x256xf32>, i32 -> vector<8x256xf32>
    %cst = arith.constant 0.000000e+00 : f32
    %6 = vector.broadcast %cst : f32 to vector<8x256xf32>
    %7 = arith.select %4, %6, %5 : vector<8x256xi1>, vector<8x256xf32>
    %c255_i32 = arith.constant 255 : i32
    %8 = vector.broadcast %c255_i32 : i32 to vector<8x256xi32>
    %9 = arith.cmpi eq, %2, %8 : vector<8x256xi32>
    %c255_i32_3 = arith.constant 255 : i32
    %10 = tpu.dynamic_rotate %0 by %c255_i32_3 dim 1 : vector<8x256xf32>, i32 -> vector<8x256xf32>
    %cst_4 = arith.constant 0.000000e+00 : f32
    %11 = vector.broadcast %cst_4 : f32 to vector<8x256xf32>
    %12 = arith.select %9, %11, %10 : vector<8x256xi1>, vector<8x256xf32>
    %c0_5 = arith.constant 0 : index
    %c0_6 = arith.constant 0 : index
    %13 = vector.load %arg5[%c0_5, %c0_6] : memref<1x32xf32, #tpu.memory_space<vmem>>, vector<1x32xf32>
    %14 = vector.shape_cast %13 : vector<1x32xf32> to vector<1x32xf32>
    %15 = vector.broadcast %14 : vector<1x32xf32> to vector<8x32xf32>
    %c0_7 = arith.constant 0 : index
    %c0_8 = arith.constant 0 : index
    %16 = vector.load %arg7[%c0_7, %c0_8] : memref<8x32xf32, #tpu.memory_space<vmem>>, vector<8x32xf32>
    tpu.vector_store %arg7[%c0_7, %c0_8], %15 {strides = array<i32>} : memref<8x32xf32, #tpu.memory_space<vmem>>, vector<8x32xf32>,
    %c0_9 = arith.constant 0 : index
    %17 = memref.load %arg1[%c0_9] : memref<60xf32, #tpu.memory_space<smem>>
    %c1 = arith.constant 1 : index
    %18 = memref.load %arg1[%c1] : memref<60xf32, #tpu.memory_space<smem>>
    %c2 = arith.constant 2 : index
    %19 = memref.load %arg1[%c2] : memref<60xf32, #tpu.memory_space<smem>>
    %c45 = arith.constant 45 : index
    %20 = memref.load %arg1[%c45] : memref<60xf32, #tpu.memory_space<smem>>
    %21 = vector.broadcast %17 : f32 to vector<8x256xf32>
    %22 = arith.mulf %21, %7 : vector<8x256xf32>
    %23 = vector.broadcast %18 : f32 to vector<8x256xf32>
    %24 = arith.mulf %23, %0 : vector<8x256xf32>
    %25 = arith.addf %22, %24 : vector<8x256xf32>
    %26 = vector.broadcast %19 : f32 to vector<8x256xf32>
    %27 = arith.mulf %26, %1 : vector<8x256xf32>
    %28 = arith.addf %25, %27 : vector<8x256xf32>
    %29 = vector.broadcast %17 : f32 to vector<8x256xf32>
    %30 = arith.mulf %29, %0 : vector<8x256xf32>
    %31 = vector.broadcast %18 : f32 to vector<8x256xf32>
    %32 = arith.mulf %31, %1 : vector<8x256xf32>
    %33 = arith.addf %30, %32 : vector<8x256xf32>
    %34 = vector.broadcast %19 : f32 to vector<8x256xf32>
    %35 = arith.mulf %34, %12 : vector<8x256xf32>
    %36 = arith.addf %33, %35 : vector<8x256xf32>
    %37 = arith.maximumf %28, %36 : vector<8x256xf32>
    %38 = vector.broadcast %20 : f32 to vector<8x256xf32>
    %39 = arith.addf %37, %38 : vector<8x256xf32>
    %cst_10 = arith.constant 0.000000e+00 : f32
    %40 = vector.broadcast %cst_10 : f32 to vector<8x256xf32>
    %41 = arith.maximumf %39, %40 : vector<8x256xf32>
    %c0_11 = arith.constant 0 : index
    %c0_12 = arith.constant 0 : index
    %42 = vector.load %arg7[%c0_11, %c0_12] : memref<8x32xf32, #tpu.memory_space<vmem>>, vector<8x32xf32>
    %c0_13 = arith.constant 0 : index
    %c0_14 = arith.constant 0 : index
    %43 = vector.load %arg4[%c0_13, %c0_14] : memref<3840x32xf32, #tpu.memory_space<vmem>>, vector<256x32xf32>
    %cst_15 = arith.constant dense<0.000000e+00> : vector<8x32xf32>
    %44 = tpu.matmul %41, %43, %cst_15 {dimension_numbers = #tpu.dot_dimension_numbers<[1], [0], [0], [1], [0, 0, 1, 1], [], []>} : vector<8x256xf32>, vector<256x32xf32>, vector<8x32xf32> -> vector<8x32xf32>
    %45 = arith.addf %42, %44 : vector<8x32xf32>
    %c0_16 = arith.constant 0 : index
    %c0_17 = arith.constant 0 : index
    %46 = vector.load %arg7[%c0_16, %c0_17] : memref<8x32xf32, #tpu.memory_space<vmem>>, vector<8x32xf32>
    tpu.vector_store %arg7[%c0_16, %c0_17], %45 {strides = array<i32>} : memref<8x32xf32, #tpu.memory_space<vmem>>, vector<8x32xf32>,
    %c3 = arith.constant 3 : index
    %47 = memref.load %arg1[%c3] : memref<60xf32, #tpu.memory_space<smem>>
    %c4 = arith.constant 4 : index
    %48 = memref.load %arg1[%c4] : memref<60xf32, #tpu.memory_space<smem>>
    %c5 = arith.constant 5 : index
    %49 = memref.load %arg1[%c5] : memref<60xf32, #tpu.memory_space<smem>>
    %c46 = arith.constant 46 : index
    %50 = memref.load %arg1[%c46] : memref<60xf32, #tpu.memory_space<smem>>
    %51 = vector.broadcast %47 : f32 to vector<8x256xf32>
    %52 = arith.mulf %51, %7 : vector<8x256xf32>
    %53 = vector.broadcast %48 : f32 to vector<8x256xf32>
    %54 = arith.mulf %53, %0 : vector<8x256xf32>
    %55 = arith.addf %52, %54 : vector<8x256xf32>
    %56 = vector.broadcast %49 : f32 to vector<8x256xf32>
    %57 = arith.mulf %56, %1 : vector<8x256xf32>
    %58 = arith.addf %55, %57 : vector<8x256xf32>
    %59 = vector.broadcast %47 : f32 to vector<8x256xf32>
    %60 = arith.mulf %59, %0 : vector<8x256xf32>
    %61 = vector.broadcast %48 : f32 to vector<8x256xf32>
    %62 = arith.mulf %61, %1 : vector<8x256xf32>
    %63 = arith.addf %60, %62 : vector<8x256xf32>
    %64 = vector.broadcast %49 : f32 to vector<8x256xf32>
    %65 = arith.mulf %64, %12 : vector<8x256xf32>
    %66 = arith.addf %63, %65 : vector<8x256xf32>
    %67 = arith.maximumf %58, %66 : vector<8x256xf32>
    %68 = vector.broadcast %50 : f32 to vector<8x256xf32>
    %69 = arith.addf %67, %68 : vector<8x256xf32>
    %cst_18 = arith.constant 0.000000e+00 : f32
    %70 = vector.broadcast %cst_18 : f32 to vector<8x256xf32>
    %71 = arith.maximumf %69, %70 : vector<8x256xf32>
    %c0_19 = arith.constant 0 : index
    %c0_20 = arith.constant 0 : index
    %72 = vector.load %arg7[%c0_19, %c0_20] : memref<8x32xf32, #tpu.memory_space<vmem>>, vector<8x32xf32>
    %c256 = arith.constant 256 : index
    %c0_21 = arith.constant 0 : index
    %73 = vector.load %arg4[%c256, %c0_21] : memref<3840x32xf32, #tpu.memory_space<vmem>>, vector<256x32xf32>
    %cst_22 = arith.constant dense<0.000000e+00> : vector<8x32xf32>
    %74 = tpu.matmul %71, %73, %cst_22 {dimension_numbers = #tpu.dot_dimension_numbers<[1], [0], [0], [1], [0, 0, 1, 1], [], []>} : vector<8x256xf32>, vector<256x32xf32>, vector<8x32xf32> -> vector<8x32xf32>
    %75 = arith.addf %72, %74 : vector<8x32xf32>
    %c0_23 = arith.constant 0 : index
    %c0_24 = arith.constant 0 : index
    %76 = vector.load %arg7[%c0_23, %c0_24] : memref<8x32xf32, #tpu.memory_space<vmem>>, vector<8x32xf32>
    tpu.vector_store %arg7[%c0_23, %c0_24], %75 {strides = array<i32>} : memref<8x32xf32, #tpu.memory_space<vmem>>, vector<8x32xf32>,
    %c6 = arith.constant 6 : index
    %77 = memref.load %arg1[%c6] : memref<60xf32, #tpu.memory_space<smem>>
    %c7 = arith.constant 7 : index
    %78 = memref.load %arg1[%c7] : memref<60xf32, #tpu.memory_space<smem>>
    %c8 = arith.constant 8 : index
    %79 = memref.load %arg1[%c8] : memref<60xf32, #tpu.memory_space<smem>>
    %c47 = arith.constant 47 : index
    %80 = memref.load %arg1[%c47] : memref<60xf32, #tpu.memory_space<smem>>
    %81 = vector.broadcast %77 : f32 to vector<8x256xf32>
    %82 = arith.mulf %81, %7 : vector<8x256xf32>
    %83 = vector.broadcast %78 : f32 to vector<8x256xf32>
    %84 = arith.mulf %83, %0 : vector<8x256xf32>
    %85 = arith.addf %82, %84 : vector<8x256xf32>
    %86 = vector.broadcast %79 : f32 to vector<8x256xf32>
    %87 = arith.mulf %86, %1 : vector<8x256xf32>
    %88 = arith.addf %85, %87 : vector<8x256xf32>
    %89 = vector.broadcast %77 : f32 to vector<8x256xf32>
    %90 = arith.mulf %89, %0 : vector<8x256xf32>
    %91 = vector.broadcast %78 : f32 to vector<8x256xf32>
    %92 = arith.mulf %91, %1 : vector<8x256xf32>
    %93 = arith.addf %90, %92 : vector<8x256xf32>
    %94 = vector.broadcast %79 : f32 to vector<8x256xf32>
    %95 = arith.mulf %94, %12 : vector<8x256xf32>
    %96 = arith.addf %93, %95 : vector<8x256xf32>
    %97 = arith.maximumf %88, %96 : vector<8x256xf32>
    %98 = vector.broadcast %80 : f32 to vector<8x256xf32>
    %99 = arith.addf %97, %98 : vector<8x256xf32>
    %cst_25 = arith.constant 0.000000e+00 : f32
    %100 = vector.broadcast %cst_25 : f32 to vector<8x256xf32>
    %101 = arith.maximumf %99, %100 : vector<8x256xf32>
    %c0_26 = arith.constant 0 : index
    %c0_27 = arith.constant 0 : index
    %102 = vector.load %arg7[%c0_26, %c0_27] : memref<8x32xf32, #tpu.memory_space<vmem>>, vector<8x32xf32>
    %c512 = arith.constant 512 : index
    %c0_28 = arith.constant 0 : index
    %103 = vector.load %arg4[%c512, %c0_28] : memref<3840x32xf32, #tpu.memory_space<vmem>>, vector<256x32xf32>
    %cst_29 = arith.constant dense<0.000000e+00> : vector<8x32xf32>
    %104 = tpu.matmul %101, %103, %cst_29 {dimension_numbers = #tpu.dot_dimension_numbers<[1], [0], [0], [1], [0, 0, 1, 1], [], []>} : vector<8x256xf32>, vector<256x32xf32>, vector<8x32xf32> -> vector<8x32xf32>
    %105 = arith.addf %102, %104 : vector<8x32xf32>
    %c0_30 = arith.constant 0 : index
    %c0_31 = arith.constant 0 : index
    %106 = vector.load %arg7[%c0_30, %c0_31] : memref<8x32xf32, #tpu.memory_space<vmem>>, vector<8x32xf32>
    tpu.vector_store %arg7[%c0_30, %c0_31], %105 {strides = array<i32>} : memref<8x32xf32, #tpu.memory_space<vmem>>, vector<8x32xf32>,
    %c9 = arith.constant 9 : index
    %107 = memref.load %arg1[%c9] : memref<60xf32, #tpu.memory_space<smem>>
    %c10 = arith.constant 10 : index
    %108 = memref.load %arg1[%c10] : memref<60xf32, #tpu.memory_space<smem>>
    %c11 = arith.constant 11 : index
    %109 = memref.load %arg1[%c11] : memref<60xf32, #tpu.memory_space<smem>>
    %c48 = arith.constant 48 : index
    %110 = memref.load %arg1[%c48] : memref<60xf32, #tpu.memory_space<smem>>
    %111 = vector.broadcast %107 : f32 to vector<8x256xf32>
    %112 = arith.mulf %111, %7 : vector<8x256xf32>
    %113 = vector.broadcast %108 : f32 to vector<8x256xf32>
    %114 = arith.mulf %113, %0 : vector<8x256xf32>
    %115 = arith.addf %112, %114 : vector<8x256xf32>
    %116 = vector.broadcast %109 : f32 to vector<8x256xf32>
    %117 = arith.mulf %116, %1 : vector<8x256xf32>
    %118 = arith.addf %115, %117 : vector<8x256xf32>
    %119 = vector.broadcast %107 : f32 to vector<8x256xf32>
    %120 = arith.mulf %119, %0 : vector<8x256xf32>
    %121 = vector.broadcast %108 : f32 to vector<8x256xf32>
    %122 = arith.mulf %121, %1 : vector<8x256xf32>
    %123 = arith.addf %120, %122 : vector<8x256xf32>
    %124 = vector.broadcast %109 : f32 to vector<8x256xf32>
    %125 = arith.mulf %124, %12 : vector<8x256xf32>
    %126 = arith.addf %123, %125 : vector<8x256xf32>
    %127 = arith.maximumf %118, %126 : vector<8x256xf32>
    %128 = vector.broadcast %110 : f32 to vector<8x256xf32>
    %129 = arith.addf %127, %128 : vector<8x256xf32>
    %cst_32 = arith.constant 0.000000e+00 : f32
    %130 = vector.broadcast %cst_32 : f32 to vector<8x256xf32>
    %131 = arith.maximumf %129, %130 : vector<8x256xf32>
    %c0_33 = arith.constant 0 : index
    %c0_34 = arith.constant 0 : index
    %132 = vector.load %arg7[%c0_33, %c0_34] : memref<8x32xf32, #tpu.memory_space<vmem>>, vector<8x32xf32>
    %c768 = arith.constant 768 : index
    %c0_35 = arith.constant 0 : index
    %133 = vector.load %arg4[%c768, %c0_35] : memref<3840x32xf32, #tpu.memory_space<vmem>>, vector<256x32xf32>
    %cst_36 = arith.constant dense<0.000000e+00> : vector<8x32xf32>
    %134 = tpu.matmul %131, %133, %cst_36 {dimension_numbers = #tpu.dot_dimension_numbers<[1], [0], [0], [1], [0, 0, 1, 1], [], []>} : vector<8x256xf32>, vector<256x32xf32>, vector<8x32xf32> -> vector<8x32xf32>
    %135 = arith.addf %132, %134 : vector<8x32xf32>
    %c0_37 = arith.constant 0 : index
    %c0_38 = arith.constant 0 : index
    %136 = vector.load %arg7[%c0_37, %c0_38] : memref<8x32xf32, #tpu.memory_space<vmem>>, vector<8x32xf32>
    tpu.vector_store %arg7[%c0_37, %c0_38], %135 {strides = array<i32>} : memref<8x32xf32, #tpu.memory_space<vmem>>, vector<8x32xf32>,
    %c12 = arith.constant 12 : index
    %137 = memref.load %arg1[%c12] : memref<60xf32, #tpu.memory_space<smem>>
    %c13 = arith.constant 13 : index
    %138 = memref.load %arg1[%c13] : memref<60xf32, #tpu.memory_space<smem>>
    %c14 = arith.constant 14 : index
    %139 = memref.load %arg1[%c14] : memref<60xf32, #tpu.memory_space<smem>>
    %c49 = arith.constant 49 : index
    %140 = memref.load %arg1[%c49] : memref<60xf32, #tpu.memory_space<smem>>
    %141 = vector.broadcast %137 : f32 to vector<8x256xf32>
    %142 = arith.mulf %141, %7 : vector<8x256xf32>
    %143 = vector.broadcast %138 : f32 to vector<8x256xf32>
    %144 = arith.mulf %143, %0 : vector<8x256xf32>
    %145 = arith.addf %142, %144 : vector<8x256xf32>
    %146 = vector.broadcast %139 : f32 to vector<8x256xf32>
    %147 = arith.mulf %146, %1 : vector<8x256xf32>
    %148 = arith.addf %145, %147 : vector<8x256xf32>
    %149 = vector.broadcast %137 : f32 to vector<8x256xf32>
    %150 = arith.mulf %149, %0 : vector<8x256xf32>
    %151 = vector.broadcast %138 : f32 to vector<8x256xf32>
    %152 = arith.mulf %151, %1 : vector<8x256xf32>
    %153 = arith.addf %150, %152 : vector<8x256xf32>
    %154 = vector.broadcast %139 : f32 to vector<8x256xf32>
    %155 = arith.mulf %154, %12 : vector<8x256xf32>
    %156 = arith.addf %153, %155 : vector<8x256xf32>
    %157 = arith.maximumf %148, %156 : vector<8x256xf32>
    %158 = vector.broadcast %140 : f32 to vector<8x256xf32>
    %159 = arith.addf %157, %158 : vector<8x256xf32>
    %cst_39 = arith.constant 0.000000e+00 : f32
    %160 = vector.broadcast %cst_39 : f32 to vector<8x256xf32>
    %161 = arith.maximumf %159, %160 : vector<8x256xf32>
    %c0_40 = arith.constant 0 : index
    %c0_41 = arith.constant 0 : index
    %162 = vector.load %arg7[%c0_40, %c0_41] : memref<8x32xf32, #tpu.memory_space<vmem>>, vector<8x32xf32>
    %c1024 = arith.constant 1024 : index
    %c0_42 = arith.constant 0 : index
    %163 = vector.load %arg4[%c1024, %c0_42] : memref<3840x32xf32, #tpu.memory_space<vmem>>, vector<256x32xf32>
    %cst_43 = arith.constant dense<0.000000e+00> : vector<8x32xf32>
    %164 = tpu.matmul %161, %163, %cst_43 {dimension_numbers = #tpu.dot_dimension_numbers<[1], [0], [0], [1], [0, 0, 1, 1], [], []>} : vector<8x256xf32>, vector<256x32xf32>, vector<8x32xf32> -> vector<8x32xf32>
    %165 = arith.addf %162, %164 : vector<8x32xf32>
    %c0_44 = arith.constant 0 : index
    %c0_45 = arith.constant 0 : index
    %166 = vector.load %arg7[%c0_44, %c0_45] : memref<8x32xf32, #tpu.memory_space<vmem>>, vector<8x32xf32>
    tpu.vector_store %arg7[%c0_44, %c0_45], %165 {strides = array<i32>} : memref<8x32xf32, #tpu.memory_space<vmem>>, vector<8x32xf32>,
    %c15 = arith.constant 15 : index
    %167 = memref.load %arg1[%c15] : memref<60xf32, #tpu.memory_space<smem>>
    %c16 = arith.constant 16 : index
    %168 = memref.load %arg1[%c16] : memref<60xf32, #tpu.memory_space<smem>>
    %c17 = arith.constant 17 : index
    %169 = memref.load %arg1[%c17] : memref<60xf32, #tpu.memory_space<smem>>
    %c50 = arith.constant 50 : index
    %170 = memref.load %arg1[%c50] : memref<60xf32, #tpu.memory_space<smem>>
    %171 = vector.broadcast %167 : f32 to vector<8x256xf32>
    %172 = arith.mulf %171, %7 : vector<8x256xf32>
    %173 = vector.broadcast %168 : f32 to vector<8x256xf32>
    %174 = arith.mulf %173, %0 : vector<8x256xf32>
    %175 = arith.addf %172, %174 : vector<8x256xf32>
    %176 = vector.broadcast %169 : f32 to vector<8x256xf32>
    %177 = arith.mulf %176, %1 : vector<8x256xf32>
    %178 = arith.addf %175, %177 : vector<8x256xf32>
    %179 = vector.broadcast %167 : f32 to vector<8x256xf32>
    %180 = arith.mulf %179, %0 : vector<8x256xf32>
    %181 = vector.broadcast %168 : f32 to vector<8x256xf32>
    %182 = arith.mulf %181, %1 : vector<8x256xf32>
    %183 = arith.addf %180, %182 : vector<8x256xf32>
    %184 = vector.broadcast %169 : f32 to vector<8x256xf32>
    %185 = arith.mulf %184, %12 : vector<8x256xf32>
    %186 = arith.addf %183, %185 : vector<8x256xf32>
    %187 = arith.maximumf %178, %186 : vector<8x256xf32>
    %188 = vector.broadcast %170 : f32 to vector<8x256xf32>
    %189 = arith.addf %187, %188 : vector<8x256xf32>
    %cst_46 = arith.constant 0.000000e+00 : f32
    %190 = vector.broadcast %cst_46 : f32 to vector<8x256xf32>
    %191 = arith.maximumf %189, %190 : vector<8x256xf32>
    %c0_47 = arith.constant 0 : index
    %c0_48 = arith.constant 0 : index
    %192 = vector.load %arg7[%c0_47, %c0_48] : memref<8x32xf32, #tpu.memory_space<vmem>>, vector<8x32xf32>
    %c1280 = arith.constant 1280 : index
    %c0_49 = arith.constant 0 : index
    %193 = vector.load %arg4[%c1280, %c0_49] : memref<3840x32xf32, #tpu.memory_space<vmem>>, vector<256x32xf32>
    %cst_50 = arith.constant dense<0.000000e+00> : vector<8x32xf32>
    %194 = tpu.matmul %191, %193, %cst_50 {dimension_numbers = #tpu.dot_dimension_numbers<[1], [0], [0], [1], [0, 0, 1, 1], [], []>} : vector<8x256xf32>, vector<256x32xf32>, vector<8x32xf32> -> vector<8x32xf32>
    %195 = arith.addf %192, %194 : vector<8x32xf32>
    %c0_51 = arith.constant 0 : index
    %c0_52 = arith.constant 0 : index
    %196 = vector.load %arg7[%c0_51, %c0_52] : memref<8x32xf32, #tpu.memory_space<vmem>>, vector<8x32xf32>
    tpu.vector_store %arg7[%c0_51, %c0_52], %195 {strides = array<i32>} : memref<8x32xf32, #tpu.memory_space<vmem>>, vector<8x32xf32>,
    %c18 = arith.constant 18 : index
    %197 = memref.load %arg1[%c18] : memref<60xf32, #tpu.memory_space<smem>>
    %c19 = arith.constant 19 : index
    %198 = memref.load %arg1[%c19] : memref<60xf32, #tpu.memory_space<smem>>
    %c20 = arith.constant 20 : index
    %199 = memref.load %arg1[%c20] : memref<60xf32, #tpu.memory_space<smem>>
    %c51 = arith.constant 51 : index
    %200 = memref.load %arg1[%c51] : memref<60xf32, #tpu.memory_space<smem>>
    %201 = vector.broadcast %197 : f32 to vector<8x256xf32>
    %202 = arith.mulf %201, %7 : vector<8x256xf32>
    %203 = vector.broadcast %198 : f32 to vector<8x256xf32>
    %204 = arith.mulf %203, %0 : vector<8x256xf32>
    %205 = arith.addf %202, %204 : vector<8x256xf32>
    %206 = vector.broadcast %199 : f32 to vector<8x256xf32>
    %207 = arith.mulf %206, %1 : vector<8x256xf32>
    %208 = arith.addf %205, %207 : vector<8x256xf32>
    %209 = vector.broadcast %197 : f32 to vector<8x256xf32>
    %210 = arith.mulf %209, %0 : vector<8x256xf32>
    %211 = vector.broadcast %198 : f32 to vector<8x256xf32>
    %212 = arith.mulf %211, %1 : vector<8x256xf32>
    %213 = arith.addf %210, %212 : vector<8x256xf32>
    %214 = vector.broadcast %199 : f32 to vector<8x256xf32>
    %215 = arith.mulf %214, %12 : vector<8x256xf32>
    %216 = arith.addf %213, %215 : vector<8x256xf32>
    %217 = arith.maximumf %208, %216 : vector<8x256xf32>
    %218 = vector.broadcast %200 : f32 to vector<8x256xf32>
    %219 = arith.addf %217, %218 : vector<8x256xf32>
    %cst_53 = arith.constant 0.000000e+00 : f32
    %220 = vector.broadcast %cst_53 : f32 to vector<8x256xf32>
    %221 = arith.maximumf %219, %220 : vector<8x256xf32>
    %c0_54 = arith.constant 0 : index
    %c0_55 = arith.constant 0 : index
    %222 = vector.load %arg7[%c0_54, %c0_55] : memref<8x32xf32, #tpu.memory_space<vmem>>, vector<8x32xf32>
    %c1536 = arith.constant 1536 : index
    %c0_56 = arith.constant 0 : index
    %223 = vector.load %arg4[%c1536, %c0_56] : memref<3840x32xf32, #tpu.memory_space<vmem>>, vector<256x32xf32>
    %cst_57 = arith.constant dense<0.000000e+00> : vector<8x32xf32>
    %224 = tpu.matmul %221, %223, %cst_57 {dimension_numbers = #tpu.dot_dimension_numbers<[1], [0], [0], [1], [0, 0, 1, 1], [], []>} : vector<8x256xf32>, vector<256x32xf32>, vector<8x32xf32> -> vector<8x32xf32>
    %225 = arith.addf %222, %224 : vector<8x32xf32>
    %c0_58 = arith.constant 0 : index
    %c0_59 = arith.constant 0 : index
    %226 = vector.load %arg7[%c0_58, %c0_59] : memref<8x32xf32, #tpu.memory_space<vmem>>, vector<8x32xf32>
    tpu.vector_store %arg7[%c0_58, %c0_59], %225 {strides = array<i32>} : memref<8x32xf32, #tpu.memory_space<vmem>>, vector<8x32xf32>,
    %c21 = arith.constant 21 : index
    %227 = memref.load %arg1[%c21] : memref<60xf32, #tpu.memory_space<smem>>
    %c22 = arith.constant 22 : index
    %228 = memref.load %arg1[%c22] : memref<60xf32, #tpu.memory_space<smem>>
    %c23 = arith.constant 23 : index
    %229 = memref.load %arg1[%c23] : memref<60xf32, #tpu.memory_space<smem>>
    %c52 = arith.constant 52 : index
    %230 = memref.load %arg1[%c52] : memref<60xf32, #tpu.memory_space<smem>>
    %231 = vector.broadcast %227 : f32 to vector<8x256xf32>
    %232 = arith.mulf %231, %7 : vector<8x256xf32>
    %233 = vector.broadcast %228 : f32 to vector<8x256xf32>
    %234 = arith.mulf %233, %0 : vector<8x256xf32>
    %235 = arith.addf %232, %234 : vector<8x256xf32>
    %236 = vector.broadcast %229 : f32 to vector<8x256xf32>
    %237 = arith.mulf %236, %1 : vector<8x256xf32>
    %238 = arith.addf %235, %237 : vector<8x256xf32>
    %239 = vector.broadcast %227 : f32 to vector<8x256xf32>
    %240 = arith.mulf %239, %0 : vector<8x256xf32>
    %241 = vector.broadcast %228 : f32 to vector<8x256xf32>
    %242 = arith.mulf %241, %1 : vector<8x256xf32>
    %243 = arith.addf %240, %242 : vector<8x256xf32>
    %244 = vector.broadcast %229 : f32 to vector<8x256xf32>
    %245 = arith.mulf %244, %12 : vector<8x256xf32>
    %246 = arith.addf %243, %245 : vector<8x256xf32>
    %247 = arith.maximumf %238, %246 : vector<8x256xf32>
    %248 = vector.broadcast %230 : f32 to vector<8x256xf32>
    %249 = arith.addf %247, %248 : vector<8x256xf32>
    %cst_60 = arith.constant 0.000000e+00 : f32
    %250 = vector.broadcast %cst_60 : f32 to vector<8x256xf32>
    %251 = arith.maximumf %249, %250 : vector<8x256xf32>
    %c0_61 = arith.constant 0 : index
    %c0_62 = arith.constant 0 : index
    %252 = vector.load %arg7[%c0_61, %c0_62] : memref<8x32xf32, #tpu.memory_space<vmem>>, vector<8x32xf32>
    %c1792 = arith.constant 1792 : index
    %c0_63 = arith.constant 0 : index
    %253 = vector.load %arg4[%c1792, %c0_63] : memref<3840x32xf32, #tpu.memory_space<vmem>>, vector<256x32xf32>
    %cst_64 = arith.constant dense<0.000000e+00> : vector<8x32xf32>
    %254 = tpu.matmul %251, %253, %cst_64 {dimension_numbers = #tpu.dot_dimension_numbers<[1], [0], [0], [1], [0, 0, 1, 1], [], []>} : vector<8x256xf32>, vector<256x32xf32>, vector<8x32xf32> -> vector<8x32xf32>
    %255 = arith.addf %252, %254 : vector<8x32xf32>
    %c0_65 = arith.constant 0 : index
    %c0_66 = arith.constant 0 : index
    %256 = vector.load %arg7[%c0_65, %c0_66] : memref<8x32xf32, #tpu.memory_space<vmem>>, vector<8x32xf32>
    tpu.vector_store %arg7[%c0_65, %c0_66], %255 {strides = array<i32>} : memref<8x32xf32, #tpu.memory_space<vmem>>, vector<8x32xf32>,
    %c24 = arith.constant 24 : index
    %257 = memref.load %arg1[%c24] : memref<60xf32, #tpu.memory_space<smem>>
    %c25 = arith.constant 25 : index
    %258 = memref.load %arg1[%c25] : memref<60xf32, #tpu.memory_space<smem>>
    %c26 = arith.constant 26 : index
    %259 = memref.load %arg1[%c26] : memref<60xf32, #tpu.memory_space<smem>>
    %c53 = arith.constant 53 : index
    %260 = memref.load %arg1[%c53] : memref<60xf32, #tpu.memory_space<smem>>
    %261 = vector.broadcast %257 : f32 to vector<8x256xf32>
    %262 = arith.mulf %261, %7 : vector<8x256xf32>
    %263 = vector.broadcast %258 : f32 to vector<8x256xf32>
    %264 = arith.mulf %263, %0 : vector<8x256xf32>
    %265 = arith.addf %262, %264 : vector<8x256xf32>
    %266 = vector.broadcast %259 : f32 to vector<8x256xf32>
    %267 = arith.mulf %266, %1 : vector<8x256xf32>
    %268 = arith.addf %265, %267 : vector<8x256xf32>
    %269 = vector.broadcast %257 : f32 to vector<8x256xf32>
    %270 = arith.mulf %269, %0 : vector<8x256xf32>
    %271 = vector.broadcast %258 : f32 to vector<8x256xf32>
    %272 = arith.mulf %271, %1 : vector<8x256xf32>
    %273 = arith.addf %270, %272 : vector<8x256xf32>
    %274 = vector.broadcast %259 : f32 to vector<8x256xf32>
    %275 = arith.mulf %274, %12 : vector<8x256xf32>
    %276 = arith.addf %273, %275 : vector<8x256xf32>
    %277 = arith.maximumf %268, %276 : vector<8x256xf32>
    %278 = vector.broadcast %260 : f32 to vector<8x256xf32>
    %279 = arith.addf %277, %278 : vector<8x256xf32>
    %cst_67 = arith.constant 0.000000e+00 : f32
    %280 = vector.broadcast %cst_67 : f32 to vector<8x256xf32>
    %281 = arith.maximumf %279, %280 : vector<8x256xf32>
    %c0_68 = arith.constant 0 : index
    %c0_69 = arith.constant 0 : index
    %282 = vector.load %arg7[%c0_68, %c0_69] : memref<8x32xf32, #tpu.memory_space<vmem>>, vector<8x32xf32>
    %c2048 = arith.constant 2048 : index
    %c0_70 = arith.constant 0 : index
    %283 = vector.load %arg4[%c2048, %c0_70] : memref<3840x32xf32, #tpu.memory_space<vmem>>, vector<256x32xf32>
    %cst_71 = arith.constant dense<0.000000e+00> : vector<8x32xf32>
    %284 = tpu.matmul %281, %283, %cst_71 {dimension_numbers = #tpu.dot_dimension_numbers<[1], [0], [0], [1], [0, 0, 1, 1], [], []>} : vector<8x256xf32>, vector<256x32xf32>, vector<8x32xf32> -> vector<8x32xf32>
    %285 = arith.addf %282, %284 : vector<8x32xf32>
    %c0_72 = arith.constant 0 : index
    %c0_73 = arith.constant 0 : index
    %286 = vector.load %arg7[%c0_72, %c0_73] : memref<8x32xf32, #tpu.memory_space<vmem>>, vector<8x32xf32>
    tpu.vector_store %arg7[%c0_72, %c0_73], %285 {strides = array<i32>} : memref<8x32xf32, #tpu.memory_space<vmem>>, vector<8x32xf32>,
    %c27 = arith.constant 27 : index
    %287 = memref.load %arg1[%c27] : memref<60xf32, #tpu.memory_space<smem>>
    %c28 = arith.constant 28 : index
    %288 = memref.load %arg1[%c28] : memref<60xf32, #tpu.memory_space<smem>>
    %c29 = arith.constant 29 : index
    %289 = memref.load %arg1[%c29] : memref<60xf32, #tpu.memory_space<smem>>
    %c54 = arith.constant 54 : index
    %290 = memref.load %arg1[%c54] : memref<60xf32, #tpu.memory_space<smem>>
    %291 = vector.broadcast %287 : f32 to vector<8x256xf32>
    %292 = arith.mulf %291, %7 : vector<8x256xf32>
    %293 = vector.broadcast %288 : f32 to vector<8x256xf32>
    %294 = arith.mulf %293, %0 : vector<8x256xf32>
    %295 = arith.addf %292, %294 : vector<8x256xf32>
    %296 = vector.broadcast %289 : f32 to vector<8x256xf32>
    %297 = arith.mulf %296, %1 : vector<8x256xf32>
    %298 = arith.addf %295, %297 : vector<8x256xf32>
    %299 = vector.broadcast %287 : f32 to vector<8x256xf32>
    %300 = arith.mulf %299, %0 : vector<8x256xf32>
    %301 = vector.broadcast %288 : f32 to vector<8x256xf32>
    %302 = arith.mulf %301, %1 : vector<8x256xf32>
    %303 = arith.addf %300, %302 : vector<8x256xf32>
    %304 = vector.broadcast %289 : f32 to vector<8x256xf32>
    %305 = arith.mulf %304, %12 : vector<8x256xf32>
    %306 = arith.addf %303, %305 : vector<8x256xf32>
    %307 = arith.maximumf %298, %306 : vector<8x256xf32>
    %308 = vector.broadcast %290 : f32 to vector<8x256xf32>
    %309 = arith.addf %307, %308 : vector<8x256xf32>
    %cst_74 = arith.constant 0.000000e+00 : f32
    %310 = vector.broadcast %cst_74 : f32 to vector<8x256xf32>
    %311 = arith.maximumf %309, %310 : vector<8x256xf32>
    %c0_75 = arith.constant 0 : index
    %c0_76 = arith.constant 0 : index
    %312 = vector.load %arg7[%c0_75, %c0_76] : memref<8x32xf32, #tpu.memory_space<vmem>>, vector<8x32xf32>
    %c2304 = arith.constant 2304 : index
    %c0_77 = arith.constant 0 : index
    %313 = vector.load %arg4[%c2304, %c0_77] : memref<3840x32xf32, #tpu.memory_space<vmem>>, vector<256x32xf32>
    %cst_78 = arith.constant dense<0.000000e+00> : vector<8x32xf32>
    %314 = tpu.matmul %311, %313, %cst_78 {dimension_numbers = #tpu.dot_dimension_numbers<[1], [0], [0], [1], [0, 0, 1, 1], [], []>} : vector<8x256xf32>, vector<256x32xf32>, vector<8x32xf32> -> vector<8x32xf32>
    %315 = arith.addf %312, %314 : vector<8x32xf32>
    %c0_79 = arith.constant 0 : index
    %c0_80 = arith.constant 0 : index
    %316 = vector.load %arg7[%c0_79, %c0_80] : memref<8x32xf32, #tpu.memory_space<vmem>>, vector<8x32xf32>
    tpu.vector_store %arg7[%c0_79, %c0_80], %315 {strides = array<i32>} : memref<8x32xf32, #tpu.memory_space<vmem>>, vector<8x32xf32>,
    %c30 = arith.constant 30 : index
    %317 = memref.load %arg1[%c30] : memref<60xf32, #tpu.memory_space<smem>>
    %c31 = arith.constant 31 : index
    %318 = memref.load %arg1[%c31] : memref<60xf32, #tpu.memory_space<smem>>
    %c32 = arith.constant 32 : index
    %319 = memref.load %arg1[%c32] : memref<60xf32, #tpu.memory_space<smem>>
    %c55 = arith.constant 55 : index
    %320 = memref.load %arg1[%c55] : memref<60xf32, #tpu.memory_space<smem>>
    %321 = vector.broadcast %317 : f32 to vector<8x256xf32>
    %322 = arith.mulf %321, %7 : vector<8x256xf32>
    %323 = vector.broadcast %318 : f32 to vector<8x256xf32>
    %324 = arith.mulf %323, %0 : vector<8x256xf32>
    %325 = arith.addf %322, %324 : vector<8x256xf32>
    %326 = vector.broadcast %319 : f32 to vector<8x256xf32>
    %327 = arith.mulf %326, %1 : vector<8x256xf32>
    %328 = arith.addf %325, %327 : vector<8x256xf32>
    %329 = vector.broadcast %317 : f32 to vector<8x256xf32>
    %330 = arith.mulf %329, %0 : vector<8x256xf32>
    %331 = vector.broadcast %318 : f32 to vector<8x256xf32>
    %332 = arith.mulf %331, %1 : vector<8x256xf32>
    %333 = arith.addf %330, %332 : vector<8x256xf32>
    %334 = vector.broadcast %319 : f32 to vector<8x256xf32>
    %335 = arith.mulf %334, %12 : vector<8x256xf32>
    %336 = arith.addf %333, %335 : vector<8x256xf32>
    %337 = arith.maximumf %328, %336 : vector<8x256xf32>
    %338 = vector.broadcast %320 : f32 to vector<8x256xf32>
    %339 = arith.addf %337, %338 : vector<8x256xf32>
    %cst_81 = arith.constant 0.000000e+00 : f32
    %340 = vector.broadcast %cst_81 : f32 to vector<8x256xf32>
    %341 = arith.maximumf %339, %340 : vector<8x256xf32>
    %c0_82 = arith.constant 0 : index
    %c0_83 = arith.constant 0 : index
    %342 = vector.load %arg7[%c0_82, %c0_83] : memref<8x32xf32, #tpu.memory_space<vmem>>, vector<8x32xf32>
    %c2560 = arith.constant 2560 : index
    %c0_84 = arith.constant 0 : index
    %343 = vector.load %arg4[%c2560, %c0_84] : memref<3840x32xf32, #tpu.memory_space<vmem>>, vector<256x32xf32>
    %cst_85 = arith.constant dense<0.000000e+00> : vector<8x32xf32>
    %344 = tpu.matmul %341, %343, %cst_85 {dimension_numbers = #tpu.dot_dimension_numbers<[1], [0], [0], [1], [0, 0, 1, 1], [], []>} : vector<8x256xf32>, vector<256x32xf32>, vector<8x32xf32> -> vector<8x32xf32>
    %345 = arith.addf %342, %344 : vector<8x32xf32>
    %c0_86 = arith.constant 0 : index
    %c0_87 = arith.constant 0 : index
    %346 = vector.load %arg7[%c0_86, %c0_87] : memref<8x32xf32, #tpu.memory_space<vmem>>, vector<8x32xf32>
    tpu.vector_store %arg7[%c0_86, %c0_87], %345 {strides = array<i32>} : memref<8x32xf32, #tpu.memory_space<vmem>>, vector<8x32xf32>,
    %c33 = arith.constant 33 : index
    %347 = memref.load %arg1[%c33] : memref<60xf32, #tpu.memory_space<smem>>
    %c34 = arith.constant 34 : index
    %348 = memref.load %arg1[%c34] : memref<60xf32, #tpu.memory_space<smem>>
    %c35 = arith.constant 35 : index
    %349 = memref.load %arg1[%c35] : memref<60xf32, #tpu.memory_space<smem>>
    %c56 = arith.constant 56 : index
    %350 = memref.load %arg1[%c56] : memref<60xf32, #tpu.memory_space<smem>>
    %351 = vector.broadcast %347 : f32 to vector<8x256xf32>
    %352 = arith.mulf %351, %7 : vector<8x256xf32>
    %353 = vector.broadcast %348 : f32 to vector<8x256xf32>
    %354 = arith.mulf %353, %0 : vector<8x256xf32>
    %355 = arith.addf %352, %354 : vector<8x256xf32>
    %356 = vector.broadcast %349 : f32 to vector<8x256xf32>
    %357 = arith.mulf %356, %1 : vector<8x256xf32>
    %358 = arith.addf %355, %357 : vector<8x256xf32>
    %359 = vector.broadcast %347 : f32 to vector<8x256xf32>
    %360 = arith.mulf %359, %0 : vector<8x256xf32>
    %361 = vector.broadcast %348 : f32 to vector<8x256xf32>
    %362 = arith.mulf %361, %1 : vector<8x256xf32>
    %363 = arith.addf %360, %362 : vector<8x256xf32>
    %364 = vector.broadcast %349 : f32 to vector<8x256xf32>
    %365 = arith.mulf %364, %12 : vector<8x256xf32>
    %366 = arith.addf %363, %365 : vector<8x256xf32>
    %367 = arith.maximumf %358, %366 : vector<8x256xf32>
    %368 = vector.broadcast %350 : f32 to vector<8x256xf32>
    %369 = arith.addf %367, %368 : vector<8x256xf32>
    %cst_88 = arith.constant 0.000000e+00 : f32
    %370 = vector.broadcast %cst_88 : f32 to vector<8x256xf32>
    %371 = arith.maximumf %369, %370 : vector<8x256xf32>
    %c0_89 = arith.constant 0 : index
    %c0_90 = arith.constant 0 : index
    %372 = vector.load %arg7[%c0_89, %c0_90] : memref<8x32xf32, #tpu.memory_space<vmem>>, vector<8x32xf32>
    %c2816 = arith.constant 2816 : index
    %c0_91 = arith.constant 0 : index
    %373 = vector.load %arg4[%c2816, %c0_91] : memref<3840x32xf32, #tpu.memory_space<vmem>>, vector<256x32xf32>
    %cst_92 = arith.constant dense<0.000000e+00> : vector<8x32xf32>
    %374 = tpu.matmul %371, %373, %cst_92 {dimension_numbers = #tpu.dot_dimension_numbers<[1], [0], [0], [1], [0, 0, 1, 1], [], []>} : vector<8x256xf32>, vector<256x32xf32>, vector<8x32xf32> -> vector<8x32xf32>
    %375 = arith.addf %372, %374 : vector<8x32xf32>
    %c0_93 = arith.constant 0 : index
    %c0_94 = arith.constant 0 : index
    %376 = vector.load %arg7[%c0_93, %c0_94] : memref<8x32xf32, #tpu.memory_space<vmem>>, vector<8x32xf32>
    tpu.vector_store %arg7[%c0_93, %c0_94], %375 {strides = array<i32>} : memref<8x32xf32, #tpu.memory_space<vmem>>, vector<8x32xf32>,
    %c36 = arith.constant 36 : index
    %377 = memref.load %arg1[%c36] : memref<60xf32, #tpu.memory_space<smem>>
    %c37 = arith.constant 37 : index
    %378 = memref.load %arg1[%c37] : memref<60xf32, #tpu.memory_space<smem>>
    %c38 = arith.constant 38 : index
    %379 = memref.load %arg1[%c38] : memref<60xf32, #tpu.memory_space<smem>>
    %c57 = arith.constant 57 : index
    %380 = memref.load %arg1[%c57] : memref<60xf32, #tpu.memory_space<smem>>
    %381 = vector.broadcast %377 : f32 to vector<8x256xf32>
    %382 = arith.mulf %381, %7 : vector<8x256xf32>
    %383 = vector.broadcast %378 : f32 to vector<8x256xf32>
    %384 = arith.mulf %383, %0 : vector<8x256xf32>
    %385 = arith.addf %382, %384 : vector<8x256xf32>
    %386 = vector.broadcast %379 : f32 to vector<8x256xf32>
    %387 = arith.mulf %386, %1 : vector<8x256xf32>
    %388 = arith.addf %385, %387 : vector<8x256xf32>
    %389 = vector.broadcast %377 : f32 to vector<8x256xf32>
    %390 = arith.mulf %389, %0 : vector<8x256xf32>
    %391 = vector.broadcast %378 : f32 to vector<8x256xf32>
    %392 = arith.mulf %391, %1 : vector<8x256xf32>
    %393 = arith.addf %390, %392 : vector<8x256xf32>
    %394 = vector.broadcast %379 : f32 to vector<8x256xf32>
    %395 = arith.mulf %394, %12 : vector<8x256xf32>
    %396 = arith.addf %393, %395 : vector<8x256xf32>
    %397 = arith.maximumf %388, %396 : vector<8x256xf32>
    %398 = vector.broadcast %380 : f32 to vector<8x256xf32>
    %399 = arith.addf %397, %398 : vector<8x256xf32>
    %cst_95 = arith.constant 0.000000e+00 : f32
    %400 = vector.broadcast %cst_95 : f32 to vector<8x256xf32>
    %401 = arith.maximumf %399, %400 : vector<8x256xf32>
    %c0_96 = arith.constant 0 : index
    %c0_97 = arith.constant 0 : index
    %402 = vector.load %arg7[%c0_96, %c0_97] : memref<8x32xf32, #tpu.memory_space<vmem>>, vector<8x32xf32>
    %c3072 = arith.constant 3072 : index
    %c0_98 = arith.constant 0 : index
    %403 = vector.load %arg4[%c3072, %c0_98] : memref<3840x32xf32, #tpu.memory_space<vmem>>, vector<256x32xf32>
    %cst_99 = arith.constant dense<0.000000e+00> : vector<8x32xf32>
    %404 = tpu.matmul %401, %403, %cst_99 {dimension_numbers = #tpu.dot_dimension_numbers<[1], [0], [0], [1], [0, 0, 1, 1], [], []>} : vector<8x256xf32>, vector<256x32xf32>, vector<8x32xf32> -> vector<8x32xf32>
    %405 = arith.addf %402, %404 : vector<8x32xf32>
    %c0_100 = arith.constant 0 : index
    %c0_101 = arith.constant 0 : index
    %406 = vector.load %arg7[%c0_100, %c0_101] : memref<8x32xf32, #tpu.memory_space<vmem>>, vector<8x32xf32>
    tpu.vector_store %arg7[%c0_100, %c0_101], %405 {strides = array<i32>} : memref<8x32xf32, #tpu.memory_space<vmem>>, vector<8x32xf32>,
    %c39 = arith.constant 39 : index
    %407 = memref.load %arg1[%c39] : memref<60xf32, #tpu.memory_space<smem>>
    %c40 = arith.constant 40 : index
    %408 = memref.load %arg1[%c40] : memref<60xf32, #tpu.memory_space<smem>>
    %c41 = arith.constant 41 : index
    %409 = memref.load %arg1[%c41] : memref<60xf32, #tpu.memory_space<smem>>
    %c58 = arith.constant 58 : index
    %410 = memref.load %arg1[%c58] : memref<60xf32, #tpu.memory_space<smem>>
    %411 = vector.broadcast %407 : f32 to vector<8x256xf32>
    %412 = arith.mulf %411, %7 : vector<8x256xf32>
    %413 = vector.broadcast %408 : f32 to vector<8x256xf32>
    %414 = arith.mulf %413, %0 : vector<8x256xf32>
    %415 = arith.addf %412, %414 : vector<8x256xf32>
    %416 = vector.broadcast %409 : f32 to vector<8x256xf32>
    %417 = arith.mulf %416, %1 : vector<8x256xf32>
    %418 = arith.addf %415, %417 : vector<8x256xf32>
    %419 = vector.broadcast %407 : f32 to vector<8x256xf32>
    %420 = arith.mulf %419, %0 : vector<8x256xf32>
    %421 = vector.broadcast %408 : f32 to vector<8x256xf32>
    %422 = arith.mulf %421, %1 : vector<8x256xf32>
    %423 = arith.addf %420, %422 : vector<8x256xf32>
    %424 = vector.broadcast %409 : f32 to vector<8x256xf32>
    %425 = arith.mulf %424, %12 : vector<8x256xf32>
    %426 = arith.addf %423, %425 : vector<8x256xf32>
    %427 = arith.maximumf %418, %426 : vector<8x256xf32>
    %428 = vector.broadcast %410 : f32 to vector<8x256xf32>
    %429 = arith.addf %427, %428 : vector<8x256xf32>
    %cst_102 = arith.constant 0.000000e+00 : f32
    %430 = vector.broadcast %cst_102 : f32 to vector<8x256xf32>
    %431 = arith.maximumf %429, %430 : vector<8x256xf32>
    %c0_103 = arith.constant 0 : index
    %c0_104 = arith.constant 0 : index
    %432 = vector.load %arg7[%c0_103, %c0_104] : memref<8x32xf32, #tpu.memory_space<vmem>>, vector<8x32xf32>
    %c3328 = arith.constant 3328 : index
    %c0_105 = arith.constant 0 : index
    %433 = vector.load %arg4[%c3328, %c0_105] : memref<3840x32xf32, #tpu.memory_space<vmem>>, vector<256x32xf32>
    %cst_106 = arith.constant dense<0.000000e+00> : vector<8x32xf32>
    %434 = tpu.matmul %431, %433, %cst_106 {dimension_numbers = #tpu.dot_dimension_numbers<[1], [0], [0], [1], [0, 0, 1, 1], [], []>} : vector<8x256xf32>, vector<256x32xf32>, vector<8x32xf32> -> vector<8x32xf32>
    %435 = arith.addf %432, %434 : vector<8x32xf32>
    %c0_107 = arith.constant 0 : index
    %c0_108 = arith.constant 0 : index
    %436 = vector.load %arg7[%c0_107, %c0_108] : memref<8x32xf32, #tpu.memory_space<vmem>>, vector<8x32xf32>
    tpu.vector_store %arg7[%c0_107, %c0_108], %435 {strides = array<i32>} : memref<8x32xf32, #tpu.memory_space<vmem>>, vector<8x32xf32>,
    %c42 = arith.constant 42 : index
    %437 = memref.load %arg1[%c42] : memref<60xf32, #tpu.memory_space<smem>>
    %c43 = arith.constant 43 : index
    %438 = memref.load %arg1[%c43] : memref<60xf32, #tpu.memory_space<smem>>
    %c44 = arith.constant 44 : index
    %439 = memref.load %arg1[%c44] : memref<60xf32, #tpu.memory_space<smem>>
    %c59 = arith.constant 59 : index
    %440 = memref.load %arg1[%c59] : memref<60xf32, #tpu.memory_space<smem>>
    %441 = vector.broadcast %437 : f32 to vector<8x256xf32>
    %442 = arith.mulf %441, %7 : vector<8x256xf32>
    %443 = vector.broadcast %438 : f32 to vector<8x256xf32>
    %444 = arith.mulf %443, %0 : vector<8x256xf32>
    %445 = arith.addf %442, %444 : vector<8x256xf32>
    %446 = vector.broadcast %439 : f32 to vector<8x256xf32>
    %447 = arith.mulf %446, %1 : vector<8x256xf32>
    %448 = arith.addf %445, %447 : vector<8x256xf32>
    %449 = vector.broadcast %437 : f32 to vector<8x256xf32>
    %450 = arith.mulf %449, %0 : vector<8x256xf32>
    %451 = vector.broadcast %438 : f32 to vector<8x256xf32>
    %452 = arith.mulf %451, %1 : vector<8x256xf32>
    %453 = arith.addf %450, %452 : vector<8x256xf32>
    %454 = vector.broadcast %439 : f32 to vector<8x256xf32>
    %455 = arith.mulf %454, %12 : vector<8x256xf32>
    %456 = arith.addf %453, %455 : vector<8x256xf32>
    %457 = arith.maximumf %448, %456 : vector<8x256xf32>
    %458 = vector.broadcast %440 : f32 to vector<8x256xf32>
    %459 = arith.addf %457, %458 : vector<8x256xf32>
    %cst_109 = arith.constant 0.000000e+00 : f32
    %460 = vector.broadcast %cst_109 : f32 to vector<8x256xf32>
    %461 = arith.maximumf %459, %460 : vector<8x256xf32>
    %c0_110 = arith.constant 0 : index
    %c0_111 = arith.constant 0 : index
    %462 = vector.load %arg7[%c0_110, %c0_111] : memref<8x32xf32, #tpu.memory_space<vmem>>, vector<8x32xf32>
    %c3584 = arith.constant 3584 : index
    %c0_112 = arith.constant 0 : index
    %463 = vector.load %arg4[%c3584, %c0_112] : memref<3840x32xf32, #tpu.memory_space<vmem>>, vector<256x32xf32>
    %cst_113 = arith.constant dense<0.000000e+00> : vector<8x32xf32>
    %464 = tpu.matmul %461, %463, %cst_113 {dimension_numbers = #tpu.dot_dimension_numbers<[1], [0], [0], [1], [0, 0, 1, 1], [], []>} : vector<8x256xf32>, vector<256x32xf32>, vector<8x32xf32> -> vector<8x32xf32>
    %465 = arith.addf %462, %464 : vector<8x32xf32>
    %c0_114 = arith.constant 0 : index
    %c0_115 = arith.constant 0 : index
    %466 = vector.load %arg7[%c0_114, %c0_115] : memref<8x32xf32, #tpu.memory_space<vmem>>, vector<8x32xf32>
    tpu.vector_store %arg7[%c0_114, %c0_115], %465 {strides = array<i32>} : memref<8x32xf32, #tpu.memory_space<vmem>>, vector<8x32xf32>,
    %c0_116 = arith.constant 0 : index
    %c0_117 = arith.constant 0 : index
    %467 = vector.load %arg7[%c0_116, %c0_117] : memref<8x32xf32, #tpu.memory_space<vmem>>, vector<8x32xf32>
    %c0_118 = arith.constant 0 : index
    %c0_119 = arith.constant 0 : index
    %468 = vector.load %arg6[%c0_118, %c0_119] : memref<8x32xf32, #tpu.memory_space<vmem>>, vector<8x32xf32>
    tpu.vector_store %arg6[%c0_118, %c0_119], %467 {strides = array<i32>} : memref<8x32xf32, #tpu.memory_space<vmem>>, vector<8x32xf32>,
    return
  }
  func.func @transform_0(%arg0: i32) -> i32 {
    %c0_i32 = arith.constant 0 : i32
    %c0_i32_0 = arith.constant 0 : i32
    return %c0_i32 : i32
  }
  func.func @transform_1(%arg0: i32) -> (i32, i32) {
    %c0_i32 = arith.constant 0 : i32
    %c0_i32_0 = arith.constant 0 : i32
    return %arg0, %c0_i32 : i32, i32
  }
  func.func @transform_2(%arg0: i32) -> (i32, i32) {
    %c0_i32 = arith.constant 0 : i32
    %c0_i32_0 = arith.constant 0 : i32
    return %arg0, %c0_i32 : i32, i32
  }
  func.func @transform_3(%arg0: i32) -> (i32, i32) {
    %c0_i32 = arith.constant 0 : i32
    %c0_i32_0 = arith.constant 0 : i32
    %c0_i32_1 = arith.constant 0 : i32
    return %c0_i32, %c0_i32_0 : i32, i32
  }
  func.func @transform_4(%arg0: i32) -> (i32, i32) {
    %c0_i32 = arith.constant 0 : i32
    %c0_i32_0 = arith.constant 0 : i32
    %c0_i32_1 = arith.constant 0 : i32
    return %c0_i32, %c0_i32_0 : i32, i32
  }
  func.func @transform_5(%arg0: i32) -> (i32, i32) {
    %c0_i32 = arith.constant 0 : i32
    %c0_i32_0 = arith.constant 0 : i32
    return %arg0, %c0_i32 : i32, i32
  }
}

</mosaic_0001>

<bundles_post_ra>
// kernel: cnn1_forward.1
= control target key start
LH: loop header
LB: loop body
LE: loop exit
PB: predicated region body
PF: predicated region fallthrough
CT: control target
= control target key end

     0   :  { %10 = vsyncpa [#allocation4], 0  ;;  %s5432_s0 = inlined_call_operand.vmem [shape: f32[60], index: 0, kind: input, shape index: {}]   ;;  %s5433_s1 = inlined_call_operand.vmem [shape: f32[8,256], index: 1, kind: input, shape index: {}]   ;;  %s5434_s2 = inlined_call_operand.vmem [shape: f32[8,256], index: 2, kind: input, shape index: {}]   ;;  %s5435_s3 = inlined_call_operand.vmem [shape: f32[3840,32], index: 3, kind: input, shape index: {}]   ;;  %s5436_s4 = inlined_call_operand.vmem [shape: f32[1,32], index: 4, kind: input, shape index: {}]   ;;  %s5437_s5 = inlined_call_operand.vmem [shape: f32[8,32], index: 5, kind: output, shape index: {}]  }
   0x1   :  { %s17_s20 = sshll.u32 %s5432_s0, 4  ;;  %s18_s20 = int_to_ptr.vmem [resolvable:$true] %s17_s20 }
   0x2   :  { %s2755_s21 = scalar_lea.vmem %s18_s20, 16  ;;  %p2760_p1 = scmp.lt.s32.totalorder %s18_s20, %s18_s20 }
   0x3   :  { %p2756_p0 = scmp.ne.s32.totalorder %s18_s20, %s2755_s21  ;;  %p2761_p2 = scmp.lt.s32.totalorder %s2755_s21, %s2755_s21 }
   0x5   :  { %p2762_p3 = por %p2761_p2, %p2760_p1 }
   0x7   :  { %p2763_p4 = pnand %p2762_p3, %p2756_p0 }
   0x9   :  { %2766 = shalt.err (!%p2763_p4)
}
   0xa   :  { %s2769_s22 = smov [#allocation3]  }
   0xb   :  { %20 = dma.vmem_to_smem %s18_s20, 16, %s2769_s22, [#allocation4]  }
   0xc   :  { %2767 = dma.done.wait [#allocation4], 16  }
   0xd   :  { %2768 = vsyncadd [#allocation4], 4294967280 }
   0xe   :  { %32 = sfence }
   0xf   :  { %v2808_v0 = vld [vmem:[%s5434_s2] sm:$0xff]  ;;  %v2818_v2 = vld [vmem:[%s5434_s2 + $0x8] sm:$0xff]  ;;  %s2770_s28 = smov 1   ;;  %s2771_s29 = smov 127   ;;  %v137_v4 = vld [vmem:[%s5435_s3 + $0xf8] sm:$0xff]  ;;  %vm69_vm4 = vcmask 261120  }
  0x10   :  { %v2813_v1 = vld [vmem:[%s5433_s1] sm:$0xff]  ;;  %42 = vrot.lane.b32.xlu0 %v2808_v0, %s2770_s28  ;;  %v2825_v3 = vld [vmem:[%s5433_s1 + $0x8] sm:$0xff]  ;;  %s71_s9 = sld [smem:[#allocation3]]  ;;  %2223 = vmatprep.subr.mxu0 %v137_v4  ;;  %v276_v5 = vld [vmem:[%s5435_s3 + $0x1f8] sm:$0xff] }
  0x11   :  { %53 = vrot.lane.b32.xlu1 %v2813_v1, %s2771_s29  ;;  %v121_v6 = vld [vmem:[%s5435_s3 + $0x78] sm:$0xff]  ;;  %s2164_s16 = sld [smem:[#allocation3 + $0x1]]  ;;  %2258 = vmatprep.subr.mxu1 %v276_v5  ;;  %v136_v8 = vld [vmem:[%s5435_s3 + $0xf0] sm:$0xff]  ;;  %v135_v12 = vld [vmem:[%s5435_s3 + $0xe8] sm:$0xff] }
  0x12   :  { %v260_v7 = vld [vmem:[%s5435_s3 + $0x178] sm:$0xff]  ;;  %2224 = vmatpush3.msra.mxu0 %v121_v6  ;;  %v275_v9 = vld [vmem:[%s5435_s3 + $0x1f0] sm:$0xff]  ;;  %v274_v13 = vld [vmem:[%s5435_s3 + $0x1e8] sm:$0xff]  ;;  %s2878_s15 = sld [smem:[#allocation3 + $0x4]] }
  0x13   :  { %v120_v10 = vld [vmem:[%s5435_s3 + $0x70] sm:$0xff]  ;;  %2259 = vmatpush3.msra.mxu1 %v260_v7  ;;  %2225 = vmatprep.subr.mxu0 %v136_v8  ;;  %v119_v14 = vld [vmem:[%s5435_s3 + $0x68] sm:$0xff]  ;;  %v134_v16 = vld [vmem:[%s5435_s3 + $0xe0] sm:$0xff]  ;;  %s2904_s26 = sld [smem:[#allocation3 + $0x6]] }
  0x14   :  { %v259_v11 = vld [vmem:[%s5435_s3 + $0x170] sm:$0xff]  ;;  %44 = vrot.lane.b32.xlu0 %v2818_v2, %s2770_s28  ;;  %2260 = vmatprep.subr.mxu1 %v275_v9  ;;  %v258_v15 = vld [vmem:[%s5435_s3 + $0x168] sm:$0xff]  ;;  %s2868_s28 = sld [smem:[#allocation3 + $0x3]]  ;;  %v273_v17 = vld [vmem:[%s5435_s3 + $0x1e0] sm:$0xff] }
  0x15   :  { %55 = vrot.lane.b32.xlu1 %v2825_v3, %s2771_s29  ;;  %2226 = vmatpush3.msra.mxu0 %v120_v10  ;;  %v118_v18 = vld [vmem:[%s5435_s3 + $0x60] sm:$0xff]  ;;  %v133_v21 = vld [vmem:[%s5435_s3 + $0xd8] sm:$0xff]  ;;  %v132_v27 = vld [vmem:[%s5435_s3 + $0xd0] sm:$0xff]  ;;  %s2912_s8 = sld [smem:[#allocation3 + $0x7]] }
  0x16   :  { %2261 = vmatpush3.msra.mxu1 %v259_v11  ;;  %2227 = vmatprep.subr.mxu0 %v135_v12  ;;  %v2876_v19 = vstv %s71_s9  ;;  %v257_v20 = vld [vmem:[%s5435_s3 + $0x160] sm:$0xff]  ;;  %v272_v24 = vld [vmem:[%s5435_s3 + $0x1d8] sm:$0xff]  ;;  %v271_v29 = vld [vmem:[%s5435_s3 + $0x1d0] sm:$0xff]  ;;  %s2942_s21 = sld [smem:[#allocation3 + $0x9]] }
  0x17   :  { %2262 = vmatprep.subr.mxu1 %v274_v13  ;;  %2228 = vmatpush3.msra.mxu0 %v119_v14  ;;  %v2886_v22 = vstv %s2164_s16  ;;  %v89_v23 = vmul.f32 %v2876_v19, %v2825_v3  ;;  %v117_v25 = vld [vmem:[%s5435_s3 + $0x58] sm:$0xff]  ;;  %v116_v30 = vld [vmem:[%s5435_s3 + $0x50] sm:$0xff]  ;;  %v131_v32 = vld [vmem:[%s5435_s3 + $0xc8] sm:$0xff]  ;;  %s2952_s25 = sld [smem:[#allocation3 + $0xa]] }
  0x18   :  { %2263 = vmatpush3.msra.mxu1 %v258_v15  ;;  %2229 = vmatprep.subr.mxu0 %v134_v16  ;;  %v256_v26 = vld [vmem:[%s5435_s3 + $0x158] sm:$0xff]  ;;  %v91_v28 = vmul.f32 %v2886_v22, %v2818_v2  ;;  %v255_v31 = vld [vmem:[%s5435_s3 + $0x150] sm:$0xff]  ;;  %v270_v35 = vld [vmem:[%s5435_s3 + $0x1c8] sm:$0xff]  ;;  %v2932_v37 = vstv %s2878_s15  ;;  %s2982_s14 = sld [smem:[#allocation3 + $0xc]] }
  0x19   :  { %2264 = vmatprep.subr.mxu1 %v273_v17  ;;  %2230 = vmatpush3.msra.mxu0 %v118_v18  ;;  %v115_v36 = vld [vmem:[%s5435_s3 + $0x48] sm:$0xff]  ;;  %v130_v40 = vld [vmem:[%s5435_s3 + $0xc0] sm:$0xff]  ;;  %v230_v43 = vmul.f32 %v2932_v37, %v2818_v2  ;;  %v129_v45 = vld [vmem:[%s5435_s3 + $0xb8] sm:$0xff]  ;;  %v2961_v46 = vstv %s2904_s26  ;;  %s2992_s19 = sld [smem:[#allocation3 + $0xd]] }
  0x1a   :  { %2265 = vmatpush3.msra.mxu1 %v257_v20  ;;  %2231 = vmatprep.subr.mxu0 %v133_v21  ;;  %v2920_v33 = vadd.f32 %v91_v28, %v89_v23  ;;  %v2923_v34 = vstv %s2868_s28  ;;  %v254_v39 = vld [vmem:[%s5435_s3 + $0x148] sm:$0xff]  ;;  %v269_v41 = vld [vmem:[%s5435_s3 + $0x1c0] sm:$0xff]  ;;  %v268_v47 = vld [vmem:[%s5435_s3 + $0x1b8] sm:$0xff]  ;;  %v367_v51 = vmul.f32 %v2961_v46, %v2825_v3  ;;  %s3022_s7 = sld [smem:[#allocation3 + $0xf]] }
  0x1b   :  { %2266 = vmatprep.subr.mxu1 %v272_v24  ;;  %2232 = vmatpush3.msra.mxu0 %v117_v25  ;;  %v228_v38 = vmul.f32 %v2923_v34, %v2825_v3  ;;  %v114_v42 = vld [vmem:[%s5435_s3 + $0x40] sm:$0xff]  ;;  %v113_v48 = vld [vmem:[%s5435_s3 + $0x38] sm:$0xff]  ;;  %v2972_v50 = vstv %s2912_s8  ;;  %v128_v53 = vld [vmem:[%s5435_s3 + $0xb0] sm:$0xff]  ;;  %s3032_s29 = sld [smem:[#allocation3 + $0x10]] }
  0x1c   :  { %2267 = vmatpush3.msra.mxu1 %v256_v26  ;;  %2233 = vmatprep.subr.mxu0 %v132_v27  ;;  %v253_v44 = vld [vmem:[%s5435_s3 + $0x140] sm:$0xff]  ;;  %v252_v52 = vld [vmem:[%s5435_s3 + $0x138] sm:$0xff]  ;;  %v267_v54 = vld [vmem:[%s5435_s3 + $0x1b0] sm:$0xff]  ;;  %v369_v56 = vmul.f32 %v2972_v50, %v2818_v2  ;;  %v3001_v59 = vstv %s2942_s21  ;;  %s3062_s24 = sld [smem:[#allocation3 + $0x12]] }
  0x1d   :  { %2268 = vmatprep.subr.mxu1 %v271_v29  ;;  %2234 = vmatpush3.msra.mxu0 %v116_v30  ;;  %v2969_v49 = vadd.f32 %v230_v43, %v228_v38  ;;  %v112_v55 = vld [vmem:[%s5435_s3 + $0x30] sm:$0xff]  ;;  %v127_v58 = vld [vmem:[%s5435_s3 + $0xa8] sm:$0xff]  ;;  %v3012_v63 = vstv %s2952_s25  ;;  %v506_v4 = vmul.f32 %v3001_v59, %v2825_v3  ;;  %v126_v6 = vld [vmem:[%s5435_s3 + $0xa0] sm:$0xff]  ;;  %s3072_s27 = sld [smem:[#allocation3 + $0x13]] }
  0x1e   :  { %2269 = vmatpush3.msra.mxu1 %v255_v31  ;;  %2235 = vmatprep.subr.mxu0 %v131_v32  ;;  %v251_v57 = vld [vmem:[%s5435_s3 + $0x130] sm:$0xff]  ;;  %v266_v60 = vld [vmem:[%s5435_s3 + $0x1a8] sm:$0xff]  ;;  %v3009_v62 = vadd.f32 %v369_v56, %v367_v51  ;;  %v265_v7 = vld [vmem:[%s5435_s3 + $0x1a0] sm:$0xff]  ;;  %v508_v9 = vmul.f32 %v3012_v63, %v2818_v2  ;;  %v3041_v12 = vstv %s2982_s14  ;;  %s2191_s28 = sld [smem:[#allocation3 + $0x15]] }
  0x1f   :  { %2270 = vmatprep.subr.mxu1 %v270_v35  ;;  %2236 = vmatpush3.msra.mxu0 %v115_v36  ;;  %v111_v61 = vld [vmem:[%s5435_s3 + $0x28] sm:$0xff]  ;;  %v110_v8 = vld [vmem:[%s5435_s3 + $0x20] sm:$0xff]  ;;  %v125_v11 = vld [vmem:[%s5435_s3 + $0x98] sm:$0xff]  ;;  %v3052_v16 = vstv %s2992_s19  ;;  %v645_v17 = vmul.f32 %v3041_v12, %v2825_v3  ;;  %s2192_s15 = sld [smem:[#allocation3 + $0x16]] }
  0x20   :  { %2271 = vmatpush3.msra.mxu1 %v254_v39  ;;  %2237 = vmatprep.subr.mxu0 %v130_v40  ;;  %v250_v5 = vld [vmem:[%s5435_s3 + $0x128] sm:$0xff]  ;;  %v249_v10 = vld [vmem:[%s5435_s3 + $0x120] sm:$0xff]  ;;  %v264_v13 = vld [vmem:[%s5435_s3 + $0x198] sm:$0xff]  ;;  %v3049_v15 = vadd.f32 %v508_v9, %v506_v4  ;;  %v647_v24 = vmul.f32 %v3052_v16, %v2818_v2  ;;  %v3081_v27 = vstv %s3022_s7  ;;  %s2195_s30 = sld [smem:[#allocation3 + $0x18]] }
  0x21   :  { %2272 = vmatprep.subr.mxu1 %v269_v41  ;;  %2238 = vmatpush3.msra.mxu0 %v114_v42  ;;  %v109_v14 = vld [vmem:[%s5435_s3 + $0x18] sm:$0xff]  ;;  %v124_v20 = vld [vmem:[%s5435_s3 + $0x90] sm:$0xff]  ;;  %v123_v26 = vld [vmem:[%s5435_s3 + $0x88] sm:$0xff]  ;;  %5467 = vst [vmem:[#allocation6_spill] sm:$0xff] %v3081_v27  ;;  %v3092_v31 = vstv %s3032_s29  ;;  %v784_v32 = vmul.f32 %v3081_v27, %v2825_v3  ;;  %s2200_s6 = sld [smem:[#allocation3 + $0x1c]] }
  0x22   :  { %2273 = vmatpush3.msra.mxu1 %v253_v44  ;;  %2239 = vmatprep.subr.mxu0 %v129_v45  ;;  %v248_v18 = vld [vmem:[%s5435_s3 + $0x118] sm:$0xff]  ;;  %v263_v21 = vld [vmem:[%s5435_s3 + $0x190] sm:$0xff]  ;;  %v262_v28 = vld [vmem:[%s5435_s3 + $0x188] sm:$0xff]  ;;  %v3089_v30 = vadd.f32 %v647_v24, %v645_v17  ;;  %v786_v40 = vmul.f32 %v3092_v31, %v2818_v2  ;;  %v3117_v43 = vstv %s3062_s24  ;;  %s2196_s24 = sld [smem:[#allocation3 + $0x19]] }
  0x23   :  { %2274 = vmatprep.subr.mxu1 %v268_v47  ;;  %2240 = vmatpush3.msra.mxu0 %v113_v48  ;;  %v108_v23 = vld [vmem:[%s5435_s3 + $0x10] sm:$0xff]  ;;  %v107_v29 = vld [vmem:[%s5435_s3 + $0x8] sm:$0xff]  ;;  %v122_v36 = vld [vmem:[%s5435_s3 + $0x80] sm:$0xff]  ;;  %5469 = vst [vmem:[#allocation8_spill] sm:$0xff] %v3117_v43  ;;  %v3125_v47 = vstv %s3072_s27  ;;  %v923_v48 = vmul.f32 %v3117_v43, %v2825_v3  ;;  %s2199_s27 = sld [smem:[#allocation3 + $0x1b]] }
  0x24   :  { %2275 = vmatpush3.msra.mxu1 %v252_v52  ;;  %2241 = vmatprep.subr.mxu0 %v128_v53  ;;  %v247_v25 = vld [vmem:[%s5435_s3 + $0x110] sm:$0xff]  ;;  %5468 = vst [vmem:[#allocation7_spill] sm:$0xff] %v3089_v30  ;;  %v246_v35 = vld [vmem:[%s5435_s3 + $0x108] sm:$0xff]  ;;  %v261_v38 = vld [vmem:[%s5435_s3 + $0x180] sm:$0xff]  ;;  %v3122_v45 = vadd.f32 %v786_v40, %v784_v32  ;;  %v925_v51 = vmul.f32 %v3125_v47, %v2818_v2  ;;  %v3131_v52 = vstv %s2191_s28  ;;  %s2203_s25 = sld [smem:[#allocation3 + $0x1e]] }
  0x25   :  { %2276 = vmatprep.subr.mxu1 %v267_v54  ;;  %2242 = vmatpush3.msra.mxu0 %v112_v55  ;;  %v106_v39 = vld [vmem:[%s5435_s3] sm:$0xff]  ;;  %v415_v42 = vld [vmem:[%s5435_s3 + $0x2f8] sm:$0xff]  ;;  %5471 = vst [vmem:[#allocation10_spill] sm:$0xff] %v3131_v52  ;;  %v3135_v54 = vstv %s2192_s15  ;;  %v1062_v55 = vmul.f32 %v3131_v52, %v2825_v3  ;;  %s2204_s10 = sld [smem:[#allocation3 + $0x1f]] }
  0x26   :  { %2277 = vmatpush3.msra.mxu1 %v251_v57  ;;  %2243 = vmatprep.subr.mxu0 %v127_v58  ;;  %v245_v41 = vld [vmem:[%s5435_s3 + $0x100] sm:$0xff]  ;;  %v554_v44 = vld [vmem:[%s5435_s3 + $0x3f8] sm:$0xff]  ;;  %5470 = vst [vmem:[#allocation9_spill] sm:$0xff] %v3122_v45  ;;  %v3133_v53 = vadd.f32 %v925_v51, %v923_v48  ;;  %v1064_v56 = vmul.f32 %v3135_v54, %v2818_v2  ;;  %v3141_v57 = vstv %s2195_s30  ;;  %s2207_s11 = sld [smem:[#allocation3 + $0x21]] }
  0x27   :  { %2278 = vmatprep.subr.mxu1 %v266_v60  ;;  %2244 = vmatpush3.msra.mxu0 %v111_v61  ;;  %5473 = vst [vmem:[#allocation12_spill] sm:$0xff] %v3141_v57  ;;  %v1201_v61 = vmul.f32 %v3141_v57, %v2825_v3  ;;  %s2208_s26 = sld [smem:[#allocation3 + $0x22]]  ;;  %v3326_v45 = vmul.f32 %v3012_v63, %v2825_v3 }
  0x28   :  { %2279 = vmatpush3.msra.mxu1 %v250_v5  ;;  %2245 = vmatprep.subr.mxu0 %v126_v6  ;;  %5472 = vst [vmem:[#allocation11_spill] sm:$0xff] %v3133_v53  ;;  %v3143_v58 = vadd.f32 %v1064_v56, %v1062_v55  ;;  %v3145_v60 = vstv %s2196_s24  ;;  %s2211_s12 = sld [smem:[#allocation3 + $0x24]]  ;;  %v37_v56 = vlaneseq }
  0x29   :  { %2280 = vmatprep.subr.mxu1 %v265_v7  ;;  %2246 = vmatpush3.msra.mxu0 %v110_v8  ;;  %v1203_v4 = vmul.f32 %v3145_v60, %v2818_v2  ;;  %v3151_v5 = vstv %s2199_s27  ;;  %v3155_v7 = vstv %s2200_s6  ;;  %s2212_s13 = sld [smem:[#allocation3 + $0x25]] }
  0x2a   :  { %2281 = vmatpush3.msra.mxu1 %v249_v10  ;;  %2247 = vmatprep.subr.mxu0 %v125_v11  ;;  %5474 = vst [vmem:[#allocation13_spill] sm:$0xff] %v3143_v58  ;;  %5475 = vst [vmem:[#allocation14_spill] sm:$0xff] %v3151_v5  ;;  %v1340_v8 = vmul.f32 %v3151_v5, %v2825_v3  ;;  %v1342_v9 = vmul.f32 %v3155_v7, %v2818_v2  ;;  %v3161_v10 = vstv %s2203_s25  ;;  %s2215_s7 = sld [smem:[#allocation3 + $0x27]] }
  0x2b   :  { %2282 = vmatprep.subr.mxu1 %v264_v13  ;;  %2248 = vmatpush3.msra.mxu0 %v109_v14  ;;  %v3153_v6 = vadd.f32 %v1203_v4, %v1201_v61  ;;  %5477 = vst [vmem:[#allocation16_spill] sm:$0xff] %v3161_v10  ;;  %v3165_v13 = vstv %s2204_s10  ;;  %v1479_v14 = vmul.f32 %v3161_v10, %v2825_v3  ;;  %s2216_s8 = sld [smem:[#allocation3 + $0x28]]  ;;  %v3215_v61 = vand.u32 127, %v37_v56 }
  0x2c   :  { %2283 = vmatpush3.msra.mxu1 %v248_v18  ;;  %2249 = vmatprep.subr.mxu0 %v124_v20  ;;  %v3163_v11 = vadd.f32 %v1342_v9, %v1340_v8  ;;  %v1481_v17 = vmul.f32 %v3165_v13, %v2818_v2  ;;  %v3171_v18 = vstv %s2207_s11  ;;  %s2219_s17 = sld [smem:[#allocation3 + $0x2a]]  ;;  %v88_v4 = vmul.f32 %v2876_v19, %v2813_v1 }
  0x2d   :  { %2284 = vmatprep.subr.mxu1 %v263_v21  ;;  %2250 = vmatpush3.msra.mxu0 %v108_v23  ;;  %5476 = vst [vmem:[#allocation15_spill] sm:$0xff] %v3153_v6  ;;  %5479 = vst [vmem:[#allocation18_spill] sm:$0xff] %v3171_v18  ;;  %v3175_v21 = vstv %s2208_s26  ;;  %v1618_v23 = vmul.f32 %v3171_v18, %v2825_v3  ;;  %s2220_s18 = sld [smem:[#allocation3 + $0x2b]]  ;;  %v90_v8 = vmul.f32 %v2886_v22, %v2808_v0 }
  0x2e   :  { %2285 = vmatpush3.msra.mxu1 %v247_v25  ;;  %2251 = vmatprep.subr.mxu0 %v123_v26  ;;  %5478 = vst [vmem:[#allocation17_spill] sm:$0xff] %v3163_v11  ;;  %v3173_v20 = vadd.f32 %v1481_v17, %v1479_v14  ;;  %v1620_v24 = vmul.f32 %v3175_v21, %v2818_v2  ;;  %v3181_v25 = vstv %s2211_s12  ;;  %s2165_s28 = sld [smem:[#allocation3 + $0x2]]  ;;  %v3228_v9 = vadd.s32 128, %v3215_v61 }
  0x2f   :  { %2286 = vmatprep.subr.mxu1 %v262_v28  ;;  %2252 = vmatpush3.msra.mxu0 %v107_v29  ;;  %5481 = vst [vmem:[#allocation20_spill] sm:$0xff] %v3181_v25  ;;  %v3185_v28 = vstv %s2212_s13  ;;  %v1757_v29 = vmul.f32 %v3181_v25, %v2825_v3  ;;  %s3213_s29 = sld [smem:[#allocation3 + $0x2d]]  ;;  %v3232_v14 = vmul.f32 %v2886_v22, %v2813_v1  ;;  %vm46_vm0 = vcmp.lt.s32.totalorder %v3215_v61, 1 }
  0x30   :  { %2287 = vmatpush3.msra.mxu1 %v246_v35  ;;  %2253 = vmatprep.subr.mxu0 %v122_v36  ;;  %5480 = vst [vmem:[#allocation19_spill] sm:$0xff] %v3173_v20  ;;  %v3183_v26 = vadd.f32 %v1620_v24, %v1618_v23  ;;  %v1759_v32 = vmul.f32 %v3185_v28, %v2818_v2  ;;  %v3191_v35 = vstv %s2215_s7  ;;  %s2169_s20 = sld [smem:[#allocation3 + $0x5]]  ;;  %vm57_vm1 = vcmp.lt.s32.totalorder %v3215_v61, 127 }
  0x31   :  { %2288 = vmatprep.subr.mxu1 %v261_v38  ;;  %2254 = vmatpush3.msra.mxu0 %v106_v39  ;;  %v3195_v38 = vstv %s2216_s8  ;;  %v1896_v39 = vmul.f32 %v3191_v35, %v2825_v3  ;;  %s3217_s9 = sld [smem:[#allocation3 + $0x2e]]  ;;  %v3236_v17 = vmul.f32 %v2886_v22, %v2825_v3  ;;  %v3254_v22 = vadd.f32 %v90_v8, %v88_v4 }
  0x32   :  { %2289 = vmatpush3.msra.mxu1 %v245_v41  ;;  %2293 = vmatprep.subr.mxu0 %v415_v42  ;;  %5482 = vst [vmem:[#allocation21_spill] sm:$0xff] %v3183_v26  ;;  %v3193_v36 = vadd.f32 %v1759_v32, %v1757_v29  ;;  %v1898_v40 = vmul.f32 %v3195_v38, %v2818_v2  ;;  %v3201_v41 = vstv %s2219_s17  ;;  %s2173_s14 = sld [smem:[#allocation3 + $0x8]]  ;;  %vm40_vm2 = vcmp.eq.s32.totalorder %v3215_v61, 0 }
  0x33   :  { %2328 = vmatprep.subr.mxu1 %v554_v44  ;;  %5484 = vst [vmem:[#allocation23_spill] sm:$0xff] %v3201_v41  ;;  %v3205_v44 = vstv %s2220_s18  ;;  %v2035_v48 = vmul.f32 %v3201_v41, %v2825_v3  ;;  %s3223_s15 = sld [smem:[#allocation3 + $0x2f]]  ;;  %v227_v32 = vmul.f32 %v2923_v34, %v2813_v1  ;;  %v3265_v56 = vmul.f32 %v2932_v37, %v2825_v3 }
  0x34   :  { %5483 = vst [vmem:[#allocation22_spill] sm:$0xff] %v3193_v36  ;;  %v3203_v42 = vadd.f32 %v1898_v40, %v1896_v39  ;;  %5486 = vst [vmem:[#allocation25_spill] sm:$0xff] %v3205_v44  ;;  %v2037_v51 = vmul.f32 %v3205_v44, %v2818_v2  ;;  %s3225_s22 = sld [smem:[#allocation3 + $0xb]]  ;;  %v3238_v23 = vstv %s2165_s28  ;;  %v229_v39 = vmul.f32 %v2932_v37, %v2808_v0 }
  0x35   :  { %v3242_v24 = vmul.f32 %v3238_v23, %v2808_v0  ;;  %v3246_v29 = vmul.f32 %v3238_v23, %v2818_v2  ;;  %s3252_s23 = sld [smem:[#allocation3 + $0xe]]  ;;  %v368_v4 = vmul.f32 %v2972_v50, %v2808_v0  ;;  %v505_v40 = vmul.f32 %v3001_v59, %v2813_v1 }
  0x36   :  { %5485 = vst [vmem:[#allocation24_spill] sm:$0xff] %v3203_v42  ;;  %v3211_v55 = vadd.f32 %v2037_v51, %v2035_v48  ;;  %v3259_v48 = vmul.f32 %v2932_v37, %v2813_v1  ;;  %v3261_v51 = vstv %s2169_s20  ;;  %v366_v42 = vmul.f32 %v2961_v46, %v2813_v1  ;;  %s3275_s19 = sld [smem:[#allocation3 + $0x11]] }
  0x37   :  { %v3279_v8 = vmul.f32 %v3261_v51, %v2818_v2  ;;  %v507_v36 = vmul.f32 %v3012_v63, %v2808_v0  ;;  %v3286_v44 = vadd.f32 %v229_v39, %v227_v32  ;;  %v3290_v41 = vmul.f32 %v2972_v50, %v2813_v1  ;;  %s3298_s16 = sld [smem:[#allocation3 + $0x14]] }
  0x38   :  { %5487 = vst [vmem:[#allocation26_spill] sm:$0xff] %v3211_v55  ;;  %v3269_v55 = vmul.f32 %v3261_v51, %v2808_v0  ;;  %v3294_v26 = vmul.f32 %v2972_v50, %v2825_v3  ;;  %v3296_v20 = vstv %s2173_s14  ;;  %v644_v39 = vmul.f32 %v3041_v12, %v2813_v1  ;;  %s3322_s0 = sld [smem:[#allocation3 + $0x17]] }
  0x39   :  { %v3302_v37 = vmul.f32 %v3296_v20, %v2808_v0  ;;  %v3306_v32 = vmul.f32 %v3296_v20, %v2818_v2  ;;  %v646_v50 = vmul.f32 %v3052_v16, %v2808_v0  ;;  %v3312_v11 = vadd.f32 %v368_v4, %v366_v42  ;;  %s3349_s21 = sld [smem:[#allocation3 + $0x1a]] }
  0x3a   :  { %v3317_v58 = vmul.f32 %v3012_v63, %v2813_v1  ;;  %v3320_v53 = vstv %s3225_s22  ;;  %v3336_v4 = vadd.f32 %v507_v36, %v505_v40  ;;  %v3340_v6 = vmul.f32 %v3052_v16, %v2813_v1  ;;  %s3376_s30 = sld [smem:[#allocation3 + $0x1d]] }
  0x3b   :  { %5488 = vst [vmem:[#allocation27_spill] sm:$0xff] %v3302_v37  ;;  %5489 = vst [vmem:[#allocation28_spill] sm:$0xff] %v3312_v11  ;;  %v3330_v30 = vmul.f32 %v3320_v53, %v2808_v0  ;;  %v3334_v42 = vmul.f32 %v3320_v53, %v2818_v2  ;;  %v783_v63 = vmul.f32 %v3081_v27, %v2813_v1  ;;  %s3403_s24 = sld [smem:[#allocation3 + $0x20]]  ;;  %vm52_vm3 = vcmp.eq.s32.totalorder %v3228_v9, 255 }
  0x3c   :  { %5490 = vst [vmem:[#allocation29_spill] sm:$0xff] %v3317_v58  ;;  %5492 = vst [vmem:[#allocation31_spill] sm:$0xff] %v3336_v4  ;;  %v3343_v58 = vstv %s3252_s23  ;;  %v785_v11 = vmul.f32 %v3092_v31, %v2808_v0  ;;  %v3363_v4 = vadd.f32 %v646_v50, %v644_v39  ;;  %v3367_v27 = vmul.f32 %v3092_v31, %v2813_v1  ;;  %s3419_s27 = sld [smem:[#allocation3 + $0x23]] }
  0x3d   :  { %5491 = vst [vmem:[#allocation30_spill] sm:$0xff] %v3330_v30  ;;  %v3353_v30 = vmul.f32 %v3052_v16, %v2825_v3  ;;  %v3357_v36 = vmul.f32 %v3343_v58, %v2808_v0  ;;  %v3361_v40 = vmul.f32 %v3343_v58, %v2818_v2  ;;  %v3370_v37 = vstv %s3275_s19  ;;  %s3546_s6 = sld [smem:[#allocation3 + $0x26]] }
  0x3e   :  { %5496 = vst [vmem:[#allocation35_spill] sm:$0xff] %v3367_v27  ;;  %v922_v16 = vmul.f32 %v3117_v43, %v2813_v1  ;;  %v3384_v39 = vmul.f32 %v3370_v37, %v2808_v0  ;;  %v1061_v50 = vmul.f32 %v3131_v52, %v2813_v1  ;;  %v1063_v27 = vmul.f32 %v3135_v54, %v2808_v0  ;;  %s3621_s25 = sld [smem:[#allocation3 + $0x30]] }
  0x3f   :  { %5493 = vst [vmem:[#allocation32_spill] sm:$0xff] %v3353_v30  ;;  %5494 = vst [vmem:[#allocation33_spill] sm:$0xff] %v3357_v36  ;;  %v924_v30 = vmul.f32 %v3125_v47, %v2808_v0  ;;  %v3380_v36 = vmul.f32 %v3092_v31, %v2825_v3  ;;  %v3392_v43 = vmul.f32 %v3370_v37, %v2818_v2  ;;  %s3872_s26 = sld [smem:[#allocation3 + $0x31]] }
  0x40   :  { %5495 = vst [vmem:[#allocation34_spill] sm:$0xff] %v3361_v40  ;;  %v3394_v40 = vadd.f32 %v785_v11, %v783_v63  ;;  %v3398_v31 = vmul.f32 %v3125_v47, %v2813_v1  ;;  %v3409_v52 = vmul.f32 %v3125_v47, %v2825_v3  ;;  %v1200_v63 = vmul.f32 %v3141_v57, %v2813_v1  ;;  %s3888_s17 = sld [smem:[#allocation3 + $0x32]] }
  0x41   :  { %5497 = vst [vmem:[#allocation36_spill] sm:$0xff] %v3380_v36  ;;  %5498 = vst [vmem:[#allocation37_spill] sm:$0xff] %v3392_v43  ;;  %v3401_v36 = vstv %s3298_s16  ;;  %v3434_v57 = vstv %s3322_s0  ;;  %v3438_v43 = vmul.f32 %v3135_v54, %v2825_v3  ;;  %s3941_s10 = sld [smem:[#allocation3 + $0x29]] }
  0x42   :  { %5499 = vst [vmem:[#allocation38_spill] sm:$0xff] %v3394_v40  ;;  %5500 = vst [vmem:[#allocation39_spill] sm:$0xff] %v3398_v31  ;;  %v3413_v11 = vmul.f32 %v3401_v36, %v2808_v0  ;;  %v1202_v31 = vmul.f32 %v3145_v60, %v2808_v0  ;;  %v3425_v47 = vmul.f32 %v3401_v36, %v2818_v2  ;;  %s4159_s14 = sld [smem:[#allocation3 + $0x2c]] }
  0x43   :  { %5501 = vst [vmem:[#allocation40_spill] sm:$0xff] %v3409_v52  ;;  %v3427_v52 = vadd.f32 %v924_v30, %v922_v16  ;;  %5505 = vst [vmem:[#allocation44_spill] sm:$0xff] %v3438_v43  ;;  %v3442_v40 = vmul.f32 %v3434_v57, %v2808_v0  ;;  %v3448_v30 = vadd.f32 %v1063_v27, %v1061_v50  ;;  %s4342_s12 = sld [smem:[#allocation3 + $0x33]] }
  0x44   :  { %5502 = vst [vmem:[#allocation41_spill] sm:$0xff] %v3413_v11  ;;  %5503 = vst [vmem:[#allocation42_spill] sm:$0xff] %v3425_v47  ;;  %v3431_v11 = vmul.f32 %v3135_v54, %v2813_v1  ;;  %v3446_v47 = vmul.f32 %v3434_v57, %v2818_v2  ;;  %v3452_v16 = vmul.f32 %v3145_v60, %v2813_v1  ;;  %s4354_s18 = sld [smem:[#allocation3 + $0x34]] }
  0x45   :  { %5506 = vst [vmem:[#allocation45_spill] sm:$0xff] %v3442_v40  ;;  %5508 = vst [vmem:[#allocation47_spill] sm:$0xff] %v3448_v30  ;;  %v1339_v54 = vmul.f32 %v3151_v5, %v2813_v1  ;;  %v1341_v43 = vmul.f32 %v3155_v7, %v2808_v0  ;;  %v3463_v40 = vmul.f32 %v3145_v60, %v2825_v3  ;;  %s4577_s13 = sld [smem:[#allocation3 + $0x35]] }
  0x46   :  { %5504 = vst [vmem:[#allocation43_spill] sm:$0xff] %v3431_v11  ;;  %5507 = vst [vmem:[#allocation46_spill] sm:$0xff] %v3446_v47  ;;  %v3455_v11 = vstv %s3349_s21  ;;  %v3477_v5 = vmul.f32 %v3155_v7, %v2813_v1  ;;  %v3480_v47 = vstv %s3376_s30  ;;  %v1478_v60 = vmul.f32 %v3161_v10, %v2813_v1  ;;  %s5013_s21 = sld [smem:[#allocation3 + $0x39]] }
  0x47   :  { %5509 = vst [vmem:[#allocation48_spill] sm:$0xff] %v3452_v16  ;;  %5510 = vst [vmem:[#allocation49_spill] sm:$0xff] %v3463_v40  ;;  %v3467_v27 = vmul.f32 %v3455_v11, %v2808_v0  ;;  %v3471_v50 = vmul.f32 %v3455_v11, %v2818_v2  ;;  %v3473_v16 = vadd.f32 %v1202_v31, %v1200_v63 }
  0x48   :  { %5514 = vst [vmem:[#allocation53_spill] sm:$0xff] %v3477_v5  ;;  %5515 = vst [vmem:[#allocation54_spill] sm:$0xff] %v3480_v47  ;;  %v3492_v31 = vmul.f32 %v3480_v47, %v2808_v0  ;;  %v1617_v63 = vmul.f32 %v3171_v18, %v2813_v1  ;;  %v1619_v5 = vmul.f32 %v3175_v21, %v2808_v0 }
  0x49   :  { %5511 = vst [vmem:[#allocation50_spill] sm:$0xff] %v3467_v27  ;;  %5512 = vst [vmem:[#allocation51_spill] sm:$0xff] %v3471_v50  ;;  %v1480_v27 = vmul.f32 %v3165_v13, %v2808_v0  ;;  %v3488_v50 = vmul.f32 %v3155_v7, %v2825_v3  ;;  %v3500_v10 = vmul.f32 %v3480_v47, %v2818_v2 }
  0x4a   :  { %5513 = vst [vmem:[#allocation52_spill] sm:$0xff] %v3473_v16  ;;  %5517 = vst [vmem:[#allocation56_spill] sm:$0xff] %v3492_v31  ;;  %v3502_v16 = vadd.f32 %v1341_v43, %v1339_v54  ;;  %v3506_v7 = vmul.f32 %v3165_v13, %v2813_v1  ;;  %v3513_v31 = vmul.f32 %v3165_v13, %v2825_v3  ;;  %v3524_v43 = vstv %s3419_s27  ;;  %s4795_s27 = sld [smem:[#allocation3 + $0x37]] }
  0x4b   :  { %5516 = vst [vmem:[#allocation55_spill] sm:$0xff] %v3488_v50  ;;  %5518 = vst [vmem:[#allocation57_spill] sm:$0xff] %v3500_v10  ;;  %v3509_v50 = vstv %s3403_s24  ;;  %v3526_v54 = vadd.f32 %v1480_v27, %v1478_v60  ;;  %v3534_v13 = vmul.f32 %v3175_v21, %v2825_v3  ;;  %v3544_v27 = vadd.f32 %v1619_v5, %v1617_v63 }
  0x4c   :  { %5519 = vst [vmem:[#allocation58_spill] sm:$0xff] %v3506_v7  ;;  %5520 = vst [vmem:[#allocation59_spill] sm:$0xff] %v3513_v31  ;;  %v3517_v18 = vmul.f32 %v3509_v50, %v2808_v0  ;;  %v3521_v47 = vmul.f32 %v3509_v50, %v2818_v2  ;;  %v3530_v7 = vmul.f32 %v3175_v21, %v2813_v1 }
  0x4d   :  { %5523 = vst [vmem:[#allocation62_spill] sm:$0xff] %v3524_v43  ;;  %5524 = vst [vmem:[#allocation63_spill] sm:$0xff] %v3526_v54  ;;  %v3538_v31 = vmul.f32 %v3524_v43, %v2808_v0  ;;  %v3550_v60 = vmul.f32 %v3185_v28, %v2813_v1  ;;  %v1756_v21 = vmul.f32 %v3181_v25, %v2813_v1 }
  0x4e   :  { %5521 = vst [vmem:[#allocation60_spill] sm:$0xff] %v3517_v18  ;;  %5522 = vst [vmem:[#allocation61_spill] sm:$0xff] %v3521_v47  ;;  %v3542_v47 = vmul.f32 %v3524_v43, %v2818_v2 }
  0x4f   :  { %5525 = vst [vmem:[#allocation64_spill] sm:$0xff] %v3530_v7  ;;  %5526 = vst [vmem:[#allocation65_spill] sm:$0xff] %v3534_v13 }
  0x50   :  { %5527 = vst [vmem:[#allocation66_spill] sm:$0xff] %v3538_v31  ;;  %5528 = vst [vmem:[#allocation67_spill] sm:$0xff] %v3542_v47 }
  0x51   :  { %5529 = vst [vmem:[#allocation68_spill] sm:$0xff] %v3544_v27  ;;  %5530 = vst [vmem:[#allocation69_spill] sm:$0xff] %v3550_v60 }
  0x82   :  { %v43_v40 = vpop.permute.xlu0 %42 }
  0x83   :  { %v54_v30 = vpop.permute.xlu1 %53 }
  0x86   :  { %v45_v18 = vpop.permute.xlu0 %44 }
  0x87   :  { %v56_v10 = vpop.permute.xlu1 %55  ;;  %v3556_v31 = vsel %vm46_vm0, %v43_v40, %v45_v18  ;;  %v48_v13 = vsel %vm46_vm0, %v45_v18, %v43_v40 }
  0x88   :  { %v3562_v5 = vsel %vm57_vm1, %v54_v30, %v56_v10  ;;  %v59_v63 = vsel %vm57_vm1, %v56_v10, %v54_v30  ;;  %v3568_v60 = vsel %vm40_vm2, 0.0, %v48_v13  ;;  %v77_v27 = vmul.f32 %v2876_v19, %v3556_v31 }
  0x89   :  { %v3572_v25 = vsel %vm52_vm3, 0.0, %v59_v63  ;;  %v94_v18 = vmul.f32 %v3238_v23, %v3562_v5  ;;  %v76_v40 = vmul.f32 %v2876_v19, %v3568_v60  ;;  %v215_v61 = vmul.f32 %v2923_v34, %v3568_v60 }
  0x8a   :  { %v95_v10 = vmul.f32 %v3238_v23, %v3572_v25  ;;  %v216_v9 = vmul.f32 %v2923_v34, %v3556_v31  ;;  %v82_v30 = vadd.f32 %v3236_v17, %v77_v27  ;;  %v233_v13 = vmul.f32 %v3261_v51, %v3562_v5 }
  0x8b   :  { %v234_v63 = vmul.f32 %v3261_v51, %v3572_v25  ;;  %v3593_v19 = vmul.f32 %v3185_v28, %v2825_v3  ;;  %v81_v23 = vadd.f32 %v3232_v14, %v76_v40  ;;  %v220_v7 = vadd.f32 %v3259_v48, %v215_v61 }
  0x8c   :  { %v97_v47 = vadd.f32 %v95_v10, %v2920_v33  ;;  %v221_v34 = vadd.f32 %v3265_v56, %v216_v9  ;;  %v87_v17 = vadd.f32 %v3246_v29, %v82_v30  ;;  %v96_v27 = vadd.f32 %v94_v18, %v3254_v22 }
  0x8d   :  { %5531 = vst [vmem:[#allocation70_spill] sm:$0xff] %v3593_v19  ;;  %v235_v51 = vadd.f32 %v233_v13, %v3286_v44  ;;  %v236_v43 = vadd.f32 %v234_v63, %v2969_v49  ;;  %v86_v54 = vadd.f32 %v3242_v24, %v81_v23  ;;  %v225_v19 = vadd.f32 %v3269_v55, %v220_v7  ;;  %v399_v23 = vld [vmem:[%s5435_s3 + $0x278] sm:$0xff] }
  0x8e   :  { %v226_v33 = vadd.f32 %v3279_v8, %v221_v34  ;;  %v355_v14 = vmul.f32 %v2961_v46, %v3556_v31  ;;  %v99_v29 = vmax.f32 %v87_v17, %v97_v47  ;;  %v373_v22 = vmul.f32 %v3296_v20, %v3572_v25 }
  0x8f   :  { %v3611_v48 = vstv %s3546_s6  ;;  %v1758_v49 = vmul.f32 %v3185_v28, %v2808_v0  ;;  %v98_v44 = vmax.f32 %v86_v54, %v96_v27  ;;  %v237_v24 = vmax.f32 %v225_v19, %v235_v51  ;;  %s5021_s6 = sld [smem:[#allocation3 + $0x3a]] }
  0x90   :  { %v238_v55 = vmax.f32 %v226_v33, %v236_v43  ;;  %v360_v56 = vadd.f32 %v3294_v26, %v355_v14  ;;  %v5532_v8 = vstv %s3213_s29  ;;  %v354_v18 = vmul.f32 %v2961_v46, %v3568_v60  ;;  %s4585_s29 = sld [smem:[#allocation3 + $0x36]] }
  0x91   :  { %v102_v7 = vadd.f32 %v5532_v8, %v99_v29  ;;  %v375_v47 = vadd.f32 %v373_v22, %v3009_v62  ;;  %v3625_v40 = vmul.f32 %v3611_v48, %v2808_v0  ;;  %v5533_v10 = vmov %v5532_v8  ;;  %v553_v29 = vld [vmem:[%s5435_s3 + $0x3f0] sm:$0xff]  ;;  %v413_v8 = vld [vmem:[%s5435_s3 + $0x2e8] sm:$0xff] }
  0x92   :  { %v101_v28 = vadd.f32 %v5533_v10, %v98_v44  ;;  %v5534_v54 = vstv %s3217_s9  ;;  %v365_v26 = vadd.f32 %v3306_v32, %v360_v56  ;;  %v494_v46 = vmul.f32 %v3001_v59, %v3556_v31  ;;  %v538_v32 = vld [vmem:[%s5435_s3 + $0x378] sm:$0xff]  ;;  %v537_v44 = vld [vmem:[%s5435_s3 + $0x370] sm:$0xff]  ;;  %v536_v10 = vld [vmem:[%s5435_s3 + $0x368] sm:$0xff] }
  0x93   :  { %v240_v61 = vadd.f32 %v5534_v54, %v237_v24  ;;  %v5535_v43 = vmov %v5534_v54  ;;  %v104_v30 = vmax.f32 %v102_v7, 0.0  ;;  %v3638_v62 = vmul.f32 %v3611_v48, %v2818_v2  ;;  %v414_v2 = vld [vmem:[%s5435_s3 + $0x2f0] sm:$0xff]  ;;  %v412_v54 = vld [vmem:[%s5435_s3 + $0x2e0] sm:$0xff] }
  0x94   :  { %v241_v9 = vadd.f32 %v5535_v43, %v238_v55  ;;  %v3640_v13 = vadd.f32 %v1758_v49, %v1756_v21  ;;  %v103_v0 = vmax.f32 %v101_v28, 0.0  ;;  %v377_v34 = vmax.f32 %v365_v26, %v375_v47  ;;  %v5538_v43 = vld [vmem:[#allocation32_spill] sm:$0xff]  ;;  %v5539_v26 = vld [vmem:[#allocation33_spill] sm:$0xff] }
  0x95   :  { %v242_v63 = vmax.f32 %v240_v61, 0.0  ;;  %202 = vmatprep.mubr.f32.mxu0 %v104_v30  ;;  %v359_v21 = vadd.f32 %v3290_v41, %v354_v18  ;;  %v499_v17 = vadd.f32 %v3326_v45, %v494_v46  ;;  %v3655_v27 = vmul.f32 %v3195_v38, %v2813_v1  ;;  %v398_v45 = vld [vmem:[%s5435_s3 + $0x270] sm:$0xff]  ;;  %v551_v61 = vld [vmem:[%s5435_s3 + $0x3e0] sm:$0xff] }
  0x96   :  { %v243_v19 = vmax.f32 %v241_v9, 0.0  ;;  %v3659_v51 = vmul.f32 %v3191_v35, %v2813_v1  ;;  %203 = vmatmul.mubr.f32.vlgmr.msra.gmra.mxu0 %v103_v0  ;;  %v5536_v33 = vstv %s3223_s15  ;;  %v512_v41 = vmul.f32 %v3320_v53, %v3572_v25  ;;  %v535_v0 = vld [vmem:[%s5435_s3 + $0x360] sm:$0xff] }
  0x97   :  { %v380_v14 = vadd.f32 %v5536_v33, %v377_v34  ;;  %v632_v22 = vmul.f32 %v3041_v12, %v3568_v60  ;;  %2294 = vmatpush3.msra.mxu0 %v399_v23  ;;  %v372_v1 = vmul.f32 %v3296_v20, %v3562_v5  ;;  %v504_v49 = vadd.f32 %v3334_v42, %v499_v17  ;;  %v552_v20 = vld [vmem:[%s5435_s3 + $0x3e8] sm:$0xff]  ;;  %v395_v33 = vld [vmem:[%s5435_s3 + $0x258] sm:$0xff] }
  0x98   :  { %341 = vmatprep.mubr.f32.mxu1 %v243_v19  ;;  %v3681_v24 = vmul.f32 %v3195_v38, %v2825_v3  ;;  %2295 = vmatprep.subr.mxu0 %v414_v2  ;;  %v514_v56 = vadd.f32 %v512_v41, %v3049_v15  ;;  %v633_v42 = vmul.f32 %v3041_v12, %v3556_v31  ;;  %v5537_v3 = vld [vmem:[#allocation27_spill] sm:$0xff]  ;;  %v517_v47 = vstv %s3621_s25  ;;  %v397_v15 = vld [vmem:[%s5435_s3 + $0x268] sm:$0xff] }
  0x99   :  { %342 = vmatmul.mubr.f32.vlgmr.msra.gmra.mxu1 %v242_v63  ;;  %v382_v55 = vmax.f32 %v380_v14, 0.0  ;;  %v637_v7 = vadd.f32 %v3340_v6, %v632_v22  ;;  %v3694_v18 = vadd.f32 %v5537_v3, %v359_v21  ;;  %2296 = vmatpush3.msra.mxu0 %v398_v45  ;;  %v650_v28 = vmul.f32 %v3343_v58, %v3562_v5  ;;  %v5540_v19 = vld [vmem:[#allocation7_spill] sm:$0xff]  ;;  %v5541_v2 = vld [vmem:[#allocation34_spill] sm:$0xff]  ;;  %v534_v22 = vld [vmem:[%s5435_s3 + $0x358] sm:$0xff] }
  0x9a   :  { %2329 = vmatpush3.msra.mxu1 %v538_v32  ;;  %v651_v12 = vmul.f32 %v3343_v58, %v3572_v25  ;;  %v516_v6 = vmax.f32 %v504_v49, %v514_v56  ;;  %v638_v9 = vadd.f32 %v5538_v43, %v633_v42  ;;  %v493_v46 = vmul.f32 %v3001_v59, %v3568_v60  ;;  %v396_v58 = vld [vmem:[%s5435_s3 + $0x260] sm:$0xff]  ;;  %v411_v59 = vld [vmem:[%s5435_s3 + $0x2d8] sm:$0xff]  ;;  %v410_v49 = vld [vmem:[%s5435_s3 + $0x2d0] sm:$0xff] }
  0x9b   :  { %2330 = vmatprep.subr.mxu1 %v553_v29  ;;  %480 = vmatprep.mubr.f32.mxu0 %v382_v55  ;;  %v3715_v30 = vadd.f32 %v5539_v26, %v637_v7  ;;  %v3726_v63 = vadd.f32 %v650_v28, %v3363_v4  ;;  %v550_v32 = vld [vmem:[%s5435_s3 + $0x3d8] sm:$0xff]  ;;  %v5542_v4 = vld [vmem:[#allocation6_spill] sm:$0xff]  ;;  %v789_v41 = vmul.f32 %v3370_v37, %v3562_v5  ;;  %v5543_v55 = vld [vmem:[#allocation35_spill] sm:$0xff] }
  0x9c   :  { %2331 = vmatpush3.msra.mxu1 %v537_v44  ;;  %2297 = vmatprep.subr.mxu0 %v413_v8  ;;  %v3729_v23 = vadd.f32 %v651_v12, %v5540_v19  ;;  %v519_v34 = vadd.f32 %v517_v47, %v516_v6  ;;  %v3740_v21 = vadd.f32 %v5541_v2, %v638_v9  ;;  %v5545_v7 = vld [vmem:[#allocation29_spill] sm:$0xff]  ;;  %v5546_v28 = vld [vmem:[#allocation36_spill] sm:$0xff]  ;;  %v548_v26 = vld [vmem:[%s5435_s3 + $0x3c8] sm:$0xff] }
  0x9d   :  { %2332 = vmatprep.subr.mxu1 %v552_v20  ;;  %2298 = vmatpush3.msra.mxu0 %v397_v15  ;;  %v771_v17 = vmul.f32 %v5542_v4, %v3568_v60  ;;  %v772_v29 = vmul.f32 %v5542_v4, %v3556_v31  ;;  %v790_v8 = vmul.f32 %v3370_v37, %v3572_v25  ;;  %v5544_v20 = vld [vmem:[#allocation28_spill] sm:$0xff]  ;;  %v549_v15 = vld [vmem:[%s5435_s3 + $0x3d0] sm:$0xff]  ;;  %v5548_v43 = vld [vmem:[#allocation9_spill] sm:$0xff] }
  0x9e   :  { %2333 = vmatpush3.msra.mxu1 %v536_v10  ;;  %2299 = vmatprep.subr.mxu0 %v412_v54  ;;  %v521_v45 = vmax.f32 %v519_v34, 0.0  ;;  %v655_v44 = vmax.f32 %v3740_v21, %v3729_v23  ;;  %v3765_v42 = vadd.f32 %v372_v1, %v5544_v20  ;;  %v498_v3 = vadd.f32 %v5545_v7, %v493_v46  ;;  %v394_v10 = vld [vmem:[%s5435_s3 + $0x250] sm:$0xff]  ;;  %v409_v1 = vld [vmem:[%s5435_s3 + $0x2c8] sm:$0xff]  ;;  %v531_v20 = vld [vmem:[%s5435_s3 + $0x340] sm:$0xff] }
  0x9f   :  { %2334 = vmatprep.subr.mxu1 %v551_v61  ;;  %2300 = vmatpush3.msra.mxu0 %v396_v58  ;;  %v776_v56 = vadd.f32 %v5543_v55, %v771_v17  ;;  %v777_v12 = vadd.f32 %v5546_v28, %v772_v29  ;;  %v533_v37 = vld [vmem:[%s5435_s3 + $0x350] sm:$0xff]  ;;  %v5547_v54 = vld [vmem:[#allocation38_spill] sm:$0xff]  ;;  %v3788_v9 = vadd.f32 %v790_v8, %v5548_v43  ;;  %v5549_v58 = vld [vmem:[#allocation37_spill] sm:$0xff] }
  0xa0   :  { %2335 = vmatpush3.msra.mxu1 %v535_v0  ;;  %2301 = vmatprep.subr.mxu0 %v411_v59  ;;  %v3785_v61 = vadd.f32 %v789_v41, %v5547_v54  ;;  %v393_v46 = vld [vmem:[%s5435_s3 + $0x248] sm:$0xff]  ;;  %v928_v4 = vmul.f32 %v3401_v36, %v3562_v5  ;;  %v929_v17 = vmul.f32 %v3401_v36, %v3572_v25  ;;  %v392_v29 = vld [vmem:[%s5435_s3 + $0x240] sm:$0xff]  ;;  %v407_v7 = vld [vmem:[%s5435_s3 + $0x2b8] sm:$0xff] }
  0xa1   :  { %2336 = vmatprep.subr.mxu1 %v550_v32  ;;  %619 = vmatprep.mubr.f32.mxu1 %v521_v45  ;;  %v3782_v6 = vadd.f32 %v3384_v39, %v776_v56  ;;  %v3797_v0 = vadd.f32 %v5549_v58, %v777_v12  ;;  %v5550_v39 = vld [vmem:[#allocation8_spill] sm:$0xff]  ;;  %v532_v59 = vld [vmem:[%s5435_s3 + $0x348] sm:$0xff]  ;;  %v408_v32 = vld [vmem:[%s5435_s3 + $0x2c0] sm:$0xff]  ;;  %v511_v36 = vmul.f32 %v3320_v53, %v3562_v5 }
  0xa2   :  { %2302 = vmatpush3.msra.mxu0 %v395_v33  ;;  %2337 = vmatpush3.msra.mxu1 %v534_v22  ;;  %v910_v19 = vmul.f32 %v5550_v39, %v3568_v60  ;;  %v911_v34 = vmul.f32 %v5550_v39, %v3556_v31  ;;  %v547_v33 = vld [vmem:[%s5435_s3 + $0x3c0] sm:$0xff]  ;;  %v5551_v45 = vld [vmem:[#allocation39_spill] sm:$0xff]  ;;  %v5553_v56 = vld [vmem:[#allocation30_spill] sm:$0xff]  ;;  %v3852_v54 = vadd.f32 %v928_v4, %v3427_v52 }
  0xa3   :  { %2303 = vmatprep.subr.mxu0 %v410_v49  ;;  %2338 = vmatprep.subr.mxu1 %v549_v15  ;;  %v794_v41 = vmax.f32 %v3797_v0, %v3788_v9  ;;  %v5552_v49 = vld [vmem:[#allocation40_spill] sm:$0xff]  ;;  %v3826_v8 = vadd.f32 %v5553_v56, %v498_v3  ;;  %v5554_v15 = vld [vmem:[#allocation11_spill] sm:$0xff]  ;;  %v5555_v28 = vld [vmem:[#allocation41_spill] sm:$0xff]  ;;  %v1067_v52 = vmul.f32 %v3434_v57, %v3562_v5 }
  0xa4   :  { %2304 = vmatpush3.msra.mxu0 %v394_v10  ;;  %2339 = vmatpush3.msra.mxu1 %v533_v37  ;;  %v915_v22 = vadd.f32 %v5551_v45, %v910_v19  ;;  %v916_v55 = vadd.f32 %v5552_v49, %v911_v34  ;;  %v3837_v10 = vadd.f32 %v929_v17, %v5554_v15  ;;  %v546_v3 = vld [vmem:[%s5435_s3 + $0x3b8] sm:$0xff]  ;;  %v5556_v37 = vld [vmem:[#allocation42_spill] sm:$0xff]  ;;  %v545_v19 = vld [vmem:[%s5435_s3 + $0x3b0] sm:$0xff] }
  0xa5   :  { %2305 = vmatprep.subr.mxu0 %v409_v1  ;;  %2340 = vmatprep.subr.mxu1 %v548_v26  ;;  %v391_v53 = vld [vmem:[%s5435_s3 + $0x238] sm:$0xff]  ;;  %v406_v26 = vld [vmem:[%s5435_s3 + $0x2b0] sm:$0xff]  ;;  %v1068_v4 = vmul.f32 %v3434_v57, %v3572_v25  ;;  %v376_v17 = vmax.f32 %v3694_v18, %v3765_v42  ;;  %v544_v18 = vld [vmem:[%s5435_s3 + $0x3a8] sm:$0xff] }
  0xa6   :  { %2306 = vmatpush3.msra.mxu0 %v393_v46  ;;  %2341 = vmatpush3.msra.mxu1 %v532_v59  ;;  %v3846_v12 = vadd.f32 %v5555_v28, %v915_v22  ;;  %v3849_v1 = vadd.f32 %v5556_v37, %v916_v55  ;;  %v530_v43 = vld [vmem:[%s5435_s3 + $0x338] sm:$0xff]  ;;  %v5557_v46 = vld [vmem:[#allocation10_spill] sm:$0xff]  ;;  %v390_v34 = vld [vmem:[%s5435_s3 + $0x230] sm:$0xff] }
  0xa7   :  { %2307 = vmatprep.subr.mxu0 %v408_v32  ;;  %2342 = vmatprep.subr.mxu1 %v547_v33  ;;  %v1049_v58 = vmul.f32 %v5557_v46, %v3568_v60  ;;  %v1050_v39 = vmul.f32 %v5557_v46, %v3556_v31  ;;  %v529_v33 = vld [vmem:[%s5435_s3 + $0x330] sm:$0xff]  ;;  %v5559_v49 = vld [vmem:[#allocation44_spill] sm:$0xff]  ;;  %v389_v42 = vld [vmem:[%s5435_s3 + $0x228] sm:$0xff] }
  0xa8   :  { %2308 = vmatpush3.msra.mxu0 %v392_v29  ;;  %2343 = vmatpush3.msra.mxu1 %v531_v20  ;;  %v405_v29 = vld [vmem:[%s5435_s3 + $0x2a8] sm:$0xff]  ;;  %v5558_v45 = vld [vmem:[#allocation43_spill] sm:$0xff]  ;;  %v5562_v15 = vld [vmem:[#allocation13_spill] sm:$0xff] }
  0xa9   :  { %2309 = vmatprep.subr.mxu0 %v407_v7  ;;  %2344 = vmatprep.subr.mxu1 %v546_v3  ;;  %v1054_v22 = vadd.f32 %v5558_v45, %v1049_v58  ;;  %v1055_v55 = vadd.f32 %v5559_v49, %v1050_v39  ;;  %v5560_v57 = vld [vmem:[#allocation31_spill] sm:$0xff]  ;;  %v3903_v3 = vadd.f32 %v1068_v4, %v5562_v15  ;;  %v5563_v28 = vld [vmem:[#allocation45_spill] sm:$0xff]  ;;  %v5565_v46 = vld [vmem:[#allocation12_spill] sm:$0xff] }
  0xaa   :  { %2310 = vmatpush3.msra.mxu0 %v391_v53  ;;  %v513_v56 = vadd.f32 %v511_v36, %v5560_v57  ;;  %2345 = vmatpush3.msra.mxu1 %v530_v43  ;;  %v5561_v20 = vld [vmem:[#allocation47_spill] sm:$0xff]  ;;  %v528_v36 = vld [vmem:[%s5435_s3 + $0x328] sm:$0xff]  ;;  %v404_v53 = vld [vmem:[%s5435_s3 + $0x2a0] sm:$0xff]  ;;  %v1188_v58 = vmul.f32 %v5565_v46, %v3568_v60  ;;  %v1206_v4 = vmul.f32 %v3455_v11, %v3562_v5 }
  0xab   :  { %2311 = vmatprep.subr.mxu0 %v406_v26  ;;  %v3900_v7 = vadd.f32 %v1067_v52, %v5561_v20  ;;  %2346 = vmatprep.subr.mxu1 %v545_v19  ;;  %v3912_v37 = vadd.f32 %v5563_v28, %v1054_v22  ;;  %v5564_v43 = vld [vmem:[#allocation46_spill] sm:$0xff]  ;;  %v543_v52 = vld [vmem:[%s5435_s3 + $0x3a0] sm:$0xff]  ;;  %v5566_v22 = vld [vmem:[#allocation48_spill] sm:$0xff] }
  0xac   :  { %2312 = vmatpush3.msra.mxu0 %v390_v34  ;;  %v3915_v26 = vadd.f32 %v5564_v43, %v1055_v55  ;;  %v515_v39 = vmax.f32 %v3826_v8, %v513_v56  ;;  %2347 = vmatpush3.msra.mxu1 %v529_v33  ;;  %v388_v19 = vld [vmem:[%s5435_s3 + $0x220] sm:$0xff]  ;;  %v1189_v34 = vmul.f32 %v5565_v46, %v3556_v31  ;;  %v403_v33 = vld [vmem:[%s5435_s3 + $0x298] sm:$0xff]  ;;  %v5569_v43 = vld [vmem:[#allocation50_spill] sm:$0xff] }
  0xad   :  { %2313 = vmatprep.subr.mxu0 %v405_v29  ;;  %2348 = vmatprep.subr.mxu1 %v544_v18  ;;  %v527_v8 = vld [vmem:[%s5435_s3 + $0x320] sm:$0xff]  ;;  %v1193_v49 = vadd.f32 %v5566_v22, %v1188_v58  ;;  %v542_v55 = vld [vmem:[%s5435_s3 + $0x398] sm:$0xff] }
  0xae   :  { %2314 = vmatpush3.msra.mxu0 %v389_v42  ;;  %2349 = vmatpush3.msra.mxu1 %v528_v36  ;;  %v387_v57 = vld [vmem:[%s5435_s3 + $0x218] sm:$0xff]  ;;  %v5567_v56 = vld [vmem:[#allocation49_spill] sm:$0xff]  ;;  %v1207_v42 = vmul.f32 %v3455_v11, %v3572_v25  ;;  %v5568_v36 = vstv %s3223_s15  ;;  %v402_v11 = vld [vmem:[%s5435_s3 + $0x290] sm:$0xff] }
  0xaf   :  { %2315 = vmatprep.subr.mxu0 %v404_v53  ;;  %v1194_v18 = vadd.f32 %v5567_v56, %v1189_v34  ;;  %v3955_v20 = vld [vmem:[%s5434_s2] sm:$0xff]  ;;  %v3963_v53 = vadd.f32 %v5568_v36, %v376_v17  ;;  %2350 = vmatprep.subr.mxu1 %v543_v52  ;;  %v526_v28 = vld [vmem:[%s5435_s3 + $0x318] sm:$0xff]  ;;  %v3972_v46 = vadd.f32 %v5569_v43, %v1193_v49  ;;  %v541_v17 = vld [vmem:[%s5435_s3 + $0x390] sm:$0xff]  ;;  %v5462_v43 = vstv %s3888_s17 }
  0xb0   :  { %v3959_v15 = vmul.f32 %v3955_v20, %v3195_v38  ;;  %2316 = vmatpush3.msra.mxu0 %v388_v19  ;;  %v5570_v38 = vld [vmem:[#allocation52_spill] sm:$0xff]  ;;  %2351 = vmatpush3.msra.mxu1 %v527_v8  ;;  %v386_v52 = vld [vmem:[%s5435_s3 + $0x210] sm:$0xff]  ;;  %v5463_v19 = vstv %s3872_s26  ;;  %v518_v8 = vadd.f32 %v517_v47, %v515_v39  ;;  %v540_v47 = vld [vmem:[%s5435_s3 + $0x388] sm:$0xff]  ;;  %v797_v23 = vadd.f32 %v5462_v43, %v794_v41 }
  0xb1   :  { %v3975_v58 = vadd.f32 %v1206_v4, %v5570_v38  ;;  %2317 = vmatprep.subr.mxu0 %v403_v33  ;;  %v5571_v34 = vld [vmem:[#allocation51_spill] sm:$0xff]  ;;  %v5573_v4 = vld [vmem:[#allocation14_spill] sm:$0xff]  ;;  %2352 = vmatprep.subr.mxu1 %v542_v55  ;;  %v5577_v21 = vld [vmem:[#allocation56_spill] sm:$0xff]  ;;  %v4059_v41 = vstv %s3941_s10 }
  0xb2   :  { %v3985_v22 = vadd.f32 %v5571_v34, %v1194_v18  ;;  %v5572_v56 = vld [vmem:[#allocation15_spill] sm:$0xff]  ;;  %v1327_v36 = vmul.f32 %v5573_v4, %v3568_v60  ;;  %2318 = vmatpush3.msra.mxu0 %v387_v57  ;;  %v401_v18 = vld [vmem:[%s5435_s3 + $0x288] sm:$0xff]  ;;  %v1328_v38 = vmul.f32 %v5573_v4, %v3556_v31  ;;  %2353 = vmatpush3.msra.mxu1 %v526_v28  ;;  %v5574_v57 = vld [vmem:[#allocation53_spill] sm:$0xff]  ;;  %v799_v59 = vmax.f32 %v797_v23, 0.0 }
  0xb3   :  { %v3988_v49 = vadd.f32 %v1207_v42, %v5572_v56  ;;  %v525_v33 = vld [vmem:[%s5435_s3 + $0x310] sm:$0xff]  ;;  %2319 = vmatprep.subr.mxu0 %v402_v11  ;;  %v385_v39 = vld [vmem:[%s5435_s3 + $0x208] sm:$0xff]  ;;  %2354 = vmatprep.subr.mxu1 %v541_v17  ;;  %v400_v11 = vld [vmem:[%s5435_s3 + $0x280] sm:$0xff]  ;;  %v658_v4 = vadd.f32 %v5463_v19, %v655_v44 }
  0xb4   :  { %v1332_v34 = vadd.f32 %v5574_v57, %v1327_v36  ;;  %v5575_v56 = vld [vmem:[#allocation54_spill] sm:$0xff]  ;;  %2320 = vmatpush3.msra.mxu0 %v386_v52  ;;  %v5576_v55 = vld [vmem:[#allocation55_spill] sm:$0xff]  ;;  %2355 = vmatpush3.msra.mxu1 %v525_v33  ;;  %v539_v52 = vld [vmem:[%s5435_s3 + $0x380] sm:$0xff] }
  0xb5   :  { %v1345_v42 = vmul.f32 %v5575_v56, %v3562_v5  ;;  %v524_v28 = vld [vmem:[%s5435_s3 + $0x308] sm:$0xff]  ;;  %v1333_v36 = vadd.f32 %v5576_v55, %v1328_v38  ;;  %v1346_v17 = vmul.f32 %v5575_v56, %v3572_v25  ;;  %2321 = vmatprep.subr.mxu0 %v401_v18  ;;  %v384_v57 = vld [vmem:[%s5435_s3 + $0x200] sm:$0xff]  ;;  %2356 = vmatprep.subr.mxu1 %v540_v47  ;;  %v5580_v9 = vld [vmem:[#allocation16_spill] sm:$0xff] }
  0xb6   :  { %v4042_v44 = vadd.f32 %v5577_v21, %v1332_v34  ;;  %2322 = vmatpush3.msra.mxu0 %v385_v39  ;;  %v523_v33 = vld [vmem:[%s5435_s3 + $0x300] sm:$0xff]  ;;  %v1466_v0 = vmul.f32 %v5580_v9, %v3568_v60  ;;  %2357 = vmatpush3.msra.mxu1 %v524_v28  ;;  %v1467_v39 = vmul.f32 %v5580_v9, %v3556_v31  ;;  %v677_v28 = vld [vmem:[%s5435_s3 + $0x478] sm:$0xff]  ;;  %v4093_v9 = vld [vmem:[%s5434_s2 + $0x8] sm:$0xff] }
  0xb7   :  { %v4045_v38 = vadd.f32 %v1345_v42, %v3502_v16  ;;  %v5578_v18 = vld [vmem:[#allocation57_spill] sm:$0xff]  ;;  %v381_v16 = vmax.f32 %v3963_v53, 0.0  ;;  %2323 = vmatprep.subr.mxu0 %v400_v11  ;;  %v693_v42 = vld [vmem:[%s5435_s3 + $0x4f8] sm:$0xff]  ;;  %v1484_v34 = vmul.f32 %v3509_v50, %v3562_v5  ;;  %2358 = vmatprep.subr.mxu1 %v539_v52  ;;  %v5582_v52 = vld [vmem:[#allocation59_spill] sm:$0xff] }
  0xb8   :  { %v4051_v55 = vadd.f32 %v5578_v18, %v1333_v36  ;;  %v5579_v56 = vld [vmem:[#allocation17_spill] sm:$0xff]  ;;  %v520_v36 = vmax.f32 %v518_v8, 0.0  ;;  %2324 = vmatpush3.msra.mxu0 %v384_v57  ;;  %v832_v53 = vld [vmem:[%s5435_s3 + $0x5f8] sm:$0xff]  ;;  %v1485_v18 = vmul.f32 %v3509_v50, %v3572_v25  ;;  %2359 = vmatpush3.msra.mxu1 %v523_v33  ;;  %v1472_v57 = vadd.f32 %v5582_v52, %v1467_v39  ;;  %v5586_v47 = vld [vmem:[#allocation19_spill] sm:$0xff] }
  0xb9   :  { %v4054_v29 = vadd.f32 %v1346_v17, %v5579_v56  ;;  %v5581_v17 = vld [vmem:[#allocation58_spill] sm:$0xff]  ;;  %481 = vmatmul.mubr.f32.vlgmr.msra.gmra.mxu0 %v381_v16  ;;  %v816_v8 = vld [vmem:[%s5435_s3 + $0x578] sm:$0xff]  ;;  %v4088_v56 = vmul.f32 %v3955_v20, %v4059_v41  ;;  %v4097_v50 = vmul.f32 %v4093_v9, %v4059_v41  ;;  %2363 = vmatprep.subr.mxu0 %v693_v42  ;;  %v660_v33 = vmax.f32 %v658_v4, 0.0  ;;  %v831_v4 = vld [vmem:[%s5435_s3 + $0x5f0] sm:$0xff] }
  0xba   :  { %v1471_v21 = vadd.f32 %v5581_v17, %v1466_v0  ;;  %620 = vmatmul.mubr.f32.vlgmr.msra.gmra.mxu1 %v520_v36  ;;  %v692_v0 = vld [vmem:[%s5435_s3 + $0x4f0] sm:$0xff]  ;;  %v5583_v16 = vld [vmem:[#allocation60_spill] sm:$0xff]  ;;  %v4109_v11 = vadd.f32 %v1485_v18, %v5586_v47  ;;  %2398 = vmatprep.subr.mxu1 %v832_v53  ;;  %v5587_v36 = vld [vmem:[#allocation61_spill] sm:$0xff] }
  0xbb   :  { %v5584_v17 = vld [vmem:[#allocation63_spill] sm:$0xff]  ;;  %2364 = vmatpush3.msra.mxu0 %v677_v28  ;;  %758 = vmatprep.mubr.f32.mxu0 %v660_v33  ;;  %v691_v53 = vld [vmem:[%s5435_s3 + $0x4e8] sm:$0xff]  ;;  %v5591_v45 = vld [vmem:[#allocation65_spill] sm:$0xff] }
  0xbc   :  { %v4103_v39 = vadd.f32 %v5583_v16, %v1471_v21  ;;  %v4106_v52 = vadd.f32 %v1484_v34, %v5584_v17  ;;  %v676_v42 = vld [vmem:[%s5435_s3 + $0x470] sm:$0xff]  ;;  %v4118_v21 = vadd.f32 %v5587_v36, %v1472_v57  ;;  %v5588_v34 = vld [vmem:[#allocation18_spill] sm:$0xff]  ;;  %2399 = vmatpush3.msra.mxu1 %v816_v8  ;;  %897 = vmatprep.mubr.f32.mxu1 %v799_v59  ;;  %v5599_v19 = vld [vmem:[#allocation20_spill] sm:$0xff] }
  0xbd   :  { %v1605_v16 = vmul.f32 %v5588_v34, %v3568_v60  ;;  %v1606_v47 = vmul.f32 %v5588_v34, %v3556_v31  ;;  %v815_v23 = vld [vmem:[%s5435_s3 + $0x570] sm:$0xff]  ;;  %v5589_v18 = vld [vmem:[#allocation62_spill] sm:$0xff]  ;;  %2365 = vmatprep.subr.mxu0 %v692_v0  ;;  %v5590_v34 = vld [vmem:[#allocation64_spill] sm:$0xff]  ;;  %2400 = vmatprep.subr.mxu1 %v831_v4  ;;  %v4157_v36 = vadd.f32 %v3959_v15, %v3659_v51 }
  0xbe   :  { %5585 = vst [vmem:[#allocation27_spill] sm:$0xff] %v4106_v52  ;;  %v1623_v57 = vmul.f32 %v5589_v18, %v3562_v5  ;;  %v1624_v17 = vmul.f32 %v5589_v18, %v3572_v25  ;;  %v830_v8 = vld [vmem:[%s5435_s3 + $0x5e8] sm:$0xff]  ;;  %2366 = vmatpush3.msra.mxu0 %v676_v42  ;;  %v690_v0 = vld [vmem:[%s5435_s3 + $0x4e0] sm:$0xff]  ;;  %v5593_v4 = vld [vmem:[#allocation23_spill] sm:$0xff]  ;;  %2401 = vmatpush3.msra.mxu1 %v815_v23 }
  0xbf   :  { %v675_v33 = vld [vmem:[%s5435_s3 + $0x468] sm:$0xff]  ;;  %v1610_v28 = vadd.f32 %v5590_v34, %v1605_v16  ;;  %v1611_v32 = vadd.f32 %v5591_v45, %v1606_v47  ;;  %v5592_v18 = vld [vmem:[#allocation21_spill] sm:$0xff]  ;;  %2367 = vmatprep.subr.mxu0 %v691_v53  ;;  %2402 = vmatprep.subr.mxu1 %v830_v8  ;;  %v689_v53 = vld [vmem:[%s5435_s3 + $0x4d8] sm:$0xff] }
  0xc0   :  { %v814_v59 = vld [vmem:[%s5435_s3 + $0x568] sm:$0xff]  ;;  %v4153_v43 = vadd.f32 %v1624_v17, %v5592_v18  ;;  %v2753_v45 = vld [vmem:[%s5433_s1] sm:$0xff]  ;;  %v5596_v17 = vld [vmem:[#allocation67_spill] sm:$0xff]  ;;  %2368 = vmatpush3.msra.mxu0 %v675_v33 }
  0xc1   :  { %v4165_v42 = vmul.f32 %v2753_v45, %v5593_v4  ;;  %v829_v16 = vld [vmem:[%s5435_s3 + $0x5e0] sm:$0xff]  ;;  %v5594_v15 = vld [vmem:[#allocation66_spill] sm:$0xff]  ;;  %v4177_v34 = vadd.f32 %v5596_v17, %v1611_v32  ;;  %v5597_v18 = vld [vmem:[#allocation68_spill] sm:$0xff]  ;;  %v1745_v32 = vmul.f32 %v5599_v19, %v3556_v31  ;;  %2403 = vmatpush3.msra.mxu1 %v814_v59  ;;  %2369 = vmatprep.subr.mxu0 %v690_v0 }
  0xc2   :  { %v674_v51 = vld [vmem:[%s5435_s3 + $0x460] sm:$0xff]  ;;  %v4174_v47 = vadd.f32 %v5594_v15, %v1610_v28  ;;  %v4180_v2 = vadd.f32 %v1623_v57, %v5597_v18  ;;  %v1744_v28 = vmul.f32 %v5599_v19, %v3568_v60  ;;  %v1762_v57 = vmul.f32 %v3611_v48, %v3562_v5  ;;  %v828_v8 = vld [vmem:[%s5435_s3 + $0x5d8] sm:$0xff]  ;;  %2404 = vmatprep.subr.mxu1 %v829_v16  ;;  %v688_v0 = vld [vmem:[%s5435_s3 + $0x4d0] sm:$0xff] }
  0xc3   :  { %v813_v23 = vld [vmem:[%s5435_s3 + $0x560] sm:$0xff]  ;;  %v673_v33 = vld [vmem:[%s5435_s3 + $0x458] sm:$0xff]  ;;  %v1763_v19 = vmul.f32 %v3611_v48, %v3572_v25  ;;  %2370 = vmatpush3.msra.mxu0 %v674_v51  ;;  %v5601_v52 = vld [vmem:[#allocation70_spill] sm:$0xff] }
  0xc4   :  { %5595 = vst [vmem:[#allocation32_spill] sm:$0xff] %v4174_v47  ;;  %5598 = vst [vmem:[#allocation33_spill] sm:$0xff] %v4180_v2  ;;  %v812_v59 = vld [vmem:[%s5435_s3 + $0x558] sm:$0xff]  ;;  %v5600_v18 = vld [vmem:[#allocation69_spill] sm:$0xff]  ;;  %v1750_v15 = vadd.f32 %v5601_v52, %v1745_v32  ;;  %2405 = vmatpush3.msra.mxu1 %v813_v23  ;;  %2371 = vmatprep.subr.mxu0 %v689_v53  ;;  %v4224_v51 = vadd.f32 %v1762_v57, %v3640_v13 }
  0xc5   :  { %v1749_v14 = vadd.f32 %v5600_v18, %v1744_v28  ;;  %v5602_v2 = vld [vmem:[#allocation25_spill] sm:$0xff]  ;;  %v827_v48 = vld [vmem:[%s5435_s3 + $0x5d0] sm:$0xff]  ;;  %v5603_v17 = vld [vmem:[#allocation22_spill] sm:$0xff]  ;;  %2406 = vmatprep.subr.mxu1 %v828_v8  ;;  %2372 = vmatpush3.msra.mxu0 %v673_v33  ;;  %v1883_v32 = vmul.f32 %v3191_v35, %v3568_v60 }
  0xc6   :  { %v4215_v47 = vmul.f32 %v2753_v45, %v5602_v2  ;;  %v672_v16 = vld [vmem:[%s5435_s3 + $0x450] sm:$0xff]  ;;  %v4227_v28 = vadd.f32 %v1763_v19, %v5603_v17  ;;  %v2036_v52 = vmul.f32 %v3955_v20, %v5602_v2  ;;  %v687_v23 = vld [vmem:[%s5435_s3 + $0x4c8] sm:$0xff]  ;;  %v4241_v13 = vadd.f32 %v3638_v62, %v1750_v15  ;;  %2407 = vmatpush3.msra.mxu1 %v812_v59  ;;  %v686_v17 = vld [vmem:[%s5435_s3 + $0x4c0] sm:$0xff] }
  0xc7   :  { %v811_v45 = vld [vmem:[%s5435_s3 + $0x550] sm:$0xff]  ;;  %v4238_v53 = vadd.f32 %v3625_v40, %v1749_v14  ;;  %2373 = vmatprep.subr.mxu0 %v688_v0  ;;  %v826_v57 = vld [vmem:[%s5435_s3 + $0x5c8] sm:$0xff]  ;;  %v1884_v40 = vmul.f32 %v3191_v35, %v3556_v31  ;;  %v1901_v62 = vmul.f32 %v4059_v41, %v3562_v5  ;;  %2408 = vmatprep.subr.mxu1 %v827_v48  ;;  %v2029_v0 = vstv %s4159_s14  ;;  %v670_v18 = vld [vmem:[%s5435_s3 + $0x440] sm:$0xff]  ;;  %s4803_s14 = sld [smem:[#allocation3 + $0x38]] }
  0xc8   :  { %v671_v8 = vld [vmem:[%s5435_s3 + $0x448] sm:$0xff]  ;;  %2374 = vmatpush3.msra.mxu0 %v672_v16  ;;  %v1767_v19 = vmax.f32 %v4241_v13, %v4227_v28  ;;  %v1888_v59 = vadd.f32 %v3655_v27, %v1883_v32  ;;  %2409 = vmatpush3.msra.mxu1 %v811_v45  ;;  %v1902_v16 = vmul.f32 %v4059_v41, %v3572_v25  ;;  %v809_v27 = vld [vmem:[%s5435_s3 + $0x540] sm:$0xff]  ;;  %v685_v45 = vld [vmem:[%s5435_s3 + $0x4b8] sm:$0xff] }
  0xc9   :  { %v2754_v14 = vld [vmem:[%s5433_s1 + $0x8] sm:$0xff]  ;;  %v1766_v35 = vmax.f32 %v4238_v53, %v4224_v51  ;;  %2375 = vmatprep.subr.mxu0 %v687_v23  ;;  %v1889_v48 = vadd.f32 %v3681_v24, %v1884_v40  ;;  %2410 = vmatprep.subr.mxu1 %v826_v57  ;;  %v4291_v24 = vadd.f32 %v1901_v62, %v4157_v36  ;;  %v669_v32 = vld [vmem:[%s5435_s3 + $0x438] sm:$0xff]  ;;  %v1790_v53 = vld [vmem:[%s5435_s3 + $0xc80] sm:$0xff] }
  0xca   :  { %v2026_v33 = vmul.f32 %v2754_v14, %v5602_v2  ;;  %v810_v15 = vld [vmem:[%s5435_s3 + $0x548] sm:$0xff]  ;;  %v825_v2 = vld [vmem:[%s5435_s3 + $0x5c0] sm:$0xff]  ;;  %v2030_v14 = vmul.f32 %v3955_v20, %v2029_v0  ;;  %2376 = vmatpush3.msra.mxu0 %v671_v8  ;;  %v4288_v23 = vadd.f32 %v4088_v56, %v1888_v59  ;;  %v2038_v41 = vadd.f32 %v2036_v52, %v4165_v42  ;;  %v824_v20 = vld [vmem:[%s5435_s3 + $0x5b8] sm:$0xff] }
  0xcb   :  { %2411 = vmatpush3.msra.mxu1 %v810_v15  ;;  %2377 = vmatprep.subr.mxu0 %v686_v17  ;;  %v4301_v57 = vadd.f32 %v4097_v50, %v1889_v48  ;;  %v5604_v56 = vld [vmem:[#allocation24_spill] sm:$0xff]  ;;  %v2022_v36 = vmul.f32 %v5593_v4, %v3568_v60  ;;  %v684_v52 = vld [vmem:[%s5435_s3 + $0x4b0] sm:$0xff]  ;;  %v2023_v40 = vmul.f32 %v5593_v4, %v3556_v31  ;;  %v1914_v51 = vld [vmem:[%s5435_s3 + $0xd08] sm:$0xff] }
  0xcc   :  { %v4304_v8 = vadd.f32 %v1902_v16, %v5604_v56  ;;  %2412 = vmatprep.subr.mxu1 %v825_v2  ;;  %2378 = vmatpush3.msra.mxu0 %v670_v18  ;;  %v808_v42 = vld [vmem:[%s5435_s3 + $0x538] sm:$0xff]  ;;  %v1905_v50 = vmax.f32 %v4288_v23, %v4291_v24  ;;  %v2031_v62 = vmul.f32 %v4093_v9, %v2029_v0  ;;  %v823_v60 = vld [vmem:[%s5435_s3 + $0x5b0] sm:$0xff]  ;;  %v683_v9 = vld [vmem:[%s5435_s3 + $0x4a8] sm:$0xff] }
  0xcd   :  { %2413 = vmatpush3.msra.mxu1 %v809_v27  ;;  %2379 = vmatprep.subr.mxu0 %v685_v45  ;;  %v668_v15 = vld [vmem:[%s5435_s3 + $0x430] sm:$0xff]  ;;  %v2027_v59 = vadd.f32 %v4215_v47, %v2022_v36  ;;  %v2040_v2 = vmul.f32 %v2029_v0, %v3562_v5  ;;  %v2028_v4 = vadd.f32 %v2026_v33, %v2023_v40  ;;  %v822_v47 = vld [vmem:[%s5435_s3 + $0x5a8] sm:$0xff]  ;;  %v682_v33 = vld [vmem:[%s5435_s3 + $0x4a0] sm:$0xff] }
  0xce   :  { %v1906_v17 = vmax.f32 %v4301_v57, %v4304_v8  ;;  %2414 = vmatprep.subr.mxu1 %v824_v20  ;;  %2380 = vmatpush3.msra.mxu0 %v669_v32  ;;  %v807_v31 = vld [vmem:[%s5435_s3 + $0x530] sm:$0xff]  ;;  %v2041_v18 = vmul.f32 %v2029_v0, %v3572_v25  ;;  %v667_v5 = vld [vmem:[%s5435_s3 + $0x428] sm:$0xff]  ;;  %v805_v32 = vld [vmem:[%s5435_s3 + $0x520] sm:$0xff] }
  0xcf   :  { %2415 = vmatpush3.msra.mxu1 %v808_v42  ;;  %2381 = vmatprep.subr.mxu0 %v684_v52  ;;  %v4344_v48 = vadd.f32 %v2030_v14, %v2027_v59  ;;  %v4346_v16 = vadd.f32 %v2040_v2, %v2038_v41  ;;  %v806_v25 = vld [vmem:[%s5435_s3 + $0x528] sm:$0xff]  ;;  %v4356_v0 = vadd.f32 %v2031_v62, %v2028_v4  ;;  %v821_v14 = vld [vmem:[%s5435_s3 + $0x5a0] sm:$0xff]  ;;  %v681_v56 = vld [vmem:[%s5435_s3 + $0x498] sm:$0xff] }
  0xd0   :  { %2416 = vmatprep.subr.mxu1 %v823_v60  ;;  %2382 = vmatpush3.msra.mxu0 %v668_v15  ;;  %v5605_v27 = vld [vmem:[#allocation26_spill] sm:$0xff]  ;;  %v666_v41 = vld [vmem:[%s5435_s3 + $0x420] sm:$0xff]  ;;  %v820_v42 = vld [vmem:[%s5435_s3 + $0x598] sm:$0xff] }
  0xd1   :  { %v4359_v45 = vadd.f32 %v2041_v18, %v5605_v27  ;;  %2417 = vmatpush3.msra.mxu1 %v807_v31  ;;  %2383 = vmatprep.subr.mxu0 %v683_v9  ;;  %v2044_v20 = vmax.f32 %v4344_v48, %v4346_v16  ;;  %v665_v52 = vld [vmem:[%s5435_s3 + $0x418] sm:$0xff]  ;;  %v680_v62 = vld [vmem:[%s5435_s3 + $0x490] sm:$0xff]  ;;  %v679_v2 = vld [vmem:[%s5435_s3 + $0x488] sm:$0xff]  ;;  %v5606_v31 = vmax.f32 %v3715_v30, %v3726_v63  ;;  %v5607_v9 = vstv %s3872_s26 }
  0xd2   :  { %2418 = vmatprep.subr.mxu1 %v822_v47  ;;  %2384 = vmatpush3.msra.mxu0 %v667_v5  ;;  %v804_v40 = vld [vmem:[%s5435_s3 + $0x518] sm:$0xff]  ;;  %v819_v60 = vld [vmem:[%s5435_s3 + $0x590] sm:$0xff]  ;;  %v818_v18 = vld [vmem:[%s5435_s3 + $0x588] sm:$0xff]  ;;  %v934_v5 = vstv %s4342_s12 }
  0xd3   :  { %v2045_v36 = vmax.f32 %v4356_v0, %v4359_v45  ;;  %2419 = vmatpush3.msra.mxu1 %v806_v25  ;;  %2385 = vmatprep.subr.mxu0 %v682_v33  ;;  %v664_v15 = vld [vmem:[%s5435_s3 + $0x410] sm:$0xff]  ;;  %v657_v4 = vadd.f32 %v5607_v9, %v5606_v31  ;;  %v663_v47 = vld [vmem:[%s5435_s3 + $0x408] sm:$0xff]  ;;  %v5608_v25 = vmax.f32 %v3782_v6, %v3785_v61  ;;  %v5609_v33 = vstv %s3888_s17  ;;  %v678_v63 = vld [vmem:[%s5435_s3 + $0x480] sm:$0xff] }
  0xd4   :  { %2420 = vmatprep.subr.mxu1 %v821_v14  ;;  %2386 = vmatpush3.msra.mxu0 %v666_v41  ;;  %v803_v59 = vld [vmem:[%s5435_s3 + $0x510] sm:$0xff]  ;;  %v802_v30 = vld [vmem:[%s5435_s3 + $0x508] sm:$0xff]  ;;  %v1073_v14 = vstv %s4354_s18  ;;  %v817_v6 = vld [vmem:[%s5435_s3 + $0x580] sm:$0xff] }
  0xd5   :  { %2421 = vmatpush3.msra.mxu1 %v805_v32  ;;  %2387 = vmatprep.subr.mxu0 %v681_v56  ;;  %v796_v27 = vadd.f32 %v5609_v33, %v5608_v25  ;;  %v662_v61 = vld [vmem:[%s5435_s3 + $0x400] sm:$0xff]  ;;  %v5610_v32 = vmax.f32 %v3849_v1, %v3837_v10  ;;  %v1110_v10 = vld [vmem:[%s5435_s3 + $0x7f8] sm:$0xff]  ;;  %v954_v31 = vld [vmem:[%s5435_s3 + $0x670] sm:$0xff] }
  0xd6   :  { %2422 = vmatprep.subr.mxu1 %v820_v42  ;;  %2388 = vmatpush3.msra.mxu0 %v665_v52  ;;  %v801_v41 = vld [vmem:[%s5435_s3 + $0x500] sm:$0xff]  ;;  %v659_v42 = vmax.f32 %v657_v4, 0.0  ;;  %v971_v52 = vld [vmem:[%s5435_s3 + $0x6f8] sm:$0xff]  ;;  %v1093_v9 = vld [vmem:[%s5435_s3 + $0x770] sm:$0xff] }
  0xd7   :  { %2423 = vmatpush3.msra.mxu1 %v804_v40  ;;  %2389 = vmatprep.subr.mxu0 %v680_v62  ;;  %v936_v56 = vadd.f32 %v934_v5, %v5610_v32  ;;  %v5611_v40 = vmax.f32 %v3915_v26, %v3903_v3  ;;  %v955_v1 = vld [vmem:[%s5435_s3 + $0x678] sm:$0xff]  ;;  %v970_v26 = vld [vmem:[%s5435_s3 + $0x6f0] sm:$0xff]  ;;  %v969_v4 = vld [vmem:[%s5435_s3 + $0x6e8] sm:$0xff] }
  0xd8   :  { %2424 = vmatprep.subr.mxu1 %v819_v60  ;;  %2390 = vmatpush3.msra.mxu0 %v664_v15  ;;  %v798_v60 = vmax.f32 %v796_v27, 0.0  ;;  %v1094_v15 = vld [vmem:[%s5435_s3 + $0x778] sm:$0xff]  ;;  %v1092_v25 = vld [vmem:[%s5435_s3 + $0x768] sm:$0xff]  ;;  %v968_v33 = vld [vmem:[%s5435_s3 + $0x6e0] sm:$0xff] }
  0xd9   :  { %2425 = vmatpush3.msra.mxu1 %v803_v59  ;;  %2391 = vmatprep.subr.mxu0 %v679_v2  ;;  %v1075_v62 = vadd.f32 %v1073_v14, %v5611_v40  ;;  %v938_v3 = vmax.f32 %v936_v56, 0.0  ;;  %v1109_v2 = vld [vmem:[%s5435_s3 + $0x7f0] sm:$0xff]  ;;  %v1107_v27 = vld [vmem:[%s5435_s3 + $0x7e0] sm:$0xff]  ;;  %v1090_v32 = vld [vmem:[%s5435_s3 + $0x758] sm:$0xff] }
  0xda   :  { %2426 = vmatprep.subr.mxu1 %v818_v18  ;;  %2392 = vmatpush3.msra.mxu0 %v663_v47  ;;  %v1108_v18 = vld [vmem:[%s5435_s3 + $0x7e8] sm:$0xff]  ;;  %v966_v56 = vld [vmem:[%s5435_s3 + $0x6d0] sm:$0xff]  ;;  %v1944_v28 = vld [vmem:[%s5435_s3 + $0xdf8] sm:$0xff] }
  0xdb   :  { %2427 = vmatpush3.msra.mxu1 %v802_v30  ;;  %2393 = vmatprep.subr.mxu0 %v678_v63  ;;  %v1077_v59 = vmax.f32 %v1075_v62, 0.0  ;;  %v953_v47 = vld [vmem:[%s5435_s3 + $0x668] sm:$0xff]  ;;  %v952_v30 = vld [vmem:[%s5435_s3 + $0x660] sm:$0xff]  ;;  %v1089_v40 = vld [vmem:[%s5435_s3 + $0x750] sm:$0xff] }
  0xdc   :  { %2428 = vmatprep.subr.mxu1 %v817_v6  ;;  %2394 = vmatpush3.msra.mxu0 %v662_v61  ;;  %v1091_v63 = vld [vmem:[%s5435_s3 + $0x760] sm:$0xff]  ;;  %v967_v6 = vld [vmem:[%s5435_s3 + $0x6d8] sm:$0xff]  ;;  %v965_v62 = vld [vmem:[%s5435_s3 + $0x6c8] sm:$0xff] }
  0xdd   :  { %2429 = vmatpush3.msra.mxu1 %v801_v41  ;;  %759 = vmatmul.mubr.f32.vlgmr.msra.gmra.mxu0 %v659_v42  ;;  %v1106_v61 = vld [vmem:[%s5435_s3 + $0x7d8] sm:$0xff]  ;;  %v1105_v42 = vld [vmem:[%s5435_s3 + $0x7d0] sm:$0xff]  ;;  %v1774_v23 = vld [vmem:[%s5435_s3 + $0xc00] sm:$0xff] }
  0xde   :  { %898 = vmatmul.mubr.f32.vlgmr.msra.gmra.mxu1 %v798_v60  ;;  %2433 = vmatprep.subr.mxu0 %v971_v52  ;;  %v951_v41 = vld [vmem:[%s5435_s3 + $0x658] sm:$0xff]  ;;  %v950_v52 = vld [vmem:[%s5435_s3 + $0x650] sm:$0xff]  ;;  %v2163_v60 = vld [vmem:[%s5436_s4] ss:$0 sm:$0xff] }
  0xdf   :  { %2468 = vmatprep.subr.mxu1 %v1110_v10  ;;  %2434 = vmatpush3.msra.mxu0 %v955_v1  ;;  %v1104_v10 = vld [vmem:[%s5435_s3 + $0x7c8] sm:$0xff]  ;;  %70 = vst.msk [vmem:[#allocation2] sm:$0xff] %vm69_vm4, %v2163_v60  ;;  %v1082_v60 = vld [vmem:[%s5435_s3 + $0x718] sm:$0xff]  ;;  %v1804_v8 = vld [vmem:[%s5435_s3 + $0xcf0] sm:$0xff] }
  0xe0   :  { %1036 = vmatprep.mubr.f32.mxu0 %v938_v3  ;;  %2469 = vmatpush3.msra.mxu1 %v1094_v15  ;;  %v949_v1 = vld [vmem:[%s5435_s3 + $0x648] sm:$0xff]  ;;  %v964_v3 = vld [vmem:[%s5435_s3 + $0x6c0] sm:$0xff]  ;;  %v1789_v13 = vld [vmem:[%s5435_s3 + $0xc78] sm:$0xff] }
  0xe1   :  { %1175 = vmatprep.mubr.f32.mxu1 %v1077_v59  ;;  %2435 = vmatprep.subr.mxu0 %v970_v26  ;;  %v1088_v15 = vld [vmem:[%s5435_s3 + $0x748] sm:$0xff]  ;;  %v1103_v26 = vld [vmem:[%s5435_s3 + $0x7c0] sm:$0xff]  ;;  %v2067_v0 = vld [vmem:[%s5435_s3 + $0xe78] sm:$0xff] }
  0xe2   :  { %2470 = vmatprep.subr.mxu1 %v1109_v2  ;;  %2436 = vmatpush3.msra.mxu0 %v954_v31  ;;  %v948_v59 = vld [vmem:[%s5435_s3 + $0x640] sm:$0xff]  ;;  %v963_v31 = vld [vmem:[%s5435_s3 + $0x6b8] sm:$0xff] }
  0xe3   :  { %2471 = vmatpush3.msra.mxu1 %v1093_v9  ;;  %2437 = vmatprep.subr.mxu0 %v969_v4  ;;  %v1087_v2 = vld [vmem:[%s5435_s3 + $0x740] sm:$0xff]  ;;  %v1102_v9 = vld [vmem:[%s5435_s3 + $0x7b8] sm:$0xff] }
  0xe4   :  { %2472 = vmatprep.subr.mxu1 %v1108_v18  ;;  %2438 = vmatpush3.msra.mxu0 %v953_v47  ;;  %v947_v4 = vld [vmem:[%s5435_s3 + $0x638] sm:$0xff]  ;;  %v962_v47 = vld [vmem:[%s5435_s3 + $0x6b0] sm:$0xff] }
  0xe5   :  { %2473 = vmatpush3.msra.mxu1 %v1092_v25  ;;  %2439 = vmatprep.subr.mxu0 %v968_v33  ;;  %v1086_v18 = vld [vmem:[%s5435_s3 + $0x738] sm:$0xff]  ;;  %v1101_v25 = vld [vmem:[%s5435_s3 + $0x7b0] sm:$0xff] }
  0xe6   :  { %2474 = vmatprep.subr.mxu1 %v1107_v27  ;;  %2440 = vmatpush3.msra.mxu0 %v952_v30  ;;  %v946_v33 = vld [vmem:[%s5435_s3 + $0x630] sm:$0xff]  ;;  %v961_v30 = vld [vmem:[%s5435_s3 + $0x6a8] sm:$0xff] }
  0xe7   :  { %2475 = vmatpush3.msra.mxu1 %v1091_v63  ;;  %2441 = vmatprep.subr.mxu0 %v967_v6  ;;  %v1085_v27 = vld [vmem:[%s5435_s3 + $0x730] sm:$0xff]  ;;  %v1100_v63 = vld [vmem:[%s5435_s3 + $0x7a8] sm:$0xff] }
  0xe8   :  { %2476 = vmatprep.subr.mxu1 %v1106_v61  ;;  %2442 = vmatpush3.msra.mxu0 %v951_v41  ;;  %v945_v6 = vld [vmem:[%s5435_s3 + $0x628] sm:$0xff]  ;;  %v960_v41 = vld [vmem:[%s5435_s3 + $0x6a0] sm:$0xff] }
  0xe9   :  { %2477 = vmatpush3.msra.mxu1 %v1090_v32  ;;  %2443 = vmatprep.subr.mxu0 %v966_v56  ;;  %v1084_v61 = vld [vmem:[%s5435_s3 + $0x728] sm:$0xff]  ;;  %v1099_v32 = vld [vmem:[%s5435_s3 + $0x7a0] sm:$0xff] }
  0xea   :  { %2478 = vmatprep.subr.mxu1 %v1105_v42  ;;  %2444 = vmatpush3.msra.mxu0 %v950_v52  ;;  %v944_v56 = vld [vmem:[%s5435_s3 + $0x620] sm:$0xff]  ;;  %v959_v52 = vld [vmem:[%s5435_s3 + $0x698] sm:$0xff] }
  0xeb   :  { %2479 = vmatpush3.msra.mxu1 %v1089_v40  ;;  %2445 = vmatprep.subr.mxu0 %v965_v62  ;;  %v1083_v42 = vld [vmem:[%s5435_s3 + $0x720] sm:$0xff]  ;;  %v1098_v40 = vld [vmem:[%s5435_s3 + $0x798] sm:$0xff] }
  0xec   :  { %2480 = vmatprep.subr.mxu1 %v1104_v10  ;;  %2446 = vmatpush3.msra.mxu0 %v949_v1  ;;  %v943_v62 = vld [vmem:[%s5435_s3 + $0x618] sm:$0xff]  ;;  %v958_v10 = vld [vmem:[%s5435_s3 + $0x690] sm:$0xff] }
  0xed   :  { %2481 = vmatpush3.msra.mxu1 %v1088_v15  ;;  %2447 = vmatprep.subr.mxu0 %v964_v3  ;;  %v1097_v1 = vld [vmem:[%s5435_s3 + $0x790] sm:$0xff] }
  0xee   :  { %2482 = vmatprep.subr.mxu1 %v1103_v26  ;;  %2448 = vmatpush3.msra.mxu0 %v948_v59  ;;  %v942_v15 = vld [vmem:[%s5435_s3 + $0x610] sm:$0xff]  ;;  %v957_v26 = vld [vmem:[%s5435_s3 + $0x688] sm:$0xff]  ;;  %v5612_v59 = vmax.f32 %v3846_v12, %v3852_v54  ;;  %v956_v54 = vld [vmem:[%s5435_s3 + $0x680] sm:$0xff] }
  0xef   :  { %2483 = vmatpush3.msra.mxu1 %v1087_v2  ;;  %2449 = vmatprep.subr.mxu0 %v963_v31  ;;  %v1081_v3 = vld [vmem:[%s5435_s3 + $0x710] sm:$0xff]  ;;  %v1096_v31 = vld [vmem:[%s5435_s3 + $0x788] sm:$0xff] }
  0xf0   :  { %2484 = vmatprep.subr.mxu1 %v1102_v9  ;;  %2450 = vmatpush3.msra.mxu0 %v947_v4  ;;  %v935_v2 = vadd.f32 %v934_v5, %v5612_v59  ;;  %v941_v9 = vld [vmem:[%s5435_s3 + $0x608] sm:$0xff]  ;;  %v1212_v4 = vstv %s4577_s13  ;;  %v1351_v5 = vstv %s4585_s29  ;;  %v1245_v59 = vld [vmem:[%s5435_s3 + $0x8d8] sm:$0xff]  ;;  %s5225_s29 = sld [smem:[#allocation3 + $0x3b]] }
  0xf1   :  { %2485 = vmatpush3.msra.mxu1 %v1086_v18  ;;  %2451 = vmatprep.subr.mxu0 %v962_v47  ;;  %v5613_v18 = vmax.f32 %v3912_v37, %v3900_v7  ;;  %v1080_v12 = vld [vmem:[%s5435_s3 + $0x708] sm:$0xff]  ;;  %v1095_v7 = vld [vmem:[%s5435_s3 + $0x780] sm:$0xff] }
  0xf2   :  { %2486 = vmatprep.subr.mxu1 %v1101_v25  ;;  %2452 = vmatpush3.msra.mxu0 %v946_v33  ;;  %v940_v37 = vld [vmem:[%s5435_s3 + $0x600] sm:$0xff]  ;;  %v5614_v25 = vmax.f32 %v3985_v22, %v3988_v49  ;;  %v1388_v22 = vld [vmem:[%s5435_s3 + $0x9f8] sm:$0xff] }
  0xf3   :  { %2487 = vmatpush3.msra.mxu1 %v1085_v27  ;;  %2453 = vmatprep.subr.mxu0 %v961_v30  ;;  %v1074_v47 = vadd.f32 %v1073_v14, %v5613_v18  ;;  %v1079_v14 = vld [vmem:[%s5435_s3 + $0x700] sm:$0xff]  ;;  %v937_v27 = vmax.f32 %v935_v2, 0.0  ;;  %v1249_v30 = vld [vmem:[%s5435_s3 + $0x8f8] sm:$0xff]  ;;  %v1244_v18 = vld [vmem:[%s5435_s3 + $0x8d0] sm:$0xff] }
  0xf4   :  { %2488 = vmatprep.subr.mxu1 %v1100_v63  ;;  %2454 = vmatpush3.msra.mxu0 %v945_v6  ;;  %v1214_v33 = vadd.f32 %v1212_v4, %v5614_v25  ;;  %v5615_v63 = vmax.f32 %v4051_v55, %v4054_v29  ;;  %v1233_v49 = vld [vmem:[%s5435_s3 + $0x878] sm:$0xff]  ;;  %v1248_v55 = vld [vmem:[%s5435_s3 + $0x8f0] sm:$0xff]  ;;  %v1366_v25 = vld [vmem:[%s5435_s3 + $0x948] sm:$0xff] }
  0xf5   :  { %2489 = vmatpush3.msra.mxu1 %v1084_v61  ;;  %2455 = vmatprep.subr.mxu0 %v960_v41  ;;  %v1076_v61 = vmax.f32 %v1074_v47, 0.0  ;;  %v1372_v41 = vld [vmem:[%s5435_s3 + $0x978] sm:$0xff]  ;;  %v1383_v47 = vld [vmem:[%s5435_s3 + $0x9d0] sm:$0xff] }
  0xf6   :  { %2490 = vmatprep.subr.mxu1 %v1099_v32  ;;  %2456 = vmatpush3.msra.mxu0 %v944_v56  ;;  %v1353_v6 = vadd.f32 %v1351_v5, %v5615_v63  ;;  %v1216_v29 = vmax.f32 %v1214_v33, 0.0  ;;  %v1387_v56 = vld [vmem:[%s5435_s3 + $0x9f0] sm:$0xff]  ;;  %v1384_v2 = vld [vmem:[%s5435_s3 + $0x9d8] sm:$0xff]  ;;  %v1242_v33 = vld [vmem:[%s5435_s3 + $0x8c0] sm:$0xff] }
  0xf7   :  { %2491 = vmatpush3.msra.mxu1 %v1083_v42  ;;  %2457 = vmatprep.subr.mxu0 %v959_v52  ;;  %v1232_v42 = vld [vmem:[%s5435_s3 + $0x870] sm:$0xff]  ;;  %v1365_v63 = vld [vmem:[%s5435_s3 + $0x940] sm:$0xff] }
  0xf8   :  { %2492 = vmatprep.subr.mxu1 %v1098_v40  ;;  %2458 = vmatpush3.msra.mxu0 %v943_v62  ;;  %v1355_v32 = vmax.f32 %v1353_v6, 0.0  ;;  %v1371_v52 = vld [vmem:[%s5435_s3 + $0x970] sm:$0xff]  ;;  %v1247_v40 = vld [vmem:[%s5435_s3 + $0x8e8] sm:$0xff]  ;;  %v1241_v6 = vld [vmem:[%s5435_s3 + $0x8b8] sm:$0xff] }
  0xf9   :  { %2493 = vmatpush3.msra.mxu1 %v1082_v60  ;;  %2459 = vmatprep.subr.mxu0 %v958_v10  ;;  %v1386_v62 = vld [vmem:[%s5435_s3 + $0x9e8] sm:$0xff] }
  0xfa   :  { %2494 = vmatprep.subr.mxu1 %v1097_v1  ;;  %2460 = vmatpush3.msra.mxu0 %v942_v15  ;;  %v1231_v60 = vld [vmem:[%s5435_s3 + $0x868] sm:$0xff]  ;;  %v1246_v1 = vld [vmem:[%s5435_s3 + $0x8e0] sm:$0xff] }
  0xfb   :  { %2495 = vmatpush3.msra.mxu1 %v1081_v3  ;;  %2461 = vmatprep.subr.mxu0 %v957_v26  ;;  %v1370_v10 = vld [vmem:[%s5435_s3 + $0x968] sm:$0xff]  ;;  %v1385_v15 = vld [vmem:[%s5435_s3 + $0x9e0] sm:$0xff] }
  0xfc   :  { %2496 = vmatprep.subr.mxu1 %v1096_v31  ;;  %2462 = vmatpush3.msra.mxu0 %v941_v9  ;;  %v1230_v3 = vld [vmem:[%s5435_s3 + $0x860] sm:$0xff]  ;;  %v1229_v31 = vld [vmem:[%s5435_s3 + $0x858] sm:$0xff] }
  0xfd   :  { %2497 = vmatpush3.msra.mxu1 %v1080_v12  ;;  %2463 = vmatprep.subr.mxu0 %v956_v54  ;;  %v1369_v26 = vld [vmem:[%s5435_s3 + $0x960] sm:$0xff]  ;;  %v1368_v9 = vld [vmem:[%s5435_s3 + $0x958] sm:$0xff]  ;;  %v1228_v12 = vld [vmem:[%s5435_s3 + $0x850] sm:$0xff] }
  0xfe   :  { %2498 = vmatprep.subr.mxu1 %v1095_v7  ;;  %2464 = vmatpush3.msra.mxu0 %v940_v37  ;;  %v1367_v54 = vld [vmem:[%s5435_s3 + $0x950] sm:$0xff]  ;;  %v1243_v7 = vld [vmem:[%s5435_s3 + $0x8c8] sm:$0xff] }
  0xff   :  { %2499 = vmatpush3.msra.mxu1 %v1079_v14  ;;  %1037 = vmatmul.mubr.f32.vlgmr.msra.gmra.mxu0 %v937_v27  ;;  %v1382_v37 = vld [vmem:[%s5435_s3 + $0x9c8] sm:$0xff]  ;;  %v1381_v27 = vld [vmem:[%s5435_s3 + $0x9c0] sm:$0xff] }
 0x100   :  { %1176 = vmatmul.mubr.f32.vlgmr.msra.gmra.mxu1 %v1076_v61  ;;  %2503 = vmatprep.subr.mxu0 %v1249_v30  ;;  %v1227_v14 = vld [vmem:[%s5435_s3 + $0x848] sm:$0xff]  ;;  %v1226_v30 = vld [vmem:[%s5435_s3 + $0x840] sm:$0xff]  ;;  %v1380_v61 = vld [vmem:[%s5435_s3 + $0x9b8] sm:$0xff] }
 0x101   :  { %2538 = vmatprep.subr.mxu1 %v1388_v22  ;;  %2504 = vmatpush3.msra.mxu0 %v1233_v49  ;;  %v1225_v22 = vld [vmem:[%s5435_s3 + $0x838] sm:$0xff] }
 0x102   :  { %1314 = vmatprep.mubr.f32.mxu0 %v1216_v29  ;;  %2539 = vmatpush3.msra.mxu1 %v1372_v41  ;;  %v1364_v49 = vld [vmem:[%s5435_s3 + $0x938] sm:$0xff]  ;;  %v1240_v41 = vld [vmem:[%s5435_s3 + $0x8b0] sm:$0xff] }
 0x103   :  { %1453 = vmatprep.mubr.f32.mxu1 %v1355_v32  ;;  %2505 = vmatprep.subr.mxu0 %v1248_v55  ;;  %v1379_v29 = vld [vmem:[%s5435_s3 + $0x9b0] sm:$0xff] }
 0x104   :  { %2540 = vmatprep.subr.mxu1 %v1387_v56  ;;  %2506 = vmatpush3.msra.mxu0 %v1232_v42  ;;  %v1224_v55 = vld [vmem:[%s5435_s3 + $0x830] sm:$0xff]  ;;  %v1239_v56 = vld [vmem:[%s5435_s3 + $0x8a8] sm:$0xff] }
 0x105   :  { %2541 = vmatpush3.msra.mxu1 %v1371_v52  ;;  %2507 = vmatprep.subr.mxu0 %v1247_v40  ;;  %v1363_v32 = vld [vmem:[%s5435_s3 + $0x930] sm:$0xff]  ;;  %v1378_v42 = vld [vmem:[%s5435_s3 + $0x9a8] sm:$0xff] }
 0x106   :  { %2542 = vmatprep.subr.mxu1 %v1386_v62  ;;  %2508 = vmatpush3.msra.mxu0 %v1231_v60  ;;  %v1223_v52 = vld [vmem:[%s5435_s3 + $0x828] sm:$0xff]  ;;  %v1238_v62 = vld [vmem:[%s5435_s3 + $0x8a0] sm:$0xff] }
 0x107   :  { %2543 = vmatpush3.msra.mxu1 %v1370_v10  ;;  %2509 = vmatprep.subr.mxu0 %v1246_v1  ;;  %v1362_v40 = vld [vmem:[%s5435_s3 + $0x928] sm:$0xff]  ;;  %v1377_v60 = vld [vmem:[%s5435_s3 + $0x9a0] sm:$0xff] }
 0x108   :  { %2544 = vmatprep.subr.mxu1 %v1385_v15  ;;  %2510 = vmatpush3.msra.mxu0 %v1230_v3  ;;  %v1222_v10 = vld [vmem:[%s5435_s3 + $0x820] sm:$0xff]  ;;  %v1237_v15 = vld [vmem:[%s5435_s3 + $0x898] sm:$0xff] }
 0x109   :  { %2545 = vmatpush3.msra.mxu1 %v1369_v26  ;;  %2511 = vmatprep.subr.mxu0 %v1245_v59  ;;  %v1361_v1 = vld [vmem:[%s5435_s3 + $0x920] sm:$0xff]  ;;  %v1376_v3 = vld [vmem:[%s5435_s3 + $0x998] sm:$0xff] }
 0x10a   :  { %2546 = vmatprep.subr.mxu1 %v1384_v2  ;;  %2512 = vmatpush3.msra.mxu0 %v1229_v31  ;;  %v1221_v26 = vld [vmem:[%s5435_s3 + $0x818] sm:$0xff]  ;;  %v1236_v2 = vld [vmem:[%s5435_s3 + $0x890] sm:$0xff] }
 0x10b   :  { %2547 = vmatpush3.msra.mxu1 %v1368_v9  ;;  %2513 = vmatprep.subr.mxu0 %v1244_v18  ;;  %v1360_v59 = vld [vmem:[%s5435_s3 + $0x918] sm:$0xff]  ;;  %v1375_v31 = vld [vmem:[%s5435_s3 + $0x990] sm:$0xff] }
 0x10c   :  { %2548 = vmatprep.subr.mxu1 %v1383_v47  ;;  %2514 = vmatpush3.msra.mxu0 %v1228_v12  ;;  %v1220_v9 = vld [vmem:[%s5435_s3 + $0x810] sm:$0xff]  ;;  %v1235_v47 = vld [vmem:[%s5435_s3 + $0x888] sm:$0xff]  ;;  %v5616_v12 = vmax.f32 %v3972_v46, %v3975_v58  ;;  %v1234_v58 = vld [vmem:[%s5435_s3 + $0x880] sm:$0xff] }
 0x10d   :  { %2549 = vmatpush3.msra.mxu1 %v1367_v54  ;;  %2515 = vmatprep.subr.mxu0 %v1243_v7  ;;  %v1359_v18 = vld [vmem:[%s5435_s3 + $0x910] sm:$0xff]  ;;  %v1374_v7 = vld [vmem:[%s5435_s3 + $0x988] sm:$0xff] }
 0x10e   :  { %2550 = vmatprep.subr.mxu1 %v1382_v37  ;;  %2516 = vmatpush3.msra.mxu0 %v1227_v14  ;;  %v1213_v54 = vadd.f32 %v1212_v4, %v5616_v12  ;;  %v1219_v37 = vld [vmem:[%s5435_s3 + $0x808] sm:$0xff]  ;;  %v1490_v14 = vstv %s4795_s27  ;;  %v1629_v4 = vstv %s4803_s14 }
 0x10f   :  { %2551 = vmatpush3.msra.mxu1 %v1366_v25  ;;  %2517 = vmatprep.subr.mxu0 %v1242_v33  ;;  %v5617_v25 = vmax.f32 %v4042_v44, %v4045_v38  ;;  %v1358_v46 = vld [vmem:[%s5435_s3 + $0x908] sm:$0xff]  ;;  %v1373_v44 = vld [vmem:[%s5435_s3 + $0x980] sm:$0xff] }
 0x110   :  { %2552 = vmatprep.subr.mxu1 %v1381_v27  ;;  %2518 = vmatpush3.msra.mxu0 %v1226_v30  ;;  %v1218_v38 = vld [vmem:[%s5435_s3 + $0x800] sm:$0xff]  ;;  %v5618_v27 = vmax.f32 %v4118_v21, %v4109_v11  ;;  %v1666_v11 = vld [vmem:[%s5435_s3 + $0xbf8] sm:$0xff]  ;;  %v1521_v12 = vld [vmem:[%s5435_s3 + $0xac8] sm:$0xff] }
 0x111   :  { %2553 = vmatpush3.msra.mxu1 %v1365_v63  ;;  %2519 = vmatprep.subr.mxu0 %v1241_v6  ;;  %v1352_v33 = vadd.f32 %v1351_v5, %v5617_v25  ;;  %v1357_v5 = vld [vmem:[%s5435_s3 + $0x900] sm:$0xff]  ;;  %v1215_v63 = vmax.f32 %v1213_v54, 0.0  ;;  %v1527_v6 = vld [vmem:[%s5435_s3 + $0xaf8] sm:$0xff]  ;;  %v1660_v54 = vld [vmem:[%s5435_s3 + $0xbc8] sm:$0xff] }
 0x112   :  { %2554 = vmatprep.subr.mxu1 %v1380_v61  ;;  %2520 = vmatpush3.msra.mxu0 %v1225_v22  ;;  %v1492_v30 = vadd.f32 %v1490_v14, %v5618_v27  ;;  %v5619_v61 = vmax.f32 %v4177_v34, %v4153_v43  ;;  %v1511_v21 = vld [vmem:[%s5435_s3 + $0xa78] sm:$0xff]  ;;  %v1526_v34 = vld [vmem:[%s5435_s3 + $0xaf0] sm:$0xff]  ;;  %v1520_v25 = vld [vmem:[%s5435_s3 + $0xac0] sm:$0xff] }
 0x113   :  { %2555 = vmatpush3.msra.mxu1 %v1364_v49  ;;  %2521 = vmatprep.subr.mxu0 %v1240_v41  ;;  %v1354_v49 = vmax.f32 %v1352_v33, 0.0  ;;  %v1650_v41 = vld [vmem:[%s5435_s3 + $0xb78] sm:$0xff]  ;;  %v1659_v33 = vld [vmem:[%s5435_s3 + $0xbc0] sm:$0xff] }
 0x114   :  { %2556 = vmatprep.subr.mxu1 %v1379_v29  ;;  %2522 = vmatpush3.msra.mxu0 %v1224_v55  ;;  %v1631_v22 = vadd.f32 %v1629_v4, %v5619_v61  ;;  %v1494_v43 = vmax.f32 %v1492_v30, 0.0  ;;  %v1665_v55 = vld [vmem:[%s5435_s3 + $0xbf0] sm:$0xff]  ;;  %v1642_v27 = vld [vmem:[%s5435_s3 + $0xb38] sm:$0xff] }
 0x115   :  { %2557 = vmatpush3.msra.mxu1 %v1363_v32  ;;  %2523 = vmatprep.subr.mxu0 %v1239_v56  ;;  %v1510_v32 = vld [vmem:[%s5435_s3 + $0xa70] sm:$0xff] }
 0x116   :  { %2558 = vmatprep.subr.mxu1 %v1378_v42  ;;  %2524 = vmatpush3.msra.mxu0 %v1223_v52  ;;  %v1633_v29 = vmax.f32 %v1631_v22, 0.0  ;;  %v1649_v56 = vld [vmem:[%s5435_s3 + $0xb70] sm:$0xff]  ;;  %v1525_v42 = vld [vmem:[%s5435_s3 + $0xae8] sm:$0xff] }
 0x117   :  { %2559 = vmatpush3.msra.mxu1 %v1362_v40  ;;  %2525 = vmatprep.subr.mxu0 %v1238_v62  ;;  %v1664_v52 = vld [vmem:[%s5435_s3 + $0xbe8] sm:$0xff]  ;;  %v1518_v30 = vld [vmem:[%s5435_s3 + $0xab0] sm:$0xff] }
 0x118   :  { %2560 = vmatprep.subr.mxu1 %v1377_v60  ;;  %2526 = vmatpush3.msra.mxu0 %v1222_v10  ;;  %v1509_v40 = vld [vmem:[%s5435_s3 + $0xa68] sm:$0xff]  ;;  %v1524_v60 = vld [vmem:[%s5435_s3 + $0xae0] sm:$0xff]  ;;  %v1641_v61 = vld [vmem:[%s5435_s3 + $0xb30] sm:$0xff] }
 0x119   :  { %2561 = vmatpush3.msra.mxu1 %v1361_v1  ;;  %2527 = vmatprep.subr.mxu0 %v1237_v15  ;;  %v1648_v62 = vld [vmem:[%s5435_s3 + $0xb68] sm:$0xff]  ;;  %v1663_v10 = vld [vmem:[%s5435_s3 + $0xbe0] sm:$0xff] }
 0x11a   :  { %2562 = vmatprep.subr.mxu1 %v1376_v3  ;;  %2528 = vmatpush3.msra.mxu0 %v1221_v26  ;;  %v1508_v1 = vld [vmem:[%s5435_s3 + $0xa60] sm:$0xff]  ;;  %v1523_v3 = vld [vmem:[%s5435_s3 + $0xad8] sm:$0xff]  ;;  %v1517_v22 = vld [vmem:[%s5435_s3 + $0xaa8] sm:$0xff] }
 0x11b   :  { %2563 = vmatpush3.msra.mxu1 %v1360_v59  ;;  %2529 = vmatprep.subr.mxu0 %v1236_v2  ;;  %v1647_v15 = vld [vmem:[%s5435_s3 + $0xb60] sm:$0xff]  ;;  %v1662_v26 = vld [vmem:[%s5435_s3 + $0xbd8] sm:$0xff] }
 0x11c   :  { %2564 = vmatprep.subr.mxu1 %v1375_v31  ;;  %2530 = vmatpush3.msra.mxu0 %v1220_v9  ;;  %v1507_v59 = vld [vmem:[%s5435_s3 + $0xa58] sm:$0xff]  ;;  %v1522_v31 = vld [vmem:[%s5435_s3 + $0xad0] sm:$0xff] }
 0x11d   :  { %2565 = vmatpush3.msra.mxu1 %v1359_v18  ;;  %2531 = vmatprep.subr.mxu0 %v1235_v47  ;;  %v1646_v2 = vld [vmem:[%s5435_s3 + $0xb58] sm:$0xff]  ;;  %v1661_v9 = vld [vmem:[%s5435_s3 + $0xbd0] sm:$0xff] }
 0x11e   :  { %2566 = vmatprep.subr.mxu1 %v1374_v7  ;;  %2532 = vmatpush3.msra.mxu0 %v1219_v37  ;;  %v1506_v18 = vld [vmem:[%s5435_s3 + $0xa50] sm:$0xff]  ;;  %v1505_v7 = vld [vmem:[%s5435_s3 + $0xa48] sm:$0xff] }
 0x11f   :  { %2567 = vmatpush3.msra.mxu1 %v1358_v46  ;;  %2533 = vmatprep.subr.mxu0 %v1234_v58  ;;  %v1645_v47 = vld [vmem:[%s5435_s3 + $0xb50] sm:$0xff]  ;;  %v1644_v37 = vld [vmem:[%s5435_s3 + $0xb48] sm:$0xff]  ;;  %v1504_v46 = vld [vmem:[%s5435_s3 + $0xa40] sm:$0xff] }
 0x120   :  { %2568 = vmatprep.subr.mxu1 %v1373_v44  ;;  %2534 = vmatpush3.msra.mxu0 %v1218_v38  ;;  %v1643_v58 = vld [vmem:[%s5435_s3 + $0xb40] sm:$0xff]  ;;  %v1519_v44 = vld [vmem:[%s5435_s3 + $0xab8] sm:$0xff] }
 0x121   :  { %2569 = vmatpush3.msra.mxu1 %v1357_v5  ;;  %1315 = vmatmul.mubr.f32.vlgmr.msra.gmra.mxu0 %v1215_v63  ;;  %v1658_v38 = vld [vmem:[%s5435_s3 + $0xbb8] sm:$0xff]  ;;  %v1657_v63 = vld [vmem:[%s5435_s3 + $0xbb0] sm:$0xff] }
 0x122   :  { %1454 = vmatmul.mubr.f32.vlgmr.msra.gmra.mxu1 %v1354_v49  ;;  %2573 = vmatprep.subr.mxu0 %v1527_v6  ;;  %v1503_v5 = vld [vmem:[%s5435_s3 + $0xa38] sm:$0xff]  ;;  %v1502_v6 = vld [vmem:[%s5435_s3 + $0xa30] sm:$0xff]  ;;  %v1656_v49 = vld [vmem:[%s5435_s3 + $0xba8] sm:$0xff] }
 0x123   :  { %2608 = vmatprep.subr.mxu1 %v1666_v11  ;;  %2574 = vmatpush3.msra.mxu0 %v1511_v21  ;;  %v1501_v11 = vld [vmem:[%s5435_s3 + $0xa28] sm:$0xff] }
 0x124   :  { %1592 = vmatprep.mubr.f32.mxu0 %v1494_v43  ;;  %2609 = vmatpush3.msra.mxu1 %v1650_v41  ;;  %v1640_v21 = vld [vmem:[%s5435_s3 + $0xb28] sm:$0xff]  ;;  %v1516_v41 = vld [vmem:[%s5435_s3 + $0xaa0] sm:$0xff] }
 0x125   :  { %1731 = vmatprep.mubr.f32.mxu1 %v1633_v29  ;;  %2575 = vmatprep.subr.mxu0 %v1526_v34  ;;  %v1655_v43 = vld [vmem:[%s5435_s3 + $0xba0] sm:$0xff] }
 0x126   :  { %2610 = vmatprep.subr.mxu1 %v1665_v55  ;;  %2576 = vmatpush3.msra.mxu0 %v1510_v32  ;;  %v1500_v34 = vld [vmem:[%s5435_s3 + $0xa20] sm:$0xff]  ;;  %v1515_v55 = vld [vmem:[%s5435_s3 + $0xa98] sm:$0xff] }
 0x127   :  { %2611 = vmatpush3.msra.mxu1 %v1649_v56  ;;  %2577 = vmatprep.subr.mxu0 %v1525_v42  ;;  %v1639_v29 = vld [vmem:[%s5435_s3 + $0xb20] sm:$0xff]  ;;  %v1654_v32 = vld [vmem:[%s5435_s3 + $0xb98] sm:$0xff] }
 0x128   :  { %2612 = vmatprep.subr.mxu1 %v1664_v52  ;;  %2578 = vmatpush3.msra.mxu0 %v1509_v40  ;;  %v1499_v56 = vld [vmem:[%s5435_s3 + $0xa18] sm:$0xff]  ;;  %v1514_v52 = vld [vmem:[%s5435_s3 + $0xa90] sm:$0xff] }
 0x129   :  { %2613 = vmatpush3.msra.mxu1 %v1648_v62  ;;  %2579 = vmatprep.subr.mxu0 %v1524_v60  ;;  %v1638_v42 = vld [vmem:[%s5435_s3 + $0xb18] sm:$0xff]  ;;  %v1653_v40 = vld [vmem:[%s5435_s3 + $0xb90] sm:$0xff] }
 0x12a   :  { %2614 = vmatprep.subr.mxu1 %v1663_v10  ;;  %2580 = vmatpush3.msra.mxu0 %v1508_v1  ;;  %v1498_v62 = vld [vmem:[%s5435_s3 + $0xa10] sm:$0xff]  ;;  %v1513_v10 = vld [vmem:[%s5435_s3 + $0xa88] sm:$0xff] }
 0x12b   :  { %2615 = vmatpush3.msra.mxu1 %v1647_v15  ;;  %2581 = vmatprep.subr.mxu0 %v1523_v3  ;;  %v1637_v60 = vld [vmem:[%s5435_s3 + $0xb10] sm:$0xff] }
 0x12c   :  { %2616 = vmatprep.subr.mxu1 %v1662_v26  ;;  %2582 = vmatpush3.msra.mxu0 %v1507_v59  ;;  %v5620_v1 = vld [vmem:[#allocation27_spill] sm:$0xff]  ;;  %v1652_v26 = vld [vmem:[%s5435_s3 + $0xb88] sm:$0xff] }
 0x12d   :  { %2617 = vmatpush3.msra.mxu1 %v1646_v2  ;;  %2583 = vmatprep.subr.mxu0 %v1522_v31  ;;  %v5621_v15 = vmax.f32 %v4103_v39, %v5620_v1  ;;  %v1497_v59 = vld [vmem:[%s5435_s3 + $0xa08] sm:$0xff]  ;;  %v1768_v2 = vstv %s5013_s21  ;;  %v5622_v31 = vld [vmem:[#allocation32_spill] sm:$0xff]  ;;  %v1782_v1 = vld [vmem:[%s5435_s3 + $0xc40] sm:$0xff] }
 0x12e   :  { %2618 = vmatprep.subr.mxu1 %v1661_v9  ;;  %2584 = vmatpush3.msra.mxu0 %v1506_v18  ;;  %v5623_v9 = vld [vmem:[#allocation33_spill] sm:$0xff]  ;;  %v1636_v39 = vld [vmem:[%s5435_s3 + $0xb08] sm:$0xff] }
 0x12f   :  { %2619 = vmatpush3.msra.mxu1 %v1645_v47  ;;  %2585 = vmatprep.subr.mxu0 %v1521_v12  ;;  %v1491_v3 = vadd.f32 %v1490_v14, %v5621_v15  ;;  %v5624_v18 = vmax.f32 %v5622_v31, %v5623_v9  ;;  %v1512_v14 = vld [vmem:[%s5435_s3 + $0xa80] sm:$0xff]  ;;  %v1907_v12 = vstv %s5021_s6  ;;  %v1920_v31 = vld [vmem:[%s5435_s3 + $0xd38] sm:$0xff]  ;;  %v1796_v9 = vld [vmem:[%s5435_s3 + $0xcb0] sm:$0xff] }
 0x130   :  { %2620 = vmatprep.subr.mxu1 %v1660_v54  ;;  %2586 = vmatpush3.msra.mxu0 %v1505_v7  ;;  %v1651_v54 = vld [vmem:[%s5435_s3 + $0xb80] sm:$0xff] }
 0x131   :  { %2621 = vmatpush3.msra.mxu1 %v1644_v37  ;;  %2587 = vmatprep.subr.mxu0 %v1520_v25  ;;  %v1630_v47 = vadd.f32 %v1629_v4, %v5624_v18  ;;  %v1496_v4 = vld [vmem:[%s5435_s3 + $0xa00] sm:$0xff]  ;;  %v1770_v37 = vadd.f32 %v1768_v2, %v1767_v19  ;;  %v1493_v25 = vmax.f32 %v1491_v3, 0.0  ;;  %v1928_v19 = vld [vmem:[%s5435_s3 + $0xd78] sm:$0xff]  ;;  %v1935_v18 = vld [vmem:[%s5435_s3 + $0xdb0] sm:$0xff] }
 0x132   :  { %2622 = vmatprep.subr.mxu1 %v1659_v33  ;;  %2588 = vmatpush3.msra.mxu0 %v1504_v46  ;;  %v1635_v7 = vld [vmem:[%s5435_s3 + $0xb00] sm:$0xff]  ;;  %v1805_v33 = vld [vmem:[%s5435_s3 + $0xcf8] sm:$0xff]  ;;  %v1909_v46 = vadd.f32 %v1907_v12, %v1906_v17 }
 0x133   :  { %2623 = vmatpush3.msra.mxu1 %v1643_v58  ;;  %2589 = vmatprep.subr.mxu0 %v1519_v44  ;;  %v1632_v58 = vmax.f32 %v1630_v47, 0.0  ;;  %v1772_v57 = vmax.f32 %v1770_v37, 0.0  ;;  %v1943_v44 = vld [vmem:[%s5435_s3 + $0xdf0] sm:$0xff]  ;;  %v1921_v15 = vld [vmem:[%s5435_s3 + $0xd40] sm:$0xff]  ;;  %v1797_v3 = vld [vmem:[%s5435_s3 + $0xcb8] sm:$0xff] }
 0x134   :  { %2624 = vmatprep.subr.mxu1 %v1658_v38  ;;  %2590 = vmatpush3.msra.mxu0 %v1503_v5  ;;  %v1911_v17 = vmax.f32 %v1909_v46, 0.0  ;;  %v1788_v38 = vld [vmem:[%s5435_s3 + $0xc70] sm:$0xff]  ;;  %v1794_v37 = vld [vmem:[%s5435_s3 + $0xca0] sm:$0xff] }
 0x135   :  { %2625 = vmatpush3.msra.mxu1 %v1642_v27  ;;  %2591 = vmatprep.subr.mxu0 %v1518_v30  ;;  %v1927_v5 = vld [vmem:[%s5435_s3 + $0xd70] sm:$0xff]  ;;  %v1803_v27 = vld [vmem:[%s5435_s3 + $0xce8] sm:$0xff]  ;;  %v1917_v46 = vld [vmem:[%s5435_s3 + $0xd20] sm:$0xff] }
 0x136   :  { %2626 = vmatprep.subr.mxu1 %v1657_v63  ;;  %2592 = vmatpush3.msra.mxu0 %v1502_v6  ;;  %v1942_v30 = vld [vmem:[%s5435_s3 + $0xde8] sm:$0xff]  ;;  %v1780_v47 = vld [vmem:[%s5435_s3 + $0xc30] sm:$0xff] }
 0x137   :  { %2627 = vmatpush3.msra.mxu1 %v1641_v61  ;;  %2593 = vmatprep.subr.mxu0 %v1517_v22  ;;  %v1787_v63 = vld [vmem:[%s5435_s3 + $0xc68] sm:$0xff]  ;;  %v1802_v61 = vld [vmem:[%s5435_s3 + $0xce0] sm:$0xff] }
 0x138   :  { %2628 = vmatprep.subr.mxu1 %v1656_v49  ;;  %2594 = vmatpush3.msra.mxu0 %v1501_v11  ;;  %v1926_v6 = vld [vmem:[%s5435_s3 + $0xd68] sm:$0xff]  ;;  %v1941_v22 = vld [vmem:[%s5435_s3 + $0xde0] sm:$0xff] }
 0x139   :  { %2629 = vmatpush3.msra.mxu1 %v1640_v21  ;;  %2595 = vmatprep.subr.mxu0 %v1516_v41  ;;  %v1786_v49 = vld [vmem:[%s5435_s3 + $0xc60] sm:$0xff]  ;;  %v1801_v21 = vld [vmem:[%s5435_s3 + $0xcd8] sm:$0xff] }
 0x13a   :  { %2630 = vmatprep.subr.mxu1 %v1655_v43  ;;  %2596 = vmatpush3.msra.mxu0 %v1500_v34  ;;  %v1925_v11 = vld [vmem:[%s5435_s3 + $0xd60] sm:$0xff]  ;;  %v1940_v41 = vld [vmem:[%s5435_s3 + $0xdd8] sm:$0xff] }
 0x13b   :  { %2631 = vmatpush3.msra.mxu1 %v1639_v29  ;;  %2597 = vmatprep.subr.mxu0 %v1515_v55  ;;  %v1785_v43 = vld [vmem:[%s5435_s3 + $0xc58] sm:$0xff]  ;;  %v1800_v29 = vld [vmem:[%s5435_s3 + $0xcd0] sm:$0xff] }
 0x13c   :  { %2632 = vmatprep.subr.mxu1 %v1654_v32  ;;  %2598 = vmatpush3.msra.mxu0 %v1499_v56  ;;  %v1924_v34 = vld [vmem:[%s5435_s3 + $0xd58] sm:$0xff]  ;;  %v1939_v55 = vld [vmem:[%s5435_s3 + $0xdd0] sm:$0xff] }
 0x13d   :  { %2633 = vmatpush3.msra.mxu1 %v1638_v42  ;;  %2599 = vmatprep.subr.mxu0 %v1514_v52  ;;  %v1784_v32 = vld [vmem:[%s5435_s3 + $0xc50] sm:$0xff]  ;;  %v1799_v42 = vld [vmem:[%s5435_s3 + $0xcc8] sm:$0xff] }
 0x13e   :  { %2634 = vmatprep.subr.mxu1 %v1653_v40  ;;  %2600 = vmatpush3.msra.mxu0 %v1498_v62  ;;  %v1923_v56 = vld [vmem:[%s5435_s3 + $0xd50] sm:$0xff]  ;;  %v1938_v52 = vld [vmem:[%s5435_s3 + $0xdc8] sm:$0xff] }
 0x13f   :  { %2635 = vmatpush3.msra.mxu1 %v1637_v60  ;;  %2601 = vmatprep.subr.mxu0 %v1513_v10  ;;  %v1783_v40 = vld [vmem:[%s5435_s3 + $0xc48] sm:$0xff]  ;;  %v1798_v60 = vld [vmem:[%s5435_s3 + $0xcc0] sm:$0xff] }
 0x140   :  { %2636 = vmatprep.subr.mxu1 %v1652_v26  ;;  %2602 = vmatpush3.msra.mxu0 %v1497_v59  ;;  %v1922_v62 = vld [vmem:[%s5435_s3 + $0xd48] sm:$0xff]  ;;  %v1937_v10 = vld [vmem:[%s5435_s3 + $0xdc0] sm:$0xff]  ;;  %v1936_v26 = vld [vmem:[%s5435_s3 + $0xdb8] sm:$0xff] }
 0x141   :  { %2637 = vmatpush3.msra.mxu1 %v1636_v39  ;;  %2603 = vmatprep.subr.mxu0 %v1512_v14  ;;  %v1781_v59 = vld [vmem:[%s5435_s3 + $0xc38] sm:$0xff]  ;;  %v1919_v39 = vld [vmem:[%s5435_s3 + $0xd30] sm:$0xff]  ;;  %v1795_v14 = vld [vmem:[%s5435_s3 + $0xca8] sm:$0xff] }
 0x142   :  { %2638 = vmatprep.subr.mxu1 %v1651_v54  ;;  %2604 = vmatpush3.msra.mxu0 %v1496_v4  ;;  %v1934_v54 = vld [vmem:[%s5435_s3 + $0xda8] sm:$0xff] }
 0x143   :  { %2639 = vmatpush3.msra.mxu1 %v1635_v7  ;;  %1593 = vmatmul.mubr.f32.vlgmr.msra.gmra.mxu0 %v1493_v25  ;;  %v1779_v4 = vld [vmem:[%s5435_s3 + $0xc28] sm:$0xff]  ;;  %v1933_v25 = vld [vmem:[%s5435_s3 + $0xda0] sm:$0xff] }
 0x144   :  { %1732 = vmatmul.mubr.f32.vlgmr.msra.gmra.mxu1 %v1632_v58  ;;  %2643 = vmatprep.subr.mxu0 %v1805_v33  ;;  %v1918_v7 = vld [vmem:[%s5435_s3 + $0xd28] sm:$0xff]  ;;  %v1778_v33 = vld [vmem:[%s5435_s3 + $0xc20] sm:$0xff]  ;;  %v1793_v58 = vld [vmem:[%s5435_s3 + $0xc98] sm:$0xff] }
 0x145   :  { %2678 = vmatprep.subr.mxu1 %v1944_v28  ;;  %2644 = vmatpush3.msra.mxu0 %v1789_v13  ;;  %v1932_v13 = vld [vmem:[%s5435_s3 + $0xd98] sm:$0xff] }
 0x146   :  { %1870 = vmatprep.mubr.f32.mxu0 %v1772_v57  ;;  %2679 = vmatpush3.msra.mxu1 %v1928_v19  ;;  %v1777_v19 = vld [vmem:[%s5435_s3 + $0xc18] sm:$0xff] }
 0x147   :  { %2009 = vmatprep.mubr.f32.mxu1 %v1911_v17  ;;  %2645 = vmatprep.subr.mxu0 %v1804_v8  ;;  %v1916_v57 = vld [vmem:[%s5435_s3 + $0xd18] sm:$0xff]  ;;  %v1792_v8 = vld [vmem:[%s5435_s3 + $0xc90] sm:$0xff]  ;;  %v105_v17 = vld [vmem:[#allocation2] sm:$0xff] }
 0x148   :  { %2680 = vmatprep.subr.mxu1 %v1943_v44  ;;  %2646 = vmatpush3.msra.mxu0 %v1788_v38  ;;  %v1931_v38 = vld [vmem:[%s5435_s3 + $0xd90] sm:$0xff] }
 0x149   :  { %2681 = vmatpush3.msra.mxu1 %v1927_v5  ;;  %2647 = vmatprep.subr.mxu0 %v1803_v27  ;;  %v1776_v5 = vld [vmem:[%s5435_s3 + $0xc10] sm:$0xff] }
 0x14a   :  { %2682 = vmatprep.subr.mxu1 %v1942_v30  ;;  %2648 = vmatpush3.msra.mxu0 %v1787_v63  ;;  %v1915_v30 = vld [vmem:[%s5435_s3 + $0xd10] sm:$0xff]  ;;  %v1791_v63 = vld [vmem:[%s5435_s3 + $0xc88] sm:$0xff] }
 0x14b   :  { %2683 = vmatpush3.msra.mxu1 %v1926_v6  ;;  %2649 = vmatprep.subr.mxu0 %v1802_v61  ;;  %v2046_v6 = vstv %s5225_s29  ;;  %v1769_v61 = vadd.f32 %v1768_v2, %v1766_v35  ;;  %v1929_v2 = vld [vmem:[%s5435_s3 + $0xd80] sm:$0xff] }
 0x14c   :  { %2684 = vmatprep.subr.mxu1 %v1941_v22  ;;  %2650 = vmatpush3.msra.mxu0 %v1786_v49  ;;  %v1930_v22 = vld [vmem:[%s5435_s3 + $0xd88] sm:$0xff]  ;;  %v2048_v24 = vadd.f32 %v2046_v6, %v2045_v36 }
 0x14d   :  { %2685 = vmatpush3.msra.mxu1 %v1925_v11  ;;  %2651 = vmatprep.subr.mxu0 %v1801_v21  ;;  %v1775_v49 = vld [vmem:[%s5435_s3 + $0xc08] sm:$0xff]  ;;  %v1908_v21 = vadd.f32 %v1907_v12, %v1905_v50  ;;  %v1913_v50 = vld [vmem:[%s5435_s3 + $0xd00] sm:$0xff]  ;;  %v1771_v12 = vmax.f32 %v1769_v61, 0.0 }
 0x14e   :  { %2686 = vmatprep.subr.mxu1 %v1940_v41  ;;  %2652 = vmatpush3.msra.mxu0 %v1785_v43  ;;  %v2083_v41 = vld [vmem:[%s5435_s3 + $0xef8] sm:$0xff]  ;;  %v2050_v36 = vmax.f32 %v2048_v24, 0.0 }
 0x14f   :  { %2687 = vmatpush3.msra.mxu1 %v1924_v34  ;;  %2653 = vmatprep.subr.mxu0 %v1800_v29  ;;  %v1910_v43 = vmax.f32 %v1908_v21, 0.0  ;;  %v2082_v34 = vld [vmem:[%s5435_s3 + $0xef0] sm:$0xff] }
 0x150   :  { %2688 = vmatprep.subr.mxu1 %v1939_v55  ;;  %2654 = vmatpush3.msra.mxu0 %v1784_v32  ;;  %v2066_v29 = vld [vmem:[%s5435_s3 + $0xe70] sm:$0xff]  ;;  %v2081_v32 = vld [vmem:[%s5435_s3 + $0xee8] sm:$0xff] }
 0x151   :  { %2689 = vmatpush3.msra.mxu1 %v1923_v56  ;;  %2655 = vmatprep.subr.mxu0 %v1799_v42  ;;  %v2065_v42 = vld [vmem:[%s5435_s3 + $0xe68] sm:$0xff] }
 0x152   :  { %2690 = vmatprep.subr.mxu1 %v1938_v52  ;;  %2656 = vmatpush3.msra.mxu0 %v1783_v40  ;;  %v2080_v40 = vld [vmem:[%s5435_s3 + $0xee0] sm:$0xff] }
 0x153   :  { %2691 = vmatpush3.msra.mxu1 %v1922_v62  ;;  %2657 = vmatprep.subr.mxu0 %v1798_v60  ;;  %v2064_v62 = vld [vmem:[%s5435_s3 + $0xe60] sm:$0xff]  ;;  %v2079_v60 = vld [vmem:[%s5435_s3 + $0xed8] sm:$0xff] }
 0x154   :  { %2692 = vmatprep.subr.mxu1 %v1937_v10  ;;  %2658 = vmatpush3.msra.mxu0 %v1782_v1  ;;  %v2063_v10 = vld [vmem:[%s5435_s3 + $0xe58] sm:$0xff]  ;;  %v2078_v1 = vld [vmem:[%s5435_s3 + $0xed0] sm:$0xff] }
 0x155   :  { %2693 = vmatpush3.msra.mxu1 %v1921_v15  ;;  %2659 = vmatprep.subr.mxu0 %v1797_v3  ;;  %v2062_v15 = vld [vmem:[%s5435_s3 + $0xe50] sm:$0xff]  ;;  %v2077_v3 = vld [vmem:[%s5435_s3 + $0xec8] sm:$0xff] }
 0x156   :  { %2694 = vmatprep.subr.mxu1 %v1936_v26  ;;  %2660 = vmatpush3.msra.mxu0 %v1781_v59  ;;  %v2255_v28 = vpop.f32.mrf.mxu0  ;;  %v2061_v26 = vld [vmem:[%s5435_s3 + $0xe48] sm:$0xff]  ;;  %v2076_v59 = vld [vmem:[%s5435_s3 + $0xec0] sm:$0xff] }
 0x157   :  { %2695 = vmatpush3.msra.mxu1 %v1920_v31  ;;  %2661 = vmatprep.subr.mxu0 %v1796_v9  ;;  %v2060_v31 = vld [vmem:[%s5435_s3 + $0xe40] sm:$0xff]  ;;  %v2075_v9 = vld [vmem:[%s5435_s3 + $0xeb8] sm:$0xff] }
 0x158   :  { %2696 = vmatprep.subr.mxu1 %v1935_v18  ;;  %2662 = vmatpush3.msra.mxu0 %v1780_v47  ;;  %v2256_v44 = vpop.f32.mrf.mxu0  ;;  %v2059_v18 = vld [vmem:[%s5435_s3 + $0xe38] sm:$0xff]  ;;  %v2074_v47 = vld [vmem:[%s5435_s3 + $0xeb0] sm:$0xff] }
 0x159   :  { %2697 = vmatpush3.msra.mxu1 %v1919_v39  ;;  %2663 = vmatprep.subr.mxu0 %v1795_v14  ;;  %v2257_v27 = vadd.f32 %v2256_v44, %v2255_v28  ;;  %v2290_v35 = vpop.f32.mrf.mxu1  ;;  %v2058_v39 = vld [vmem:[%s5435_s3 + $0xe30] sm:$0xff]  ;;  %v2073_v14 = vld [vmem:[%s5435_s3 + $0xea8] sm:$0xff] }
 0x15a   :  { %2698 = vmatprep.subr.mxu1 %v1934_v54  ;;  %2664 = vmatpush3.msra.mxu0 %v1779_v4  ;;  %v2057_v54 = vld [vmem:[%s5435_s3 + $0xe28] sm:$0xff]  ;;  %v2072_v4 = vld [vmem:[%s5435_s3 + $0xea0] sm:$0xff]  ;;  %v2054_v28 = vld [vmem:[%s5435_s3 + $0xe10] sm:$0xff] }
 0x15b   :  { %2699 = vmatpush3.msra.mxu1 %v1918_v7  ;;  %2665 = vmatprep.subr.mxu0 %v1794_v37  ;;  %v208_v11 = vadd.f32 %v2257_v27, %v105_v17  ;;  %v2291_v45 = vpop.f32.mrf.mxu1  ;;  %v2056_v7 = vld [vmem:[%s5435_s3 + $0xe20] sm:$0xff]  ;;  %v2071_v37 = vld [vmem:[%s5435_s3 + $0xe98] sm:$0xff]  ;;  %v2053_v17 = vld [vmem:[%s5435_s3 + $0xe08] sm:$0xff] }
 0x15c   :  { %2700 = vmatprep.subr.mxu1 %v1933_v25  ;;  %2666 = vmatpush3.msra.mxu0 %v1778_v33  ;;  %v2292_v55 = vadd.f32 %v2291_v45, %v2290_v35  ;;  %v2055_v33 = vld [vmem:[%s5435_s3 + $0xe18] sm:$0xff]  ;;  %v2052_v27 = vld [vmem:[%s5435_s3 + $0xe00] sm:$0xff] }
 0x15d   :  { %2701 = vmatpush3.msra.mxu1 %v1917_v46  ;;  %2667 = vmatprep.subr.mxu0 %v1793_v58  ;;  %209 = vst.msk [vmem:[#allocation2] sm:$0xff] %vm69_vm4, %v208_v11  ;;  %v2070_v46 = vld [vmem:[%s5435_s3 + $0xe90] sm:$0xff] }
 0x15e   :  { %2702 = vmatprep.subr.mxu1 %v1932_v13  ;;  %2668 = vmatpush3.msra.mxu0 %v1777_v19  ;;  %v2069_v19 = vld [vmem:[%s5435_s3 + $0xe88] sm:$0xff] }
 0x15f   :  { %2703 = vmatpush3.msra.mxu1 %v1916_v57  ;;  %2669 = vmatprep.subr.mxu0 %v1792_v8  ;;  %v2047_v8 = vadd.f32 %v2046_v6, %v2044_v20 }
 0x160   :  { %2704 = vmatprep.subr.mxu1 %v1931_v38  ;;  %2670 = vmatpush3.msra.mxu0 %v1776_v5  ;;  %v2068_v38 = vld [vmem:[%s5435_s3 + $0xe80] sm:$0xff] }
 0x161   :  { %2705 = vmatpush3.msra.mxu1 %v1915_v30  ;;  %2671 = vmatprep.subr.mxu0 %v1791_v63  ;;  %v2049_v48 = vmax.f32 %v2047_v8, 0.0 }
 0x162   :  { %2706 = vmatprep.subr.mxu1 %v1930_v22  ;;  %2672 = vmatpush3.msra.mxu0 %v1775_v49 }
 0x163   :  { %2707 = vmatpush3.msra.mxu1 %v1914_v51  ;;  %2673 = vmatprep.subr.mxu0 %v1790_v53 }
 0x164   :  { %2708 = vmatprep.subr.mxu1 %v1929_v2  ;;  %2674 = vmatpush3.msra.mxu0 %v1774_v23  ;;  %v244_v56 = vld [vmem:[#allocation2] sm:$0xff] }
 0x165   :  { %2709 = vmatpush3.msra.mxu1 %v1913_v50  ;;  %1871 = vmatmul.mubr.f32.vlgmr.msra.gmra.mxu0 %v1771_v12  ;;  %v347_v52 = vadd.f32 %v2292_v55, %v244_v56 }
 0x166   :  { %2010 = vmatmul.mubr.f32.vlgmr.msra.gmra.mxu1 %v1910_v43  ;;  %2713 = vmatprep.subr.mxu0 %v2083_v41 }
 0x167   :  { %2714 = vmatpush3.msra.mxu0 %v2067_v0  ;;  %2148 = vmatprep.mubr.f32.mxu0 %v2050_v36  ;;  %348 = vst.msk [vmem:[#allocation2] sm:$0xff] %vm69_vm4, %v347_v52 }
 0x168   :  { %2715 = vmatprep.subr.mxu0 %v2082_v34 }
 0x169   :  { %2716 = vmatpush3.msra.mxu0 %v2066_v29 }
 0x16a   :  { %2717 = vmatprep.subr.mxu0 %v2081_v32 }
 0x16b   :  { %2718 = vmatpush3.msra.mxu0 %v2065_v42 }
 0x16c   :  { %2719 = vmatprep.subr.mxu0 %v2080_v40 }
 0x16d   :  { %2720 = vmatpush3.msra.mxu0 %v2064_v62 }
 0x16e   :  { %2721 = vmatprep.subr.mxu0 %v2079_v60  ;;  %v383_v57 = vld [vmem:[#allocation2] sm:$0xff] }
 0x16f   :  { %2722 = vmatpush3.msra.mxu0 %v2063_v10 }
 0x170   :  { %2723 = vmatprep.subr.mxu0 %v2078_v1 }
 0x171   :  { %2724 = vmatpush3.msra.mxu0 %v2062_v15 }
 0x172   :  { %2725 = vmatprep.subr.mxu0 %v2077_v3 }
 0x173   :  { %2726 = vmatpush3.msra.mxu0 %v2061_v26 }
 0x174   :  { %2727 = vmatprep.subr.mxu0 %v2076_v59 }
 0x175   :  { %2728 = vmatpush3.msra.mxu0 %v2060_v31 }
 0x176   :  { %2729 = vmatprep.subr.mxu0 %v2075_v9 }
 0x177   :  { %2730 = vmatpush3.msra.mxu0 %v2059_v18 }
 0x178   :  { %2731 = vmatprep.subr.mxu0 %v2074_v47 }
 0x179   :  { %2732 = vmatpush3.msra.mxu0 %v2058_v39  ;;  %v2325_v25 = vpop.f32.mrf.mxu0 }
 0x17a   :  { %2733 = vmatprep.subr.mxu0 %v2073_v14  ;;  %v2360_v5 = vpop.f32.mrf.mxu1 }
 0x17b   :  { %2734 = vmatpush3.msra.mxu0 %v2057_v54  ;;  %v2326_v58 = vpop.f32.mrf.mxu0 }
 0x17c   :  { %2735 = vmatprep.subr.mxu0 %v2072_v4  ;;  %v2327_v13 = vadd.f32 %v2326_v58, %v2325_v25  ;;  %v2361_v16 = vpop.f32.mrf.mxu1 }
 0x17d   :  { %2736 = vmatpush3.msra.mxu0 %v2056_v7  ;;  %v2362_v20 = vadd.f32 %v2361_v16, %v2360_v5 }
 0x17e   :  { %2737 = vmatprep.subr.mxu0 %v2071_v37  ;;  %v486_v44 = vadd.f32 %v2327_v13, %v383_v57 }
 0x17f   :  { %2738 = vmatpush3.msra.mxu0 %v2055_v33 }
 0x180   :  { %2739 = vmatprep.subr.mxu0 %v2070_v46  ;;  %487 = vst.msk [vmem:[#allocation2] sm:$0xff] %vm69_vm4, %v486_v44 }
 0x181   :  { %2740 = vmatpush3.msra.mxu0 %v2054_v28 }
 0x182   :  { %2741 = vmatprep.subr.mxu0 %v2069_v19 }
 0x183   :  { %2742 = vmatpush3.msra.mxu0 %v2053_v17 }
 0x184   :  { %2743 = vmatprep.subr.mxu0 %v2068_v38 }
 0x185   :  { %2744 = vmatpush3.msra.mxu0 %v2052_v27 }
 0x186   :  { %2149 = vmatmul.mubr.f32.vlgmr.msra.gmra.mxu0 %v2049_v48 }
 0x187   :  { %v522_v30 = vld [vmem:[#allocation2] sm:$0xff] }
 0x188   :  { %v625_v63 = vadd.f32 %v2362_v20, %v522_v30 }
 0x18a   :  { %626 = vst.msk [vmem:[#allocation2] sm:$0xff] %vm69_vm4, %v625_v63 }
 0x191   :  { %v661_v49 = vld [vmem:[#allocation2] sm:$0xff] }
 0x19d   :  { %v2395_v6 = vpop.f32.mrf.mxu0 }
 0x19e   :  { %v2430_v21 = vpop.f32.mrf.mxu1 }
 0x19f   :  { %v2396_v61 = vpop.f32.mrf.mxu0 }
 0x1a0   :  { %v2397_v22 = vadd.f32 %v2396_v61, %v2395_v6  ;;  %v2431_v51 = vpop.f32.mrf.mxu1 }
 0x1a1   :  { %v2432_v53 = vadd.f32 %v2431_v51, %v2430_v21 }
 0x1a2   :  { %v764_v11 = vadd.f32 %v2397_v22, %v661_v49 }
 0x1a4   :  { %765 = vst.msk [vmem:[#allocation2] sm:$0xff] %vm69_vm4, %v764_v11 }
 0x1ab   :  { %v800_v35 = vld [vmem:[#allocation2] sm:$0xff] }
 0x1ac   :  { %v903_v2 = vadd.f32 %v2432_v53, %v800_v35 }
 0x1ae   :  { %904 = vst.msk [vmem:[#allocation2] sm:$0xff] %vm69_vm4, %v903_v2 }
 0x1b5   :  { %v939_v12 = vld [vmem:[#allocation2] sm:$0xff] }
 0x1bf   :  { %v2465_v23 = vpop.f32.mrf.mxu0 }
 0x1c0   :  { %v2500_v43 = vpop.f32.mrf.mxu1 }
 0x1c1   :  { %v2466_v24 = vpop.f32.mrf.mxu0 }
 0x1c2   :  { %v2467_v50 = vadd.f32 %v2466_v24, %v2465_v23  ;;  %v2501_v0 = vpop.f32.mrf.mxu1 }
 0x1c3   :  { %v2502_v45 = vadd.f32 %v2501_v0, %v2500_v43 }
 0x1c4   :  { %v1042_v41 = vadd.f32 %v2467_v50, %v939_v12 }
 0x1c6   :  { %1043 = vst.msk [vmem:[#allocation2] sm:$0xff] %vm69_vm4, %v1042_v41 }
 0x1cd   :  { %v1078_v36 = vld [vmem:[#allocation2] sm:$0xff] }
 0x1ce   :  { %v1181_v34 = vadd.f32 %v2502_v45, %v1078_v36 }
 0x1d0   :  { %1182 = vst.msk [vmem:[#allocation2] sm:$0xff] %vm69_vm4, %v1181_v34 }
 0x1d7   :  { %v1217_v56 = vld [vmem:[#allocation2] sm:$0xff] }
 0x1e1   :  { %v2535_v29 = vpop.f32.mrf.mxu0 }
 0x1e2   :  { %v2570_v52 = vpop.f32.mrf.mxu1 }
 0x1e3   :  { %v2536_v55 = vpop.f32.mrf.mxu0 }
 0x1e4   :  { %v2537_v32 = vadd.f32 %v2536_v55, %v2535_v29  ;;  %v2571_v40 = vpop.f32.mrf.mxu1 }
 0x1e5   :  { %v2572_v62 = vadd.f32 %v2571_v40, %v2570_v52 }
 0x1e6   :  { %v1320_v42 = vadd.f32 %v2537_v32, %v1217_v56 }
 0x1e8   :  { %1321 = vst.msk [vmem:[#allocation2] sm:$0xff] %vm69_vm4, %v1320_v42 }
 0x1ef   :  { %v1356_v60 = vld [vmem:[#allocation2] sm:$0xff] }
 0x1f0   :  { %v1459_v10 = vadd.f32 %v2572_v62, %v1356_v60 }
 0x1f2   :  { %1460 = vst.msk [vmem:[#allocation2] sm:$0xff] %vm69_vm4, %v1459_v10 }
 0x1f9   :  { %v1495_v26 = vld [vmem:[#allocation2] sm:$0xff] }
 0x203   :  { %v2605_v1 = vpop.f32.mrf.mxu0 }
 0x204   :  { %v2640_v31 = vpop.f32.mrf.mxu1 }
 0x205   :  { %v2606_v15 = vpop.f32.mrf.mxu0 }
 0x206   :  { %v2607_v3 = vadd.f32 %v2606_v15, %v2605_v1  ;;  %v2641_v9 = vpop.f32.mrf.mxu1 }
 0x207   :  { %v2642_v18 = vadd.f32 %v2641_v9, %v2640_v31 }
 0x208   :  { %v1598_v59 = vadd.f32 %v2607_v3, %v1495_v26 }
 0x20a   :  { %1599 = vst.msk [vmem:[#allocation2] sm:$0xff] %vm69_vm4, %v1598_v59 }
 0x211   :  { %v1634_v47 = vld [vmem:[#allocation2] sm:$0xff] }
 0x212   :  { %v1737_v39 = vadd.f32 %v2642_v18, %v1634_v47 }
 0x214   :  { %1738 = vst.msk [vmem:[#allocation2] sm:$0xff] %vm69_vm4, %v1737_v39 }
 0x21b   :  { %v1773_v7 = vld [vmem:[#allocation2] sm:$0xff] }
 0x225   :  { %v2675_v14 = vpop.f32.mrf.mxu0 }
 0x226   :  { %v2710_v25 = vpop.f32.mrf.mxu1 }
 0x227   :  { %v2676_v54 = vpop.f32.mrf.mxu0 }
 0x228   :  { %v2677_v4 = vadd.f32 %v2676_v54, %v2675_v14  ;;  %v2711_v33 = vpop.f32.mrf.mxu1 }
 0x229   :  { %v2712_v46 = vadd.f32 %v2711_v33, %v2710_v25 }
 0x22a   :  { %v1876_v37 = vadd.f32 %v2677_v4, %v1773_v7 }
 0x22c   :  { %1877 = vst.msk [vmem:[#allocation2] sm:$0xff] %vm69_vm4, %v1876_v37 }
 0x233   :  { %v1912_v58 = vld [vmem:[#allocation2] sm:$0xff] }
 0x234   :  { %v2015_v28 = vadd.f32 %v2712_v46, %v1912_v58 }
 0x236   :  { %2016 = vst.msk [vmem:[#allocation2] sm:$0xff] %vm69_vm4, %v2015_v28 }
 0x23d   :  { %v2051_v8 = vld [vmem:[#allocation2] sm:$0xff] }
 0x246   :  { %v2745_v13 = vpop.f32.mrf.mxu0 }
 0x248   :  { %v2746_v19 = vpop.f32.mrf.mxu0 }
 0x249   :  { %v2747_v57 = vadd.f32 %v2746_v19, %v2745_v13 }
 0x24b   :  { %v2154_v17 = vadd.f32 %v2747_v57, %v2051_v8 }
 0x24d   :  { %2155 = vst.msk [vmem:[#allocation2] sm:$0xff] %vm69_vm4, %v2154_v17 }
 0x254   :  { %v2156_v44 = vld [vmem:[#allocation2] sm:$0xff] }
 0x255   :  { %2157 = vst.msk [vmem:[%s5437_s5] sm:$0xff] %vm69_vm4, %v2156_v44 }
 0x256   :  { %2162 = vsyncpa [#allocation4], 1 }

</bundles_post_ra>
